<compile_context>
chip_gen: v7x
topology: tpu7x:2x2x1
jax: 0.10.0
libtpu: 0.0.40
codegen_flags: <defaults>
</compile_context>

<pallas_src>
import functools

import jax
import jax.numpy as jnp
from jax.experimental import pallas as pl
from jax.experimental.pallas import tpu as pltpu

BN_EPS = 1e-5
VMEM_SPEC = pl.BlockSpec(memory_space=pltpu.MemorySpace.VMEM)

# Layer widths exactly as in the PyTorch module (28*28 = 784 features).
DIMS = [784, 512, 256, 128, 64, 32, 16, 32, 64, 128, 256, 512, 784]
# (use_bn, activation) per Linear layer: encoder = 5x(BN+ReLU) + (ReLU only),
# decoder = 5x(BN+ReLU) + (Sigmoid only).
LAYER_CFG = tuple([(True, "relu")] * 5 + [(False, "relu")] +
                  [(True, "relu")] * 5 + [(False, "sigmoid")])
ENCODING_LAYER_IDX = 5   # output of the 32->16 layer is the encoding
N_LAYERS = len(LAYER_CFG)


# ----------------------------- fused kernel -------------------------------- #

def fused_forward_kernel(*refs, layer_cfg, encoding_idx):
    """One kernel for the full forward pass.

    refs layout:
      refs[0]            : x       (B, 784)
      refs[1]            : noise   (B, 784)   (already scaled by 0.2 on host)
      refs[2 + 2*i]      : W_i     (d_in_i, d_out_i)
      refs[3 + 2*i]      : b_i     (1, d_out_i)
      refs[-2]           : encoding out (B, 16)
      refs[-1]           : decoding out (B, 784)
    """
    x_ref, noise_ref = refs[0], refs[1]
    enc_ref, dec_ref = refs[-2], refs[-1]

    # Noise add fused into the first layer's input (single VPU op).
    h = x_ref[...] + noise_ref[...]
    inv_b = 1.0 / float(h.shape[0])

    # Shapes differ per layer -> static Python unroll of the 12 layers.
    for i, (use_bn, act) in enumerate(layer_cfg):
        w = refs[2 + 2 * i][...]
        b = refs[3 + 2 * i][...]
        y = jnp.dot(h, w, preferred_element_type=jnp.float32) + b  # (B,N)+(1,N)

        if use_bn:
            # Single-pass moments: mean and E[y^2] from one traversal of y.
            mean = jnp.sum(y, axis=0, keepdims=True) * inv_b
            mean_sq = jnp.sum(y * y, axis=0, keepdims=True) * inv_b
            var = mean_sq - mean * mean                  # biased variance
            y = (y - mean) * jax.lax.rsqrt(var + BN_EPS)  # identity affine

        if act == "relu":
            y = jnp.maximum(y, 0.0)
        else:  # "sigmoid"
            y = jax.nn.sigmoid(y)

        if i == encoding_idx:
            enc_ref[...] = y.astype(enc_ref.dtype)
        h = y

    dec_ref[...] = h.astype(dec_ref.dtype)


# ----------------------------- wrapper -------------------------------------- #

def forward(x, noise, params):
    """x, noise: (B, 784).  params: list of (W (din,dout), b (1,dout))."""
    B = x.shape[0]
    flat_wb = []
    for w, b in params:
        flat_wb.append(w)
        flat_wb.append(b)

    kern = functools.partial(fused_forward_kernel,
                             layer_cfg=LAYER_CFG,
                             encoding_idx=ENCODING_LAYER_IDX)

    encoding, decoding = pl.pallas_call(
        kern,
        out_shape=(
            jax.ShapeDtypeStruct((B, DIMS[ENCODING_LAYER_IDX + 1]), jnp.float32),
            jax.ShapeDtypeStruct((B, DIMS[-1]), jnp.float32),
        ),
        in_specs=[VMEM_SPEC] * (2 + len(flat_wb)),
        out_specs=(VMEM_SPEC, VMEM_SPEC),
        compiler_params=pltpu.CompilerParams(
            # Weights (~4.6 MB f32) + tiny activations fit easily; keep an
            # explicit limit so the design stays safe on v7x (64 MiB VMEM).
            vmem_limit_bytes=32 * 1024 * 1024,
        ),
    )(x, noise, *flat_wb)
    return encoding, decoding


# ----------------------------- params --------------------------------------- #

def init_params(key):
    """Deterministic Linear params, PyTorch-style U(-1/sqrt(fan_in), +)."""
    params = []
    for din, dout in zip(DIMS[:-1], DIMS[1:]):
        key, kw, kb = jax.random.split(key, 3)
        bound = 1.0 / float(din) ** 0.5
        w = jax.random.uniform(kw, (din, dout), jnp.float32, -bound, bound)
        b = jax.random.uniform(kb, (1, dout), jnp.float32, -bound, bound)
        params.append((w, b))
    return params


# ----------------------------- main ----------------------------------------- #

if __name__ == "__main__":
    key = jax.random.PRNGKey(0)
    kx, kn, kp = jax.random.split(key, 3)

    B = 8                                   # BatchNorm1d needs batch > 1
    x = jax.random.uniform(kx, (B, 28 * 28), jnp.float32)
    noise = jax.random.normal(kn, (B, 28 * 28), jnp.float32) * 0.2
    params = init_params(kp)

    encoding, decoding = jax.jit(forward)(x, noise, params)
    jax.block_until_ready((encoding, decoding))

    assert encoding.shape == (B, 16) and encoding.dtype == jnp.float32
    assert decoding.shape == (B, 28 * 28) and decoding.dtype == jnp.float32
    assert bool(jnp.all(encoding >= 0.0))                        # ReLU output
    assert bool(jnp.all((decoding >= 0.0) & (decoding <= 1.0)))  # Sigmoid output
    assert bool(jnp.all(jnp.isfinite(encoding)))
    assert bool(jnp.all(jnp.isfinite(decoding)))

    print("KERNEL_OK")
</pallas_src>

<mosaic_0001>
module attributes {stable_mosaic.version = 11 : i64} {
  func.func @fused_forward_kernel(%arg0: memref<8x784xf32, #tpu.memory_space<vmem>>, %arg1: memref<8x784xf32, #tpu.memory_space<vmem>>, %arg2: memref<784x512xf32, #tpu.memory_space<vmem>>, %arg3: memref<1x512xf32, #tpu.memory_space<vmem>>, %arg4: memref<512x256xf32, #tpu.memory_space<vmem>>, %arg5: memref<1x256xf32, #tpu.memory_space<vmem>>, %arg6: memref<256x128xf32, #tpu.memory_space<vmem>>, %arg7: memref<1x128xf32, #tpu.memory_space<vmem>>, %arg8: memref<128x64xf32, #tpu.memory_space<vmem>>, %arg9: memref<1x64xf32, #tpu.memory_space<vmem>>, %arg10: memref<64x32xf32, #tpu.memory_space<vmem>>, %arg11: memref<1x32xf32, #tpu.memory_space<vmem>>, %arg12: memref<32x16xf32, #tpu.memory_space<vmem>>, %arg13: memref<1x16xf32, #tpu.memory_space<vmem>>, %arg14: memref<16x32xf32, #tpu.memory_space<vmem>>, %arg15: memref<1x32xf32, #tpu.memory_space<vmem>>, %arg16: memref<32x64xf32, #tpu.memory_space<vmem>>, %arg17: memref<1x64xf32, #tpu.memory_space<vmem>>, %arg18: memref<64x128xf32, #tpu.memory_space<vmem>>, %arg19: memref<1x128xf32, #tpu.memory_space<vmem>>, %arg20: memref<128x256xf32, #tpu.memory_space<vmem>>, %arg21: memref<1x256xf32, #tpu.memory_space<vmem>>, %arg22: memref<256x512xf32, #tpu.memory_space<vmem>>, %arg23: memref<1x512xf32, #tpu.memory_space<vmem>>, %arg24: memref<512x784xf32, #tpu.memory_space<vmem>>, %arg25: memref<1x784xf32, #tpu.memory_space<vmem>>, %arg26: memref<8x16xf32, #tpu.memory_space<vmem>>, %arg27: memref<8x784xf32, #tpu.memory_space<vmem>>) attributes {dimension_semantics = [], scalar_prefetch = 0 : i64, scratch_operands = 0 : i64, tpu.core_type = #tpu.core_type<tc>} {
    %c0 = arith.constant 0 : index
    %c0_0 = arith.constant 0 : index
    %0 = vector.load %arg0[%c0, %c0_0] : memref<8x784xf32, #tpu.memory_space<vmem>>, vector<8x784xf32>
    %c0_1 = arith.constant 0 : index
    %c0_2 = arith.constant 0 : index
    %1 = vector.load %arg1[%c0_1, %c0_2] : memref<8x784xf32, #tpu.memory_space<vmem>>, vector<8x784xf32>
    %2 = arith.addf %0, %1 : vector<8x784xf32>
    %c0_3 = arith.constant 0 : index
    %c0_4 = arith.constant 0 : index
    %3 = vector.load %arg2[%c0_3, %c0_4] : memref<784x512xf32, #tpu.memory_space<vmem>>, vector<784x512xf32>
    %c0_5 = arith.constant 0 : index
    %c0_6 = arith.constant 0 : index
    %4 = vector.load %arg3[%c0_5, %c0_6] : memref<1x512xf32, #tpu.memory_space<vmem>>, vector<1x512xf32>
    %cst = arith.constant dense<0.000000e+00> : vector<8x512xf32>
    %5 = tpu.matmul %2, %3, %cst {dimension_numbers = #tpu.dot_dimension_numbers<[1], [0], [0], [1], [0, 0, 1, 1], [], []>} : vector<8x784xf32>, vector<784x512xf32>, vector<8x512xf32> -> vector<8x512xf32>
    %6 = vector.broadcast %4 : vector<1x512xf32> to vector<8x512xf32>
    %7 = arith.addf %5, %6 : vector<8x512xf32>
    %cst_7 = arith.constant dense<0.000000e+00> : vector<512xf32>
    %8 = vector.multi_reduction <add>, %7, %cst_7 [0] : vector<8x512xf32> to vector<512xf32>
    %9 = vector.shape_cast %8 : vector<512xf32> to vector<1x512xf32>
    %cst_8 = arith.constant 1.250000e-01 : f32
    %10 = vector.broadcast %cst_8 : f32 to vector<1x512xf32>
    %11 = arith.mulf %9, %10 : vector<1x512xf32>
    %12 = arith.mulf %7, %7 : vector<8x512xf32>
    %cst_9 = arith.constant dense<0.000000e+00> : vector<512xf32>
    %13 = vector.multi_reduction <add>, %12, %cst_9 [0] : vector<8x512xf32> to vector<512xf32>
    %14 = vector.shape_cast %13 : vector<512xf32> to vector<1x512xf32>
    %cst_10 = arith.constant 1.250000e-01 : f32
    %15 = vector.broadcast %cst_10 : f32 to vector<1x512xf32>
    %16 = arith.mulf %14, %15 : vector<1x512xf32>
    %17 = arith.mulf %11, %11 : vector<1x512xf32>
    %18 = arith.subf %16, %17 : vector<1x512xf32>
    %19 = vector.broadcast %11 : vector<1x512xf32> to vector<8x512xf32>
    %20 = arith.subf %7, %19 : vector<8x512xf32>
    %cst_11 = arith.constant 9.99999974E-6 : f32
    %21 = vector.broadcast %cst_11 : f32 to vector<1x512xf32>
    %22 = arith.addf %18, %21 : vector<1x512xf32>
    %23 = math.rsqrt %22 : vector<1x512xf32>
    %24 = vector.broadcast %23 : vector<1x512xf32> to vector<8x512xf32>
    %25 = arith.mulf %20, %24 : vector<8x512xf32>
    %cst_12 = arith.constant 0.000000e+00 : f32
    %26 = vector.broadcast %cst_12 : f32 to vector<8x512xf32>
    %27 = arith.maximumf %25, %26 : vector<8x512xf32>
    %c0_13 = arith.constant 0 : index
    %c0_14 = arith.constant 0 : index
    %28 = vector.load %arg4[%c0_13, %c0_14] : memref<512x256xf32, #tpu.memory_space<vmem>>, vector<512x256xf32>
    %c0_15 = arith.constant 0 : index
    %c0_16 = arith.constant 0 : index
    %29 = vector.load %arg5[%c0_15, %c0_16] : memref<1x256xf32, #tpu.memory_space<vmem>>, vector<1x256xf32>
    %cst_17 = arith.constant dense<0.000000e+00> : vector<8x256xf32>
    %30 = tpu.matmul %27, %28, %cst_17 {dimension_numbers = #tpu.dot_dimension_numbers<[1], [0], [0], [1], [0, 0, 1, 1], [], []>} : vector<8x512xf32>, vector<512x256xf32>, vector<8x256xf32> -> vector<8x256xf32>
    %31 = vector.broadcast %29 : vector<1x256xf32> to vector<8x256xf32>
    %32 = arith.addf %30, %31 : vector<8x256xf32>
    %cst_18 = arith.constant dense<0.000000e+00> : vector<256xf32>
    %33 = vector.multi_reduction <add>, %32, %cst_18 [0] : vector<8x256xf32> to vector<256xf32>
    %34 = vector.shape_cast %33 : vector<256xf32> to vector<1x256xf32>
    %cst_19 = arith.constant 1.250000e-01 : f32
    %35 = vector.broadcast %cst_19 : f32 to vector<1x256xf32>
    %36 = arith.mulf %34, %35 : vector<1x256xf32>
    %37 = arith.mulf %32, %32 : vector<8x256xf32>
    %cst_20 = arith.constant dense<0.000000e+00> : vector<256xf32>
    %38 = vector.multi_reduction <add>, %37, %cst_20 [0] : vector<8x256xf32> to vector<256xf32>
    %39 = vector.shape_cast %38 : vector<256xf32> to vector<1x256xf32>
    %cst_21 = arith.constant 1.250000e-01 : f32
    %40 = vector.broadcast %cst_21 : f32 to vector<1x256xf32>
    %41 = arith.mulf %39, %40 : vector<1x256xf32>
    %42 = arith.mulf %36, %36 : vector<1x256xf32>
    %43 = arith.subf %41, %42 : vector<1x256xf32>
    %44 = vector.broadcast %36 : vector<1x256xf32> to vector<8x256xf32>
    %45 = arith.subf %32, %44 : vector<8x256xf32>
    %cst_22 = arith.constant 9.99999974E-6 : f32
    %46 = vector.broadcast %cst_22 : f32 to vector<1x256xf32>
    %47 = arith.addf %43, %46 : vector<1x256xf32>
    %48 = math.rsqrt %47 : vector<1x256xf32>
    %49 = vector.broadcast %48 : vector<1x256xf32> to vector<8x256xf32>
    %50 = arith.mulf %45, %49 : vector<8x256xf32>
    %cst_23 = arith.constant 0.000000e+00 : f32
    %51 = vector.broadcast %cst_23 : f32 to vector<8x256xf32>
    %52 = arith.maximumf %50, %51 : vector<8x256xf32>
    %c0_24 = arith.constant 0 : index
    %c0_25 = arith.constant 0 : index
    %53 = vector.load %arg6[%c0_24, %c0_25] : memref<256x128xf32, #tpu.memory_space<vmem>>, vector<256x128xf32>
    %c0_26 = arith.constant 0 : index
    %c0_27 = arith.constant 0 : index
    %54 = vector.load %arg7[%c0_26, %c0_27] : memref<1x128xf32, #tpu.memory_space<vmem>>, vector<1x128xf32>
    %cst_28 = arith.constant dense<0.000000e+00> : vector<8x128xf32>
    %55 = tpu.matmul %52, %53, %cst_28 {dimension_numbers = #tpu.dot_dimension_numbers<[1], [0], [0], [1], [0, 0, 1, 1], [], []>} : vector<8x256xf32>, vector<256x128xf32>, vector<8x128xf32> -> vector<8x128xf32>
    %56 = vector.broadcast %54 : vector<1x128xf32> to vector<8x128xf32>
    %57 = arith.addf %55, %56 : vector<8x128xf32>
    %cst_29 = arith.constant dense<0.000000e+00> : vector<128xf32>
    %58 = vector.multi_reduction <add>, %57, %cst_29 [0] : vector<8x128xf32> to vector<128xf32>
    %59 = vector.shape_cast %58 : vector<128xf32> to vector<1x128xf32>
    %cst_30 = arith.constant 1.250000e-01 : f32
    %60 = vector.broadcast %cst_30 : f32 to vector<1x128xf32>
    %61 = arith.mulf %59, %60 : vector<1x128xf32>
    %62 = arith.mulf %57, %57 : vector<8x128xf32>
    %cst_31 = arith.constant dense<0.000000e+00> : vector<128xf32>
    %63 = vector.multi_reduction <add>, %62, %cst_31 [0] : vector<8x128xf32> to vector<128xf32>
    %64 = vector.shape_cast %63 : vector<128xf32> to vector<1x128xf32>
    %cst_32 = arith.constant 1.250000e-01 : f32
    %65 = vector.broadcast %cst_32 : f32 to vector<1x128xf32>
    %66 = arith.mulf %64, %65 : vector<1x128xf32>
    %67 = arith.mulf %61, %61 : vector<1x128xf32>
    %68 = arith.subf %66, %67 : vector<1x128xf32>
    %69 = vector.broadcast %61 : vector<1x128xf32> to vector<8x128xf32>
    %70 = arith.subf %57, %69 : vector<8x128xf32>
    %cst_33 = arith.constant 9.99999974E-6 : f32
    %71 = vector.broadcast %cst_33 : f32 to vector<1x128xf32>
    %72 = arith.addf %68, %71 : vector<1x128xf32>
    %73 = math.rsqrt %72 : vector<1x128xf32>
    %74 = vector.broadcast %73 : vector<1x128xf32> to vector<8x128xf32>
    %75 = arith.mulf %70, %74 : vector<8x128xf32>
    %cst_34 = arith.constant 0.000000e+00 : f32
    %76 = vector.broadcast %cst_34 : f32 to vector<8x128xf32>
    %77 = arith.maximumf %75, %76 : vector<8x128xf32>
    %c0_35 = arith.constant 0 : index
    %c0_36 = arith.constant 0 : index
    %78 = vector.load %arg8[%c0_35, %c0_36] : memref<128x64xf32, #tpu.memory_space<vmem>>, vector<128x64xf32>
    %c0_37 = arith.constant 0 : index
    %c0_38 = arith.constant 0 : index
    %79 = vector.load %arg9[%c0_37, %c0_38] : memref<1x64xf32, #tpu.memory_space<vmem>>, vector<1x64xf32>
    %cst_39 = arith.constant dense<0.000000e+00> : vector<8x64xf32>
    %80 = tpu.matmul %77, %78, %cst_39 {dimension_numbers = #tpu.dot_dimension_numbers<[1], [0], [0], [1], [0, 0, 1, 1], [], []>} : vector<8x128xf32>, vector<128x64xf32>, vector<8x64xf32> -> vector<8x64xf32>
    %81 = vector.broadcast %79 : vector<1x64xf32> to vector<8x64xf32>
    %82 = arith.addf %80, %81 : vector<8x64xf32>
    %cst_40 = arith.constant dense<0.000000e+00> : vector<64xf32>
    %83 = vector.multi_reduction <add>, %82, %cst_40 [0] : vector<8x64xf32> to vector<64xf32>
    %84 = vector.shape_cast %83 : vector<64xf32> to vector<1x64xf32>
    %cst_41 = arith.constant 1.250000e-01 : f32
    %85 = vector.broadcast %cst_41 : f32 to vector<1x64xf32>
    %86 = arith.mulf %84, %85 : vector<1x64xf32>
    %87 = arith.mulf %82, %82 : vector<8x64xf32>
    %cst_42 = arith.constant dense<0.000000e+00> : vector<64xf32>
    %88 = vector.multi_reduction <add>, %87, %cst_42 [0] : vector<8x64xf32> to vector<64xf32>
    %89 = vector.shape_cast %88 : vector<64xf32> to vector<1x64xf32>
    %cst_43 = arith.constant 1.250000e-01 : f32
    %90 = vector.broadcast %cst_43 : f32 to vector<1x64xf32>
    %91 = arith.mulf %89, %90 : vector<1x64xf32>
    %92 = arith.mulf %86, %86 : vector<1x64xf32>
    %93 = arith.subf %91, %92 : vector<1x64xf32>
    %94 = vector.broadcast %86 : vector<1x64xf32> to vector<8x64xf32>
    %95 = arith.subf %82, %94 : vector<8x64xf32>
    %cst_44 = arith.constant 9.99999974E-6 : f32
    %96 = vector.broadcast %cst_44 : f32 to vector<1x64xf32>
    %97 = arith.addf %93, %96 : vector<1x64xf32>
    %98 = math.rsqrt %97 : vector<1x64xf32>
    %99 = vector.broadcast %98 : vector<1x64xf32> to vector<8x64xf32>
    %100 = arith.mulf %95, %99 : vector<8x64xf32>
    %cst_45 = arith.constant 0.000000e+00 : f32
    %101 = vector.broadcast %cst_45 : f32 to vector<8x64xf32>
    %102 = arith.maximumf %100, %101 : vector<8x64xf32>
    %c0_46 = arith.constant 0 : index
    %c0_47 = arith.constant 0 : index
    %103 = vector.load %arg10[%c0_46, %c0_47] : memref<64x32xf32, #tpu.memory_space<vmem>>, vector<64x32xf32>
    %c0_48 = arith.constant 0 : index
    %c0_49 = arith.constant 0 : index
    %104 = vector.load %arg11[%c0_48, %c0_49] : memref<1x32xf32, #tpu.memory_space<vmem>>, vector<1x32xf32>
    %cst_50 = arith.constant dense<0.000000e+00> : vector<8x32xf32>
    %105 = tpu.matmul %102, %103, %cst_50 {dimension_numbers = #tpu.dot_dimension_numbers<[1], [0], [0], [1], [0, 0, 1, 1], [], []>} : vector<8x64xf32>, vector<64x32xf32>, vector<8x32xf32> -> vector<8x32xf32>
    %106 = vector.broadcast %104 : vector<1x32xf32> to vector<8x32xf32>
    %107 = arith.addf %105, %106 : vector<8x32xf32>
    %cst_51 = arith.constant dense<0.000000e+00> : vector<32xf32>
    %108 = vector.multi_reduction <add>, %107, %cst_51 [0] : vector<8x32xf32> to vector<32xf32>
    %109 = vector.shape_cast %108 : vector<32xf32> to vector<1x32xf32>
    %cst_52 = arith.constant 1.250000e-01 : f32
    %110 = vector.broadcast %cst_52 : f32 to vector<1x32xf32>
    %111 = arith.mulf %109, %110 : vector<1x32xf32>
    %112 = arith.mulf %107, %107 : vector<8x32xf32>
    %cst_53 = arith.constant dense<0.000000e+00> : vector<32xf32>
    %113 = vector.multi_reduction <add>, %112, %cst_53 [0] : vector<8x32xf32> to vector<32xf32>
    %114 = vector.shape_cast %113 : vector<32xf32> to vector<1x32xf32>
    %cst_54 = arith.constant 1.250000e-01 : f32
    %115 = vector.broadcast %cst_54 : f32 to vector<1x32xf32>
    %116 = arith.mulf %114, %115 : vector<1x32xf32>
    %117 = arith.mulf %111, %111 : vector<1x32xf32>
    %118 = arith.subf %116, %117 : vector<1x32xf32>
    %119 = vector.broadcast %111 : vector<1x32xf32> to vector<8x32xf32>
    %120 = arith.subf %107, %119 : vector<8x32xf32>
    %cst_55 = arith.constant 9.99999974E-6 : f32
    %121 = vector.broadcast %cst_55 : f32 to vector<1x32xf32>
    %122 = arith.addf %118, %121 : vector<1x32xf32>
    %123 = math.rsqrt %122 : vector<1x32xf32>
    %124 = vector.broadcast %123 : vector<1x32xf32> to vector<8x32xf32>
    %125 = arith.mulf %120, %124 : vector<8x32xf32>
    %cst_56 = arith.constant 0.000000e+00 : f32
    %126 = vector.broadcast %cst_56 : f32 to vector<8x32xf32>
    %127 = arith.maximumf %125, %126 : vector<8x32xf32>
    %c0_57 = arith.constant 0 : index
    %c0_58 = arith.constant 0 : index
    %128 = vector.load %arg12[%c0_57, %c0_58] : memref<32x16xf32, #tpu.memory_space<vmem>>, vector<32x16xf32>
    %c0_59 = arith.constant 0 : index
    %c0_60 = arith.constant 0 : index
    %129 = vector.load %arg13[%c0_59, %c0_60] : memref<1x16xf32, #tpu.memory_space<vmem>>, vector<1x16xf32>
    %cst_61 = arith.constant dense<0.000000e+00> : vector<8x16xf32>
    %130 = tpu.matmul %127, %128, %cst_61 {dimension_numbers = #tpu.dot_dimension_numbers<[1], [0], [0], [1], [0, 0, 1, 1], [], []>} : vector<8x32xf32>, vector<32x16xf32>, vector<8x16xf32> -> vector<8x16xf32>
    %131 = vector.broadcast %129 : vector<1x16xf32> to vector<8x16xf32>
    %132 = arith.addf %130, %131 : vector<8x16xf32>
    %cst_62 = arith.constant 0.000000e+00 : f32
    %133 = vector.broadcast %cst_62 : f32 to vector<8x16xf32>
    %134 = arith.maximumf %132, %133 : vector<8x16xf32>
    %c0_63 = arith.constant 0 : index
    %c0_64 = arith.constant 0 : index
    %135 = vector.load %arg26[%c0_63, %c0_64] : memref<8x16xf32, #tpu.memory_space<vmem>>, vector<8x16xf32>
    tpu.vector_store %arg26[%c0_63, %c0_64], %134 {strides = array<i32>} : memref<8x16xf32, #tpu.memory_space<vmem>>, vector<8x16xf32>,
    %c0_65 = arith.constant 0 : index
    %c0_66 = arith.constant 0 : index
    %136 = vector.load %arg14[%c0_65, %c0_66] : memref<16x32xf32, #tpu.memory_space<vmem>>, vector<16x32xf32>
    %c0_67 = arith.constant 0 : index
    %c0_68 = arith.constant 0 : index
    %137 = vector.load %arg15[%c0_67, %c0_68] : memref<1x32xf32, #tpu.memory_space<vmem>>, vector<1x32xf32>
    %cst_69 = arith.constant dense<0.000000e+00> : vector<8x32xf32>
    %138 = tpu.matmul %134, %136, %cst_69 {dimension_numbers = #tpu.dot_dimension_numbers<[1], [0], [0], [1], [0, 0, 1, 1], [], []>} : vector<8x16xf32>, vector<16x32xf32>, vector<8x32xf32> -> vector<8x32xf32>
    %139 = vector.broadcast %137 : vector<1x32xf32> to vector<8x32xf32>
    %140 = arith.addf %138, %139 : vector<8x32xf32>
    %cst_70 = arith.constant dense<0.000000e+00> : vector<32xf32>
    %141 = vector.multi_reduction <add>, %140, %cst_70 [0] : vector<8x32xf32> to vector<32xf32>
    %142 = vector.shape_cast %141 : vector<32xf32> to vector<1x32xf32>
    %cst_71 = arith.constant 1.250000e-01 : f32
    %143 = vector.broadcast %cst_71 : f32 to vector<1x32xf32>
    %144 = arith.mulf %142, %143 : vector<1x32xf32>
    %145 = arith.mulf %140, %140 : vector<8x32xf32>
    %cst_72 = arith.constant dense<0.000000e+00> : vector<32xf32>
    %146 = vector.multi_reduction <add>, %145, %cst_72 [0] : vector<8x32xf32> to vector<32xf32>
    %147 = vector.shape_cast %146 : vector<32xf32> to vector<1x32xf32>
    %cst_73 = arith.constant 1.250000e-01 : f32
    %148 = vector.broadcast %cst_73 : f32 to vector<1x32xf32>
    %149 = arith.mulf %147, %148 : vector<1x32xf32>
    %150 = arith.mulf %144, %144 : vector<1x32xf32>
    %151 = arith.subf %149, %150 : vector<1x32xf32>
    %152 = vector.broadcast %144 : vector<1x32xf32> to vector<8x32xf32>
    %153 = arith.subf %140, %152 : vector<8x32xf32>
    %cst_74 = arith.constant 9.99999974E-6 : f32
    %154 = vector.broadcast %cst_74 : f32 to vector<1x32xf32>
    %155 = arith.addf %151, %154 : vector<1x32xf32>
    %156 = math.rsqrt %155 : vector<1x32xf32>
    %157 = vector.broadcast %156 : vector<1x32xf32> to vector<8x32xf32>
    %158 = arith.mulf %153, %157 : vector<8x32xf32>
    %cst_75 = arith.constant 0.000000e+00 : f32
    %159 = vector.broadcast %cst_75 : f32 to vector<8x32xf32>
    %160 = arith.maximumf %158, %159 : vector<8x32xf32>
    %c0_76 = arith.constant 0 : index
    %c0_77 = arith.constant 0 : index
    %161 = vector.load %arg16[%c0_76, %c0_77] : memref<32x64xf32, #tpu.memory_space<vmem>>, vector<32x64xf32>
    %c0_78 = arith.constant 0 : index
    %c0_79 = arith.constant 0 : index
    %162 = vector.load %arg17[%c0_78, %c0_79] : memref<1x64xf32, #tpu.memory_space<vmem>>, vector<1x64xf32>
    %cst_80 = arith.constant dense<0.000000e+00> : vector<8x64xf32>
    %163 = tpu.matmul %160, %161, %cst_80 {dimension_numbers = #tpu.dot_dimension_numbers<[1], [0], [0], [1], [0, 0, 1, 1], [], []>} : vector<8x32xf32>, vector<32x64xf32>, vector<8x64xf32> -> vector<8x64xf32>
    %164 = vector.broadcast %162 : vector<1x64xf32> to vector<8x64xf32>
    %165 = arith.addf %163, %164 : vector<8x64xf32>
    %cst_81 = arith.constant dense<0.000000e+00> : vector<64xf32>
    %166 = vector.multi_reduction <add>, %165, %cst_81 [0] : vector<8x64xf32> to vector<64xf32>
    %167 = vector.shape_cast %166 : vector<64xf32> to vector<1x64xf32>
    %cst_82 = arith.constant 1.250000e-01 : f32
    %168 = vector.broadcast %cst_82 : f32 to vector<1x64xf32>
    %169 = arith.mulf %167, %168 : vector<1x64xf32>
    %170 = arith.mulf %165, %165 : vector<8x64xf32>
    %cst_83 = arith.constant dense<0.000000e+00> : vector<64xf32>
    %171 = vector.multi_reduction <add>, %170, %cst_83 [0] : vector<8x64xf32> to vector<64xf32>
    %172 = vector.shape_cast %171 : vector<64xf32> to vector<1x64xf32>
    %cst_84 = arith.constant 1.250000e-01 : f32
    %173 = vector.broadcast %cst_84 : f32 to vector<1x64xf32>
    %174 = arith.mulf %172, %173 : vector<1x64xf32>
    %175 = arith.mulf %169, %169 : vector<1x64xf32>
    %176 = arith.subf %174, %175 : vector<1x64xf32>
    %177 = vector.broadcast %169 : vector<1x64xf32> to vector<8x64xf32>
    %178 = arith.subf %165, %177 : vector<8x64xf32>
    %cst_85 = arith.constant 9.99999974E-6 : f32
    %179 = vector.broadcast %cst_85 : f32 to vector<1x64xf32>
    %180 = arith.addf %176, %179 : vector<1x64xf32>
    %181 = math.rsqrt %180 : vector<1x64xf32>
    %182 = vector.broadcast %181 : vector<1x64xf32> to vector<8x64xf32>
    %183 = arith.mulf %178, %182 : vector<8x64xf32>
    %cst_86 = arith.constant 0.000000e+00 : f32
    %184 = vector.broadcast %cst_86 : f32 to vector<8x64xf32>
    %185 = arith.maximumf %183, %184 : vector<8x64xf32>
    %c0_87 = arith.constant 0 : index
    %c0_88 = arith.constant 0 : index
    %186 = vector.load %arg18[%c0_87, %c0_88] : memref<64x128xf32, #tpu.memory_space<vmem>>, vector<64x128xf32>
    %c0_89 = arith.constant 0 : index
    %c0_90 = arith.constant 0 : index
    %187 = vector.load %arg19[%c0_89, %c0_90] : memref<1x128xf32, #tpu.memory_space<vmem>>, vector<1x128xf32>
    %cst_91 = arith.constant dense<0.000000e+00> : vector<8x128xf32>
    %188 = tpu.matmul %185, %186, %cst_91 {dimension_numbers = #tpu.dot_dimension_numbers<[1], [0], [0], [1], [0, 0, 1, 1], [], []>} : vector<8x64xf32>, vector<64x128xf32>, vector<8x128xf32> -> vector<8x128xf32>
    %189 = vector.broadcast %187 : vector<1x128xf32> to vector<8x128xf32>
    %190 = arith.addf %188, %189 : vector<8x128xf32>
    %cst_92 = arith.constant dense<0.000000e+00> : vector<128xf32>
    %191 = vector.multi_reduction <add>, %190, %cst_92 [0] : vector<8x128xf32> to vector<128xf32>
    %192 = vector.shape_cast %191 : vector<128xf32> to vector<1x128xf32>
    %cst_93 = arith.constant 1.250000e-01 : f32
    %193 = vector.broadcast %cst_93 : f32 to vector<1x128xf32>
    %194 = arith.mulf %192, %193 : vector<1x128xf32>
    %195 = arith.mulf %190, %190 : vector<8x128xf32>
    %cst_94 = arith.constant dense<0.000000e+00> : vector<128xf32>
    %196 = vector.multi_reduction <add>, %195, %cst_94 [0] : vector<8x128xf32> to vector<128xf32>
    %197 = vector.shape_cast %196 : vector<128xf32> to vector<1x128xf32>
    %cst_95 = arith.constant 1.250000e-01 : f32
    %198 = vector.broadcast %cst_95 : f32 to vector<1x128xf32>
    %199 = arith.mulf %197, %198 : vector<1x128xf32>
    %200 = arith.mulf %194, %194 : vector<1x128xf32>
    %201 = arith.subf %199, %200 : vector<1x128xf32>
    %202 = vector.broadcast %194 : vector<1x128xf32> to vector<8x128xf32>
    %203 = arith.subf %190, %202 : vector<8x128xf32>
    %cst_96 = arith.constant 9.99999974E-6 : f32
    %204 = vector.broadcast %cst_96 : f32 to vector<1x128xf32>
    %205 = arith.addf %201, %204 : vector<1x128xf32>
    %206 = math.rsqrt %205 : vector<1x128xf32>
    %207 = vector.broadcast %206 : vector<1x128xf32> to vector<8x128xf32>
    %208 = arith.mulf %203, %207 : vector<8x128xf32>
    %cst_97 = arith.constant 0.000000e+00 : f32
    %209 = vector.broadcast %cst_97 : f32 to vector<8x128xf32>
    %210 = arith.maximumf %208, %209 : vector<8x128xf32>
    %c0_98 = arith.constant 0 : index
    %c0_99 = arith.constant 0 : index
    %211 = vector.load %arg20[%c0_98, %c0_99] : memref<128x256xf32, #tpu.memory_space<vmem>>, vector<128x256xf32>
    %c0_100 = arith.constant 0 : index
    %c0_101 = arith.constant 0 : index
    %212 = vector.load %arg21[%c0_100, %c0_101] : memref<1x256xf32, #tpu.memory_space<vmem>>, vector<1x256xf32>
    %cst_102 = arith.constant dense<0.000000e+00> : vector<8x256xf32>
    %213 = tpu.matmul %210, %211, %cst_102 {dimension_numbers = #tpu.dot_dimension_numbers<[1], [0], [0], [1], [0, 0, 1, 1], [], []>} : vector<8x128xf32>, vector<128x256xf32>, vector<8x256xf32> -> vector<8x256xf32>
    %214 = vector.broadcast %212 : vector<1x256xf32> to vector<8x256xf32>
    %215 = arith.addf %213, %214 : vector<8x256xf32>
    %cst_103 = arith.constant dense<0.000000e+00> : vector<256xf32>
    %216 = vector.multi_reduction <add>, %215, %cst_103 [0] : vector<8x256xf32> to vector<256xf32>
    %217 = vector.shape_cast %216 : vector<256xf32> to vector<1x256xf32>
    %cst_104 = arith.constant 1.250000e-01 : f32
    %218 = vector.broadcast %cst_104 : f32 to vector<1x256xf32>
    %219 = arith.mulf %217, %218 : vector<1x256xf32>
    %220 = arith.mulf %215, %215 : vector<8x256xf32>
    %cst_105 = arith.constant dense<0.000000e+00> : vector<256xf32>
    %221 = vector.multi_reduction <add>, %220, %cst_105 [0] : vector<8x256xf32> to vector<256xf32>
    %222 = vector.shape_cast %221 : vector<256xf32> to vector<1x256xf32>
    %cst_106 = arith.constant 1.250000e-01 : f32
    %223 = vector.broadcast %cst_106 : f32 to vector<1x256xf32>
    %224 = arith.mulf %222, %223 : vector<1x256xf32>
    %225 = arith.mulf %219, %219 : vector<1x256xf32>
    %226 = arith.subf %224, %225 : vector<1x256xf32>
    %227 = vector.broadcast %219 : vector<1x256xf32> to vector<8x256xf32>
    %228 = arith.subf %215, %227 : vector<8x256xf32>
    %cst_107 = arith.constant 9.99999974E-6 : f32
    %229 = vector.broadcast %cst_107 : f32 to vector<1x256xf32>
    %230 = arith.addf %226, %229 : vector<1x256xf32>
    %231 = math.rsqrt %230 : vector<1x256xf32>
    %232 = vector.broadcast %231 : vector<1x256xf32> to vector<8x256xf32>
    %233 = arith.mulf %228, %232 : vector<8x256xf32>
    %cst_108 = arith.constant 0.000000e+00 : f32
    %234 = vector.broadcast %cst_108 : f32 to vector<8x256xf32>
    %235 = arith.maximumf %233, %234 : vector<8x256xf32>
    %c0_109 = arith.constant 0 : index
    %c0_110 = arith.constant 0 : index
    %236 = vector.load %arg22[%c0_109, %c0_110] : memref<256x512xf32, #tpu.memory_space<vmem>>, vector<256x512xf32>
    %c0_111 = arith.constant 0 : index
    %c0_112 = arith.constant 0 : index
    %237 = vector.load %arg23[%c0_111, %c0_112] : memref<1x512xf32, #tpu.memory_space<vmem>>, vector<1x512xf32>
    %cst_113 = arith.constant dense<0.000000e+00> : vector<8x512xf32>
    %238 = tpu.matmul %235, %236, %cst_113 {dimension_numbers = #tpu.dot_dimension_numbers<[1], [0], [0], [1], [0, 0, 1, 1], [], []>} : vector<8x256xf32>, vector<256x512xf32>, vector<8x512xf32> -> vector<8x512xf32>
    %239 = vector.broadcast %237 : vector<1x512xf32> to vector<8x512xf32>
    %240 = arith.addf %238, %239 : vector<8x512xf32>
    %cst_114 = arith.constant dense<0.000000e+00> : vector<512xf32>
    %241 = vector.multi_reduction <add>, %240, %cst_114 [0] : vector<8x512xf32> to vector<512xf32>
    %242 = vector.shape_cast %241 : vector<512xf32> to vector<1x512xf32>
    %cst_115 = arith.constant 1.250000e-01 : f32
    %243 = vector.broadcast %cst_115 : f32 to vector<1x512xf32>
    %244 = arith.mulf %242, %243 : vector<1x512xf32>
    %245 = arith.mulf %240, %240 : vector<8x512xf32>
    %cst_116 = arith.constant dense<0.000000e+00> : vector<512xf32>
    %246 = vector.multi_reduction <add>, %245, %cst_116 [0] : vector<8x512xf32> to vector<512xf32>
    %247 = vector.shape_cast %246 : vector<512xf32> to vector<1x512xf32>
    %cst_117 = arith.constant 1.250000e-01 : f32
    %248 = vector.broadcast %cst_117 : f32 to vector<1x512xf32>
    %249 = arith.mulf %247, %248 : vector<1x512xf32>
    %250 = arith.mulf %244, %244 : vector<1x512xf32>
    %251 = arith.subf %249, %250 : vector<1x512xf32>
    %252 = vector.broadcast %244 : vector<1x512xf32> to vector<8x512xf32>
    %253 = arith.subf %240, %252 : vector<8x512xf32>
    %cst_118 = arith.constant 9.99999974E-6 : f32
    %254 = vector.broadcast %cst_118 : f32 to vector<1x512xf32>
    %255 = arith.addf %251, %254 : vector<1x512xf32>
    %256 = math.rsqrt %255 : vector<1x512xf32>
    %257 = vector.broadcast %256 : vector<1x512xf32> to vector<8x512xf32>
    %258 = arith.mulf %253, %257 : vector<8x512xf32>
    %cst_119 = arith.constant 0.000000e+00 : f32
    %259 = vector.broadcast %cst_119 : f32 to vector<8x512xf32>
    %260 = arith.maximumf %258, %259 : vector<8x512xf32>
    %c0_120 = arith.constant 0 : index
    %c0_121 = arith.constant 0 : index
    %261 = vector.load %arg24[%c0_120, %c0_121] : memref<512x784xf32, #tpu.memory_space<vmem>>, vector<512x784xf32>
    %c0_122 = arith.constant 0 : index
    %c0_123 = arith.constant 0 : index
    %262 = vector.load %arg25[%c0_122, %c0_123] : memref<1x784xf32, #tpu.memory_space<vmem>>, vector<1x784xf32>
    %cst_124 = arith.constant dense<0.000000e+00> : vector<8x784xf32>
    %263 = tpu.matmul %260, %261, %cst_124 {dimension_numbers = #tpu.dot_dimension_numbers<[1], [0], [0], [1], [0, 0, 1, 1], [], []>} : vector<8x512xf32>, vector<512x784xf32>, vector<8x784xf32> -> vector<8x784xf32>
    %264 = vector.broadcast %262 : vector<1x784xf32> to vector<8x784xf32>
    %265 = arith.addf %263, %264 : vector<8x784xf32>
    %266 = arith.negf %265 : vector<8x784xf32>
    %267 = math.exp %266 : vector<8x784xf32>
    %cst_125 = arith.constant 1.000000e+00 : f32
    %268 = vector.broadcast %cst_125 : f32 to vector<8x784xf32>
    %269 = arith.addf %268, %267 : vector<8x784xf32>
    %270 = arith.divf %268, %269 : vector<8x784xf32>
    %c0_126 = arith.constant 0 : index
    %c0_127 = arith.constant 0 : index
    %271 = vector.load %arg27[%c0_126, %c0_127] : memref<8x784xf32, #tpu.memory_space<vmem>>, vector<8x784xf32>
    tpu.vector_store %arg27[%c0_126, %c0_127], %270 {strides = array<i32>} : memref<8x784xf32, #tpu.memory_space<vmem>>, vector<8x784xf32>,
    return
  }
}

</mosaic_0001>

<bundles_post_ra>
// kernel: forward.1
= control target key start
LH: loop header
LB: loop body
LE: loop exit
PB: predicated region body
PF: predicated region fallthrough
CT: control target
= control target key end

     0   :  { %s9661_s0 = inlined_call_operand.vmem [shape: f32[8,784], index: 0, kind: input, shape index: {}]   ;;  %s9662_s1 = inlined_call_operand.vmem [shape: f32[8,784], index: 1, kind: input, shape index: {}]   ;;  %s9663_s2 = inlined_call_operand.vmem [shape: f32[784,512], index: 2, kind: input, shape index: {}]   ;;  %s9664_s3 = inlined_call_operand.vmem [shape: f32[1,512], index: 3, kind: input, shape index: {}]   ;;  %s9665_s4 = inlined_call_operand.vmem [shape: f32[512,256], index: 4, kind: input, shape index: {}]   ;;  %s9666_s5 = inlined_call_operand.vmem [shape: f32[1,256], index: 5, kind: input, shape index: {}]   ;;  %s9667_s6 = inlined_call_operand.vmem [shape: f32[256,128], index: 6, kind: input, shape index: {}]   ;;  %s9668_s7 = inlined_call_operand.vmem [shape: f32[1,128], index: 7, kind: input, shape index: {}]   ;;  %s9669_s8 = inlined_call_operand.vmem [shape: f32[128,64], index: 8, kind: input, shape index: {}]   ;;  %s9670_s9 = inlined_call_operand.vmem [shape: f32[1,64], index: 9, kind: input, shape index: {}]   ;;  %s9671_s10 = inlined_call_operand.vmem [shape: f32[64,32], index: 10, kind: input, shape index: {}]   ;;  %s9672_s11 = inlined_call_operand.vmem [shape: f32[1,32], index: 11, kind: input, shape index: {}]   ;;  %s9673_s12 = inlined_call_operand.vmem [shape: f32[32,16], index: 12, kind: input, shape index: {}]   ;;  %s9674_s13 = inlined_call_operand.vmem [shape: f32[1,16], index: 13, kind: input, shape index: {}]   ;;  %s9675_s14 = inlined_call_operand.vmem [shape: f32[16,32], index: 14, kind: input, shape index: {}]   ;;  %s9676_s15 = inlined_call_operand.vmem [shape: f32[1,32], index: 15, kind: input, shape index: {}]   ;;  %s9677_s16 = inlined_call_operand.vmem [shape: f32[32,64], index: 16, kind: input, shape index: {}]   ;;  %s9678_s17 = inlined_call_operand.vmem [shape: f32[1,64], index: 17, kind: input, shape index: {}]   ;;  %s9679_s18 = inlined_call_operand.vmem [shape: f32[64,128], index: 18, kind: input, shape index: {}]   ;;  %s9680_s19 = inlined_call_operand.vmem [shape: f32[1,128], index: 19, kind: input, shape index: {}]   ;;  %s9681_s20 = inlined_call_operand.vmem [shape: f32[128,256], index: 20, kind: input, shape index: {}]   ;;  %s9682_s21 = inlined_call_operand.vmem [shape: f32[1,256], index: 21, kind: input, shape index: {}]   ;;  %s9683_s22 = inlined_call_operand.vmem [shape: f32[256,512], index: 22, kind: input, shape index: {}]   ;;  %s9684_s23 = inlined_call_operand.vmem [shape: f32[1,512], index: 23, kind: input, shape index: {}]   ;;  %s9685_s24 = inlined_call_operand.vmem [shape: f32[512,784], index: 24, kind: input, shape index: {}]   ;;  %s9686_s25 = inlined_call_operand.vmem [shape: f32[1,784], index: 25, kind: input, shape index: {}]   ;;  %s9687_s26 = inlined_call_operand.hbm [shape: f32[8,16], index: 26, kind: output, shape index: {0}]   ;;  %s9688_s27 = inlined_call_operand.hbm [shape: f32[8,784], index: 27, kind: output, shape index: {1}]  }
   0x1   :  { %9696 = sst [smem:[#allocation8_spill]] %s9661_s0 }
   0x2   :  { %9697 = sst [smem:[#allocation9_spill]] %s9662_s1 }
   0x3   :  { %9698 = sst [smem:[#allocation10_spill]] %s9663_s2 }
   0x4   :  { %9699 = sst [smem:[#allocation11_spill]] %s9664_s3 }
   0x5   :  { %9700 = sst [smem:[#allocation12_spill]] %s9665_s4 }
   0x6   :  { %9701 = sst [smem:[#allocation13_spill]] %s9666_s5 }
   0x7   :  { %9702 = sst [smem:[#allocation14_spill]] %s9667_s6 }
   0x8   :  { %9703 = sst [smem:[#allocation15_spill]] %s9668_s7 }
   0x9   :  { %9704 = sst [smem:[#allocation16_spill]] %s9669_s8 }
   0xa   :  { %9705 = sst [smem:[#allocation17_spill]] %s9670_s9 }
   0xb   :  { %9706 = sst [smem:[#allocation18_spill]] %s9671_s10 }
   0xc   :  { %9707 = sst [smem:[#allocation19_spill]] %s9672_s11 }
   0xd   :  { %33 = vsyncpa [#allocation3], 0  ;;  %s9708_s8 = sld [smem:[#allocation10_spill]]  ;;  %v5595_v7 = vmov 0.0   ;;  %s9709_s30 = sld [smem:[#allocation8_spill]]  ;;  %vm522_vm0 = vcmask 130048  }
   0xe   :  { %803 = vmatprep.mubr.f32.mxu1 %v5595_v7  ;;  %s9710_s28 = sld [smem:[#allocation9_spill]] }
  0x13   :  { %v109_v0 = vld [vmem:[%s9708_s8 + $0x8] sm:$0xff]  ;;  %v108_v5 = vld [vmem:[%s9708_s8] sm:$0xff]  ;;  %v111_v15 = vld [vmem:[%s9708_s8 + $0x18] sm:$0xff] }
  0x14   :  { %v113_v1 = vld [vmem:[%s9708_s8 + $0x28] sm:$0xff]  ;;  %v112_v6 = vld [vmem:[%s9708_s8 + $0x20] sm:$0xff]  ;;  %v115_v16 = vld [vmem:[%s9708_s8 + $0x38] sm:$0xff] }
  0x15   :  { %v493_v2 = vld [vmem:[%s9708_s8 + $0xc08] sm:$0xff]  ;;  %v4223_v3 = vpack.c.bf16 %v113_v1, %v109_v0  ;;  %v4225_v9 = vpack.c.bf16 %v112_v6, %v108_v5  ;;  %v492_v10 = vld [vmem:[%s9708_s8 + $0xc00] sm:$0xff]  ;;  %v4419_v18 = vpack.c.bf16 %v115_v16, %v111_v15  ;;  %v93_v21 = vld [vmem:[%s9709_s30 + $0x30] sm:$0xff] }
  0x16   :  { %v497_v4 = vld [vmem:[%s9708_s8 + $0xc28] sm:$0xff]  ;;  %v496_v11 = vld [vmem:[%s9708_s8 + $0xc20] sm:$0xff]  ;;  %v100_v23 = vld [vmem:[%s9710_s28 + $0x30] sm:$0xff] }
  0x17   :  { %v4415_v8 = vpack.c.bf16 %v497_v4, %v493_v2  ;;  %v117_v12 = vld [vmem:[%s9708_s8 + $0x48] sm:$0xff]  ;;  %4224 = vmatprep.subr.bf16.mxu0 %v4223_v3  ;;  %v4417_v13 = vpack.c.bf16 %v496_v11, %v492_v10  ;;  %v116_v19 = vld [vmem:[%s9708_s8 + $0x40] sm:$0xff]  ;;  %v110_v24 = vld [vmem:[%s9708_s8 + $0x10] sm:$0xff]  ;;  %v5795_v26 = vadd.f32 %v100_v23, %v93_v21 }
  0x18   :  { %v121_v14 = vld [vmem:[%s9708_s8 + $0x68] sm:$0xff]  ;;  %4226 = vmatpush1.bf16.msra.mxu0 %v4225_v9  ;;  %v120_v20 = vld [vmem:[%s9708_s8 + $0x60] sm:$0xff]  ;;  %v114_v25 = vld [vmem:[%s9708_s8 + $0x30] sm:$0xff] }
  0x19   :  { %4416 = vmatprep.subr.bf16.mxu1 %v4415_v8  ;;  %v4227_v17 = vpack.c.bf16 %v121_v14, %v117_v12  ;;  %v4229_v22 = vpack.c.bf16 %v120_v20, %v116_v19  ;;  %v4421_v27 = vpack.c.bf16 %v114_v25, %v110_v24  ;;  %v125_v28 = vld [vmem:[%s9708_s8 + $0x88] sm:$0xff]  ;;  %v119_v30 = vld [vmem:[%s9708_s8 + $0x58] sm:$0xff]  ;;  %v124_v33 = vld [vmem:[%s9708_s8 + $0x80] sm:$0xff] }
  0x1a   :  { %4418 = vmatpush1.bf16.msra.mxu1 %v4417_v13  ;;  %v129_v29 = vld [vmem:[%s9708_s8 + $0xa8] sm:$0xff]  ;;  %v123_v32 = vld [vmem:[%s9708_s8 + $0x78] sm:$0xff]  ;;  %v128_v34 = vld [vmem:[%s9708_s8 + $0xa0] sm:$0xff] }
  0x1b   :  { %4228 = vmatprep.subr.bf16.mxu0 %v4227_v17  ;;  %4420 = vmatprep.subr.bf16.mxu1 %v4419_v18  ;;  %v4231_v31 = vpack.c.bf16 %v129_v29, %v125_v28  ;;  %v4423_v35 = vpack.c.bf16 %v123_v32, %v119_v30  ;;  %v4233_v36 = vpack.c.bf16 %v128_v34, %v124_v33  ;;  %v118_v37 = vld [vmem:[%s9708_s8 + $0x50] sm:$0xff]  ;;  %v133_v39 = vld [vmem:[%s9708_s8 + $0xc8] sm:$0xff]  ;;  %v127_v42 = vld [vmem:[%s9708_s8 + $0x98] sm:$0xff] }
  0x1c   :  { %4230 = vmatpush1.bf16.msra.mxu0 %v4229_v22  ;;  %v122_v38 = vld [vmem:[%s9708_s8 + $0x70] sm:$0xff]  ;;  %v137_v41 = vld [vmem:[%s9708_s8 + $0xe8] sm:$0xff]  ;;  %v131_v43 = vld [vmem:[%s9708_s8 + $0xb8] sm:$0xff] }
  0x1d   :  { %3947 = vmatmul.mubr.msk.f32.vlgmr.msra.gmra.mrb[0].mxu1 %vm522_vm0, %v5795_v26  ;;  %4232 = vmatprep.subr.bf16.mxu0 %v4231_v31  ;;  %v4425_v40 = vpack.c.bf16 %v122_v38, %v118_v37  ;;  %v4235_v44 = vpack.c.bf16 %v137_v41, %v133_v39  ;;  %v4427_v45 = vpack.c.bf16 %v131_v43, %v127_v42  ;;  %v132_v46 = vld [vmem:[%s9708_s8 + $0xc0] sm:$0xff]  ;;  %v126_v48 = vld [vmem:[%s9708_s8 + $0x90] sm:$0xff]  ;;  %v141_v50 = vld [vmem:[%s9708_s8 + $0x108] sm:$0xff] }
  0x1e   :  { %4422 = vmatpush1.bf16.msra.mxu1 %v4421_v27  ;;  %v136_v47 = vld [vmem:[%s9708_s8 + $0xe0] sm:$0xff]  ;;  %v130_v49 = vld [vmem:[%s9708_s8 + $0xb0] sm:$0xff]  ;;  %v145_v51 = vld [vmem:[%s9708_s8 + $0x128] sm:$0xff] }
  0x1f   :  { %4424 = vmatprep.subr.bf16.mxu1 %v4423_v35  ;;  %v4237_v52 = vpack.c.bf16 %v136_v47, %v132_v46  ;;  %v135_v53 = vld [vmem:[%s9708_s8 + $0xd8] sm:$0xff]  ;;  %v4429_v55 = vpack.c.bf16 %v130_v49, %v126_v48  ;;  %v4239_v56 = vpack.c.bf16 %v145_v51, %v141_v50  ;;  %v140_v57 = vld [vmem:[%s9708_s8 + $0x100] sm:$0xff]  ;;  %v134_v59 = vld [vmem:[%s9708_s8 + $0xd0] sm:$0xff] }
  0x20   :  { %4234 = vmatpush1.bf16.msra.mxu0 %v4233_v36  ;;  %v139_v54 = vld [vmem:[%s9708_s8 + $0xf8] sm:$0xff]  ;;  %v144_v58 = vld [vmem:[%s9708_s8 + $0x120] sm:$0xff]  ;;  %v138_v61 = vld [vmem:[%s9708_s8 + $0xf0] sm:$0xff] }
  0x21   :  { %4236 = vmatprep.subr.bf16.mxu0 %v4235_v44  ;;  %v4431_v60 = vpack.c.bf16 %v139_v54, %v135_v53  ;;  %v149_v62 = vld [vmem:[%s9708_s8 + $0x148] sm:$0xff]  ;;  %v143_v0 = vld [vmem:[%s9708_s8 + $0x118] sm:$0xff]  ;;  %v4241_v2 = vpack.c.bf16 %v144_v58, %v140_v57  ;;  %v4433_v3 = vpack.c.bf16 %v138_v61, %v134_v59  ;;  %v148_v5 = vld [vmem:[%s9708_s8 + $0x140] sm:$0xff] }
  0x22   :  { %4426 = vmatpush1.bf16.msra.mxu1 %v4425_v40  ;;  %v153_v63 = vld [vmem:[%s9708_s8 + $0x168] sm:$0xff]  ;;  %v147_v1 = vld [vmem:[%s9708_s8 + $0x138] sm:$0xff]  ;;  %v152_v6 = vld [vmem:[%s9708_s8 + $0x160] sm:$0xff] }
  0x23   :  { %4428 = vmatprep.subr.bf16.mxu1 %v4427_v45  ;;  %v4243_v4 = vpack.c.bf16 %v153_v63, %v149_v62  ;;  %v142_v8 = vld [vmem:[%s9708_s8 + $0x110] sm:$0xff]  ;;  %v4435_v9 = vpack.c.bf16 %v147_v1, %v143_v0  ;;  %v157_v11 = vld [vmem:[%s9708_s8 + $0x188] sm:$0xff]  ;;  %v151_v13 = vld [vmem:[%s9708_s8 + $0x158] sm:$0xff]  ;;  %v4245_v15 = vpack.c.bf16 %v152_v6, %v148_v5 }
  0x24   :  { %4238 = vmatpush1.bf16.msra.mxu0 %v4237_v52  ;;  %v146_v10 = vld [vmem:[%s9708_s8 + $0x130] sm:$0xff]  ;;  %v161_v12 = vld [vmem:[%s9708_s8 + $0x1a8] sm:$0xff]  ;;  %v155_v14 = vld [vmem:[%s9708_s8 + $0x178] sm:$0xff] }
  0x25   :  { %4240 = vmatprep.subr.bf16.mxu0 %v4239_v56  ;;  %v4437_v16 = vpack.c.bf16 %v146_v10, %v142_v8  ;;  %v4247_v17 = vpack.c.bf16 %v161_v12, %v157_v11  ;;  %v156_v18 = vld [vmem:[%s9708_s8 + $0x180] sm:$0xff]  ;;  %v150_v20 = vld [vmem:[%s9708_s8 + $0x150] sm:$0xff]  ;;  %v4439_v21 = vpack.c.bf16 %v155_v14, %v151_v13  ;;  %v165_v23 = vld [vmem:[%s9708_s8 + $0x1c8] sm:$0xff] }
  0x26   :  { %4430 = vmatpush1.bf16.msra.mxu1 %v4429_v55  ;;  %v160_v19 = vld [vmem:[%s9708_s8 + $0x1a0] sm:$0xff]  ;;  %v154_v22 = vld [vmem:[%s9708_s8 + $0x170] sm:$0xff]  ;;  %v169_v24 = vld [vmem:[%s9708_s8 + $0x1e8] sm:$0xff] }
  0x27   :  { %4432 = vmatprep.subr.bf16.mxu1 %v4431_v60  ;;  %v159_v25 = vld [vmem:[%s9708_s8 + $0x198] sm:$0xff]  ;;  %v4249_v28 = vpack.c.bf16 %v160_v19, %v156_v18  ;;  %v4441_v29 = vpack.c.bf16 %v154_v22, %v150_v20  ;;  %v4251_v30 = vpack.c.bf16 %v169_v24, %v165_v23  ;;  %v164_v31 = vld [vmem:[%s9708_s8 + $0x1c0] sm:$0xff]  ;;  %v158_v33 = vld [vmem:[%s9708_s8 + $0x190] sm:$0xff] }
  0x28   :  { %4242 = vmatpush1.bf16.msra.mxu0 %v4241_v2  ;;  %v163_v27 = vld [vmem:[%s9708_s8 + $0x1b8] sm:$0xff]  ;;  %v168_v32 = vld [vmem:[%s9708_s8 + $0x1e0] sm:$0xff]  ;;  %v162_v35 = vld [vmem:[%s9708_s8 + $0x1b0] sm:$0xff] }
  0x29   :  { %4244 = vmatprep.subr.bf16.mxu0 %v4243_v4  ;;  %v4443_v34 = vpack.c.bf16 %v163_v27, %v159_v25  ;;  %v173_v36 = vld [vmem:[%s9708_s8 + $0x208] sm:$0xff]  ;;  %v167_v38 = vld [vmem:[%s9708_s8 + $0x1d8] sm:$0xff]  ;;  %v4253_v40 = vpack.c.bf16 %v168_v32, %v164_v31  ;;  %v4445_v41 = vpack.c.bf16 %v162_v35, %v158_v33  ;;  %v172_v43 = vld [vmem:[%s9708_s8 + $0x200] sm:$0xff] }
  0x2a   :  { %4434 = vmatpush1.bf16.msra.mxu1 %v4433_v3  ;;  %v177_v37 = vld [vmem:[%s9708_s8 + $0x228] sm:$0xff]  ;;  %v171_v39 = vld [vmem:[%s9708_s8 + $0x1f8] sm:$0xff]  ;;  %v176_v44 = vld [vmem:[%s9708_s8 + $0x220] sm:$0xff] }
  0x2b   :  { %4436 = vmatprep.subr.bf16.mxu1 %v4435_v9  ;;  %v4255_v42 = vpack.c.bf16 %v177_v37, %v173_v36  ;;  %v166_v45 = vld [vmem:[%s9708_s8 + $0x1d0] sm:$0xff]  ;;  %v4447_v46 = vpack.c.bf16 %v171_v39, %v167_v38  ;;  %v181_v48 = vld [vmem:[%s9708_s8 + $0x248] sm:$0xff]  ;;  %v175_v50 = vld [vmem:[%s9708_s8 + $0x218] sm:$0xff]  ;;  %v4257_v52 = vpack.c.bf16 %v176_v44, %v172_v43 }
  0x2c   :  { %4246 = vmatpush1.bf16.msra.mxu0 %v4245_v15  ;;  %v170_v47 = vld [vmem:[%s9708_s8 + $0x1f0] sm:$0xff]  ;;  %v185_v49 = vld [vmem:[%s9708_s8 + $0x268] sm:$0xff]  ;;  %v179_v51 = vld [vmem:[%s9708_s8 + $0x238] sm:$0xff] }
  0x2d   :  { %4248 = vmatprep.subr.bf16.mxu0 %v4247_v17  ;;  %v4449_v53 = vpack.c.bf16 %v170_v47, %v166_v45  ;;  %v4259_v54 = vpack.c.bf16 %v185_v49, %v181_v48  ;;  %v180_v55 = vld [vmem:[%s9708_s8 + $0x240] sm:$0xff]  ;;  %v174_v57 = vld [vmem:[%s9708_s8 + $0x210] sm:$0xff]  ;;  %v4451_v58 = vpack.c.bf16 %v179_v51, %v175_v50  ;;  %v189_v60 = vld [vmem:[%s9708_s8 + $0x288] sm:$0xff] }
  0x2e   :  { %4438 = vmatpush1.bf16.msra.mxu1 %v4437_v16  ;;  %v184_v56 = vld [vmem:[%s9708_s8 + $0x260] sm:$0xff]  ;;  %v178_v59 = vld [vmem:[%s9708_s8 + $0x230] sm:$0xff]  ;;  %v193_v61 = vld [vmem:[%s9708_s8 + $0x2a8] sm:$0xff] }
  0x2f   :  { %4440 = vmatprep.subr.bf16.mxu1 %v4439_v21  ;;  %v183_v62 = vld [vmem:[%s9708_s8 + $0x258] sm:$0xff]  ;;  %v4261_v0 = vpack.c.bf16 %v184_v56, %v180_v55  ;;  %v4453_v1 = vpack.c.bf16 %v178_v59, %v174_v57  ;;  %v4263_v2 = vpack.c.bf16 %v193_v61, %v189_v60  ;;  %v188_v3 = vld [vmem:[%s9708_s8 + $0x280] sm:$0xff]  ;;  %v182_v5 = vld [vmem:[%s9708_s8 + $0x250] sm:$0xff] }
  0x30   :  { %4250 = vmatpush1.bf16.msra.mxu0 %v4249_v28  ;;  %v187_v63 = vld [vmem:[%s9708_s8 + $0x278] sm:$0xff]  ;;  %v192_v4 = vld [vmem:[%s9708_s8 + $0x2a0] sm:$0xff]  ;;  %v186_v8 = vld [vmem:[%s9708_s8 + $0x270] sm:$0xff] }
  0x31   :  { %4252 = vmatprep.subr.bf16.mxu0 %v4251_v30  ;;  %v4455_v6 = vpack.c.bf16 %v187_v63, %v183_v62  ;;  %v197_v9 = vld [vmem:[%s9708_s8 + $0x2c8] sm:$0xff]  ;;  %v191_v11 = vld [vmem:[%s9708_s8 + $0x298] sm:$0xff]  ;;  %v4265_v13 = vpack.c.bf16 %v192_v4, %v188_v3  ;;  %v196_v14 = vld [vmem:[%s9708_s8 + $0x2c0] sm:$0xff]  ;;  %v4457_v15 = vpack.c.bf16 %v186_v8, %v182_v5 }
  0x32   :  { %4442 = vmatpush1.bf16.msra.mxu1 %v4441_v29  ;;  %v201_v10 = vld [vmem:[%s9708_s8 + $0x2e8] sm:$0xff]  ;;  %v195_v12 = vld [vmem:[%s9708_s8 + $0x2b8] sm:$0xff]  ;;  %v200_v17 = vld [vmem:[%s9708_s8 + $0x2e0] sm:$0xff] }
  0x33   :  { %4444 = vmatprep.subr.bf16.mxu1 %v4443_v34  ;;  %v4267_v16 = vpack.c.bf16 %v201_v10, %v197_v9  ;;  %v190_v18 = vld [vmem:[%s9708_s8 + $0x290] sm:$0xff]  ;;  %v4459_v20 = vpack.c.bf16 %v195_v12, %v191_v11  ;;  %v205_v21 = vld [vmem:[%s9708_s8 + $0x308] sm:$0xff]  ;;  %v199_v23 = vld [vmem:[%s9708_s8 + $0x2d8] sm:$0xff]  ;;  %v4269_v28 = vpack.c.bf16 %v200_v17, %v196_v14 }
  0x34   :  { %4254 = vmatpush1.bf16.msra.mxu0 %v4253_v40  ;;  %v194_v19 = vld [vmem:[%s9708_s8 + $0x2b0] sm:$0xff]  ;;  %v209_v22 = vld [vmem:[%s9708_s8 + $0x328] sm:$0xff]  ;;  %v203_v24 = vld [vmem:[%s9708_s8 + $0x2f8] sm:$0xff] }
  0x35   :  { %4256 = vmatprep.subr.bf16.mxu0 %v4255_v42  ;;  %v88_v25 = vld [vmem:[%s9709_s30 + $0x8] sm:$0xff]  ;;  %v4461_v30 = vpack.c.bf16 %v194_v19, %v190_v18  ;;  %v4271_v31 = vpack.c.bf16 %v209_v22, %v205_v21  ;;  %v204_v32 = vld [vmem:[%s9708_s8 + $0x300] sm:$0xff]  ;;  %v198_v34 = vld [vmem:[%s9708_s8 + $0x2d0] sm:$0xff]  ;;  %v4463_v35 = vpack.c.bf16 %v203_v24, %v199_v23 }
  0x36   :  { %4446 = vmatpush1.bf16.msra.mxu1 %v4445_v41  ;;  %v95_v27 = vld [vmem:[%s9710_s28 + $0x8] sm:$0xff]  ;;  %v208_v33 = vld [vmem:[%s9708_s8 + $0x320] sm:$0xff]  ;;  %v202_v36 = vld [vmem:[%s9708_s8 + $0x2f0] sm:$0xff] }
  0x37   :  { %4448 = vmatprep.subr.bf16.mxu1 %v4447_v46  ;;  %v102_v29 = vadd.f32 %v95_v27, %v88_v25  ;;  %v213_v37 = vld [vmem:[%s9708_s8 + $0x348] sm:$0xff]  ;;  %v207_v39 = vld [vmem:[%s9708_s8 + $0x318] sm:$0xff]  ;;  %v4273_v41 = vpack.c.bf16 %v208_v33, %v204_v32  ;;  %v4465_v42 = vpack.c.bf16 %v202_v36, %v198_v34  ;;  %v212_v44 = vld [vmem:[%s9708_s8 + $0x340] sm:$0xff] }
  0x38   :  { %4258 = vmatpush1.bf16.msra.mxu0 %v4257_v52  ;;  %v217_v38 = vld [vmem:[%s9708_s8 + $0x368] sm:$0xff]  ;;  %v211_v40 = vld [vmem:[%s9708_s8 + $0x338] sm:$0xff]  ;;  %v216_v45 = vld [vmem:[%s9708_s8 + $0x360] sm:$0xff] }
  0x39   :  { %4260 = vmatprep.subr.bf16.mxu0 %v4259_v54  ;;  %590 = vmatprep.mubr.f32.mxu0 %v102_v29  ;;  %v4275_v43 = vpack.c.bf16 %v217_v38, %v213_v37  ;;  %v206_v46 = vld [vmem:[%s9708_s8 + $0x310] sm:$0xff]  ;;  %v4467_v47 = vpack.c.bf16 %v211_v40, %v207_v39  ;;  %v221_v49 = vld [vmem:[%s9708_s8 + $0x388] sm:$0xff]  ;;  %v215_v51 = vld [vmem:[%s9708_s8 + $0x358] sm:$0xff] }
  0x3a   :  { %4450 = vmatpush1.bf16.msra.mxu1 %v4449_v53  ;;  %874 = vmatprep.mubr.f32.mxu1 %v102_v29  ;;  %v210_v48 = vld [vmem:[%s9708_s8 + $0x330] sm:$0xff]  ;;  %v225_v50 = vld [vmem:[%s9708_s8 + $0x3a8] sm:$0xff]  ;;  %v219_v52 = vld [vmem:[%s9708_s8 + $0x378] sm:$0xff]  ;;  %v4277_v53 = vpack.c.bf16 %v216_v45, %v212_v44 }
  0x3b   :  { %4452 = vmatprep.subr.bf16.mxu1 %v4451_v58  ;;  %v4469_v54 = vpack.c.bf16 %v210_v48, %v206_v46  ;;  %v4279_v55 = vpack.c.bf16 %v225_v50, %v221_v49  ;;  %v220_v56 = vld [vmem:[%s9708_s8 + $0x380] sm:$0xff]  ;;  %v214_v58 = vld [vmem:[%s9708_s8 + $0x350] sm:$0xff]  ;;  %v4471_v59 = vpack.c.bf16 %v219_v52, %v215_v51  ;;  %v229_v61 = vld [vmem:[%s9708_s8 + $0x3c8] sm:$0xff] }
  0x3c   :  { %4262 = vmatpush1.bf16.msra.mxu0 %v4261_v0  ;;  %v224_v57 = vld [vmem:[%s9708_s8 + $0x3a0] sm:$0xff]  ;;  %v218_v60 = vld [vmem:[%s9708_s8 + $0x370] sm:$0xff]  ;;  %v233_v62 = vld [vmem:[%s9708_s8 + $0x3e8] sm:$0xff] }
  0x3d   :  { %4264 = vmatprep.subr.bf16.mxu0 %v4263_v2  ;;  %v223_v63 = vld [vmem:[%s9708_s8 + $0x398] sm:$0xff]  ;;  %v4473_v2 = vpack.c.bf16 %v218_v60, %v214_v58  ;;  %v4283_v3 = vpack.c.bf16 %v233_v62, %v229_v61  ;;  %v228_v4 = vld [vmem:[%s9708_s8 + $0x3c0] sm:$0xff]  ;;  %v226_v9 = vld [vmem:[%s9708_s8 + $0x3b0] sm:$0xff] }
  0x3e   :  { %4454 = vmatpush1.bf16.msra.mxu1 %v4453_v1  ;;  %v227_v0 = vld [vmem:[%s9708_s8 + $0x3b8] sm:$0xff]  ;;  %v4281_v1 = vpack.c.bf16 %v224_v57, %v220_v56  ;;  %v232_v5 = vld [vmem:[%s9708_s8 + $0x3e0] sm:$0xff]  ;;  %v237_v10 = vld [vmem:[%s9708_s8 + $0x408] sm:$0xff] }
  0x3f   :  { %4456 = vmatprep.subr.bf16.mxu1 %v4455_v6  ;;  %v222_v6 = vld [vmem:[%s9708_s8 + $0x390] sm:$0xff]  ;;  %v4475_v8 = vpack.c.bf16 %v227_v0, %v223_v63  ;;  %v241_v11 = vld [vmem:[%s9708_s8 + $0x428] sm:$0xff]  ;;  %v231_v12 = vld [vmem:[%s9708_s8 + $0x3d8] sm:$0xff]  ;;  %v4285_v14 = vpack.c.bf16 %v232_v5, %v228_v4 }
  0x40   :  { %4266 = vmatpush1.bf16.msra.mxu0 %v4265_v13  ;;  %v235_v13 = vld [vmem:[%s9708_s8 + $0x3f8] sm:$0xff]  ;;  %v4477_v17 = vpack.c.bf16 %v226_v9, %v222_v6  ;;  %v4287_v18 = vpack.c.bf16 %v241_v11, %v237_v10  ;;  %v236_v19 = vld [vmem:[%s9708_s8 + $0x400] sm:$0xff]  ;;  %v230_v21 = vld [vmem:[%s9708_s8 + $0x3d0] sm:$0xff] }
  0x41   :  { %4268 = vmatprep.subr.bf16.mxu0 %v4267_v16  ;;  %v94_v16 = vld [vmem:[%s9710_s28] sm:$0xff]  ;;  %v4479_v22 = vpack.c.bf16 %v235_v13, %v231_v12  ;;  %v234_v23 = vld [vmem:[%s9708_s8 + $0x3f0] sm:$0xff]  ;;  %v245_v24 = vld [vmem:[%s9708_s8 + $0x448] sm:$0xff] }
  0x42   :  { %4458 = vmatpush1.bf16.msra.mxu1 %v4457_v15  ;;  %v87_v15 = vld [vmem:[%s9709_s30] sm:$0xff]  ;;  %v249_v25 = vld [vmem:[%s9708_s8 + $0x468] sm:$0xff]  ;;  %v243_v29 = vld [vmem:[%s9708_s8 + $0x438] sm:$0xff] }
  0x43   :  { %4460 = vmatprep.subr.bf16.mxu1 %v4459_v20  ;;  %v240_v20 = vld [vmem:[%s9708_s8 + $0x420] sm:$0xff]  ;;  %v101_v27 = vadd.f32 %v94_v16, %v87_v15  ;;  %v4291_v32 = vpack.c.bf16 %v249_v25, %v245_v24  ;;  %v242_v37 = vld [vmem:[%s9708_s8 + $0x430] sm:$0xff]  ;;  %v253_v38 = vld [vmem:[%s9708_s8 + $0x488] sm:$0xff] }
  0x44   :  { %4270 = vmatpush1.bf16.msra.mxu0 %v4269_v28  ;;  %v239_v28 = vld [vmem:[%s9708_s8 + $0x418] sm:$0xff]  ;;  %v244_v33 = vld [vmem:[%s9708_s8 + $0x440] sm:$0xff]  ;;  %v257_v39 = vld [vmem:[%s9708_s8 + $0x4a8] sm:$0xff] }
  0x45   :  { %4272 = vmatprep.subr.bf16.mxu0 %v4271_v31  ;;  %v4481_v31 = vpack.c.bf16 %v234_v23, %v230_v21  ;;  %v248_v34 = vld [vmem:[%s9708_s8 + $0x460] sm:$0xff]  ;;  %v4483_v36 = vpack.c.bf16 %v243_v29, %v239_v28  ;;  %v247_v40 = vld [vmem:[%s9708_s8 + $0x458] sm:$0xff]  ;;  %v4295_v44 = vpack.c.bf16 %v257_v39, %v253_v38  ;;  %v250_v49 = vld [vmem:[%s9708_s8 + $0x470] sm:$0xff] }
  0x46   :  { %4462 = vmatpush1.bf16.msra.mxu1 %v4461_v30  ;;  %v4289_v30 = vpack.c.bf16 %v240_v20, %v236_v19  ;;  %v252_v45 = vld [vmem:[%s9708_s8 + $0x480] sm:$0xff]  ;;  %v261_v50 = vld [vmem:[%s9708_s8 + $0x4c8] sm:$0xff]  ;;  %v255_v52 = vld [vmem:[%s9708_s8 + $0x498] sm:$0xff] }
  0x47   :  { %4464 = vmatprep.subr.bf16.mxu1 %v4463_v35  ;;  %v238_v35 = vld [vmem:[%s9708_s8 + $0x410] sm:$0xff]  ;;  %v256_v46 = vld [vmem:[%s9708_s8 + $0x4a0] sm:$0xff]  ;;  %v265_v51 = vld [vmem:[%s9708_s8 + $0x4e8] sm:$0xff] }
  0x48   :  { %4274 = vmatpush1.bf16.msra.mxu0 %v4273_v41  ;;  %v251_v41 = vld [vmem:[%s9708_s8 + $0x478] sm:$0xff]  ;;  %v4299_v56 = vpack.c.bf16 %v265_v51, %v261_v50  ;;  %v260_v57 = vld [vmem:[%s9708_s8 + $0x4c0] sm:$0xff]  ;;  %v258_v61 = vld [vmem:[%s9708_s8 + $0x4b0] sm:$0xff] }
  0x49   :  { %4276 = vmatprep.subr.bf16.mxu0 %v4275_v43  ;;  %v4485_v43 = vpack.c.bf16 %v242_v37, %v238_v35  ;;  %v4487_v48 = vpack.c.bf16 %v251_v41, %v247_v40  ;;  %v264_v58 = vld [vmem:[%s9708_s8 + $0x4e0] sm:$0xff]  ;;  %v269_v62 = vld [vmem:[%s9708_s8 + $0x508] sm:$0xff]  ;;  %v263_v0 = vld [vmem:[%s9708_s8 + $0x4d8] sm:$0xff] }
  0x4a   :  { %4466 = vmatpush1.bf16.msra.mxu1 %v4465_v42  ;;  %v4293_v42 = vpack.c.bf16 %v248_v34, %v244_v33  ;;  %v273_v63 = vld [vmem:[%s9708_s8 + $0x528] sm:$0xff]  ;;  %v268_v5 = vld [vmem:[%s9708_s8 + $0x500] sm:$0xff]  ;;  %v266_v10 = vld [vmem:[%s9708_s8 + $0x4f0] sm:$0xff] }
  0x4b   :  { %4468 = vmatprep.subr.bf16.mxu1 %v4467_v47  ;;  %v246_v47 = vld [vmem:[%s9708_s8 + $0x450] sm:$0xff]  ;;  %v4303_v4 = vpack.c.bf16 %v273_v63, %v269_v62  ;;  %v272_v6 = vld [vmem:[%s9708_s8 + $0x520] sm:$0xff]  ;;  %v277_v11 = vld [vmem:[%s9708_s8 + $0x548] sm:$0xff] }
  0x4c   :  { %4278 = vmatpush1.bf16.msra.mxu0 %v4277_v53  ;;  %v259_v53 = vld [vmem:[%s9708_s8 + $0x4b8] sm:$0xff]  ;;  %v281_v12 = vld [vmem:[%s9708_s8 + $0x568] sm:$0xff]  ;;  %v4305_v15 = vpack.c.bf16 %v272_v6, %v268_v5  ;;  %v280_v19 = vld [vmem:[%s9708_s8 + $0x560] sm:$0xff] }
  0x4d   :  { %4280 = vmatprep.subr.bf16.mxu0 %v4279_v55  ;;  %v4489_v55 = vpack.c.bf16 %v250_v49, %v246_v47  ;;  %v4491_v60 = vpack.c.bf16 %v259_v53, %v255_v52  ;;  %v271_v13 = vld [vmem:[%s9708_s8 + $0x518] sm:$0xff]  ;;  %v270_v20 = vld [vmem:[%s9708_s8 + $0x510] sm:$0xff]  ;;  %v285_v23 = vld [vmem:[%s9708_s8 + $0x588] sm:$0xff] }
  0x4e   :  { %4470 = vmatpush1.bf16.msra.mxu1 %v4469_v54  ;;  %v4297_v54 = vpack.c.bf16 %v256_v46, %v252_v45  ;;  %v289_v24 = vld [vmem:[%s9708_s8 + $0x5a8] sm:$0xff]  ;;  %v279_v25 = vld [vmem:[%s9708_s8 + $0x558] sm:$0xff]  ;;  %v284_v29 = vld [vmem:[%s9708_s8 + $0x580] sm:$0xff] }
  0x4f   :  { %4472 = vmatprep.subr.bf16.mxu1 %v4471_v59  ;;  %v254_v59 = vld [vmem:[%s9708_s8 + $0x490] sm:$0xff]  ;;  %v297_v37 = vld [vmem:[%s9708_s8 + $0x5e8] sm:$0xff]  ;;  %v287_v38 = vld [vmem:[%s9708_s8 + $0x598] sm:$0xff] }
  0x50   :  { %4282 = vmatpush1.bf16.msra.mxu0 %v4281_v1  ;;  %v267_v1 = vld [vmem:[%s9708_s8 + $0x4f8] sm:$0xff]  ;;  %v278_v33 = vld [vmem:[%s9708_s8 + $0x550] sm:$0xff]  ;;  %v292_v46 = vld [vmem:[%s9708_s8 + $0x5c0] sm:$0xff] }
  0x51   :  { %4284 = vmatprep.subr.bf16.mxu0 %v4283_v3  ;;  %v4493_v3 = vpack.c.bf16 %v258_v61, %v254_v59  ;;  %v4495_v9 = vpack.c.bf16 %v267_v1, %v263_v0  ;;  %v282_v34 = vld [vmem:[%s9708_s8 + $0x570] sm:$0xff]  ;;  %v291_v39 = vld [vmem:[%s9708_s8 + $0x5b8] sm:$0xff]  ;;  %v296_v47 = vld [vmem:[%s9708_s8 + $0x5e0] sm:$0xff] }
  0x52   :  { %4474 = vmatpush1.bf16.msra.mxu1 %v4473_v2  ;;  %v4301_v2 = vpack.c.bf16 %v264_v58, %v260_v57  ;;  %v90_v40 = vld [vmem:[%s9709_s30 + $0x18] sm:$0xff]  ;;  %v4507_v49 = vpack.c.bf16 %v291_v39, %v287_v38  ;;  %v290_v50 = vld [vmem:[%s9708_s8 + $0x5b0] sm:$0xff]  ;;  %v301_v51 = vld [vmem:[%s9708_s8 + $0x608] sm:$0xff] }
  0x53   :  { %4476 = vmatprep.subr.bf16.mxu1 %v4475_v8  ;;  %v262_v8 = vld [vmem:[%s9708_s8 + $0x4d0] sm:$0xff]  ;;  %v97_v41 = vld [vmem:[%s9710_s28 + $0x18] sm:$0xff]  ;;  %v305_v52 = vld [vmem:[%s9708_s8 + $0x628] sm:$0xff] }
  0x54   :  { %4286 = vmatpush1.bf16.msra.mxu0 %v4285_v14  ;;  %v275_v14 = vld [vmem:[%s9708_s8 + $0x538] sm:$0xff]  ;;  %v4497_v16 = vpack.c.bf16 %v266_v10, %v262_v8  ;;  %v4319_v57 = vpack.c.bf16 %v305_v52, %v301_v51  ;;  %v300_v58 = vld [vmem:[%s9708_s8 + $0x600] sm:$0xff]  ;;  %v298_v62 = vld [vmem:[%s9708_s8 + $0x5f0] sm:$0xff] }
  0x55   :  { %4288 = vmatprep.subr.bf16.mxu0 %v4287_v18  ;;  %v276_v18 = vld [vmem:[%s9708_s8 + $0x540] sm:$0xff]  ;;  %v4499_v21 = vpack.c.bf16 %v275_v14, %v271_v13  ;;  %v295_v53 = vld [vmem:[%s9708_s8 + $0x5d8] sm:$0xff]  ;;  %v309_v63 = vld [vmem:[%s9708_s8 + $0x648] sm:$0xff] }
  0x56   :  { %4478 = vmatpush1.bf16.msra.mxu1 %v4477_v17  ;;  %v4307_v17 = vpack.c.bf16 %v281_v12, %v277_v11  ;;  %v4309_v28 = vpack.c.bf16 %v280_v19, %v276_v18  ;;  %v304_v59 = vld [vmem:[%s9708_s8 + $0x620] sm:$0xff]  ;;  %v313_v0 = vld [vmem:[%s9708_s8 + $0x668] sm:$0xff]  ;;  %v303_v1 = vld [vmem:[%s9708_s8 + $0x618] sm:$0xff] }
  0x57   :  { %4480 = vmatprep.subr.bf16.mxu1 %v4479_v22  ;;  %591 = vmatmul.mubr.f32.vlgmr.msra.gmra.mrb[0].mxu0 %v101_v27  ;;  %v274_v22 = vld [vmem:[%s9708_s8 + $0x530] sm:$0xff]  ;;  %v4323_v5 = vpack.c.bf16 %v313_v0, %v309_v63  ;;  %v308_v6 = vld [vmem:[%s9708_s8 + $0x640] sm:$0xff]  ;;  %v317_v12 = vld [vmem:[%s9708_s8 + $0x688] sm:$0xff] }
  0x58   :  { %4290 = vmatpush1.bf16.msra.mxu0 %v4289_v30  ;;  %v4501_v30 = vpack.c.bf16 %v274_v22, %v270_v20  ;;  %v312_v8 = vld [vmem:[%s9708_s8 + $0x660] sm:$0xff]  ;;  %v306_v11 = vld [vmem:[%s9708_s8 + $0x630] sm:$0xff]  ;;  %v321_v13 = vld [vmem:[%s9708_s8 + $0x6a8] sm:$0xff] }
  0x59   :  { %4292 = vmatprep.subr.bf16.mxu0 %v4291_v32  ;;  %v288_v32 = vld [vmem:[%s9708_s8 + $0x5a0] sm:$0xff]  ;;  %v311_v14 = vld [vmem:[%s9708_s8 + $0x658] sm:$0xff]  ;;  %v4327_v18 = vpack.c.bf16 %v321_v13, %v317_v12  ;;  %v337_v38 = vld [vmem:[%s9708_s8 + $0x728] sm:$0xff] }
  0x5a   :  { %4482 = vmatpush1.bf16.msra.mxu1 %v4481_v31  ;;  %v4311_v31 = vpack.c.bf16 %v289_v24, %v285_v23  ;;  %v316_v19 = vld [vmem:[%s9708_s8 + $0x680] sm:$0xff]  ;;  %v314_v23 = vld [vmem:[%s9708_s8 + $0x670] sm:$0xff]  ;;  %v325_v24 = vld [vmem:[%s9708_s8 + $0x6c8] sm:$0xff] }
  0x5b   :  { %4484 = vmatprep.subr.bf16.mxu1 %v4483_v36  ;;  %v293_v36 = vld [vmem:[%s9708_s8 + $0x5c8] sm:$0xff]  ;;  %v320_v20 = vld [vmem:[%s9708_s8 + $0x6a0] sm:$0xff]  ;;  %v327_v39 = vld [vmem:[%s9708_s8 + $0x6d8] sm:$0xff] }
  0x5c   :  { %4294 = vmatpush1.bf16.msra.mxu0 %v4293_v42  ;;  %v4313_v42 = vpack.c.bf16 %v288_v32, %v284_v29  ;;  %v4315_v45 = vpack.c.bf16 %v297_v37, %v293_v36  ;;  %v4329_v29 = vpack.c.bf16 %v320_v20, %v316_v19  ;;  %v324_v32 = vld [vmem:[%s9708_s8 + $0x6c0] sm:$0xff]  ;;  %v322_v36 = vld [vmem:[%s9708_s8 + $0x6b0] sm:$0xff]  ;;  %v333_v37 = vld [vmem:[%s9708_s8 + $0x708] sm:$0xff] }
  0x5d   :  { %875 = vmatmul.mubr.f32.vlgmr.msra.gmra.mrb[2].mxu1 %v101_v27  ;;  %4296 = vmatprep.subr.bf16.mxu0 %v4295_v44  ;;  %v283_v27 = vld [vmem:[%s9708_s8 + $0x578] sm:$0xff]  ;;  %v4505_v44 = vpack.c.bf16 %v282_v34, %v278_v33  ;;  %v328_v33 = vld [vmem:[%s9708_s8 + $0x6e0] sm:$0xff]  ;;  %v318_v34 = vld [vmem:[%s9708_s8 + $0x690] sm:$0xff] }
  0x5e   :  { %4486 = vmatpush1.bf16.msra.mxu1 %v4485_v43  ;;  %v4503_v35 = vpack.c.bf16 %v283_v27, %v279_v25  ;;  %v104_v43 = vadd.f32 %v97_v41, %v90_v40  ;;  %v329_v25 = vld [vmem:[%s9708_s8 + $0x6e8] sm:$0xff]  ;;  %v319_v27 = vld [vmem:[%s9708_s8 + $0x698] sm:$0xff]  ;;  %v4333_v41 = vpack.c.bf16 %v328_v33, %v324_v32  ;;  %v350_v19 = vld [vmem:[%s9708_s8 + $0x790] sm:$0xff] }
  0x5f   :  { %4488 = vmatprep.subr.bf16.mxu1 %v4487_v48  ;;  %v286_v48 = vld [vmem:[%s9708_s8 + $0x590] sm:$0xff]  ;;  %v331_v40 = vld [vmem:[%s9708_s8 + $0x6f8] sm:$0xff]  ;;  %v364_v32 = vld [vmem:[%s9708_s8 + $0x800] sm:$0xff] }
  0x60   :  { %4298 = vmatpush1.bf16.msra.mxu0 %v4297_v54  ;;  %661 = vmatprep.mubr.f32.mxu0 %v104_v43  ;;  %v299_v54 = vld [vmem:[%s9708_s8 + $0x5f8] sm:$0xff]  ;;  %v368_v33 = vld [vmem:[%s9708_s8 + $0x820] sm:$0xff] }
  0x61   :  { %4300 = vmatprep.subr.bf16.mxu0 %v4299_v56  ;;  %945 = vmatprep.mubr.f32.mxu1 %v104_v43  ;;  %v4509_v56 = vpack.c.bf16 %v290_v50, %v286_v48  ;;  %v4511_v61 = vpack.c.bf16 %v299_v54, %v295_v53  ;;  %v4335_v43 = vpack.c.bf16 %v337_v38, %v333_v37  ;;  %v330_v48 = vld [vmem:[%s9708_s8 + $0x6f0] sm:$0xff]  ;;  %v345_v50 = vld [vmem:[%s9708_s8 + $0x768] sm:$0xff]  ;;  %v335_v51 = vld [vmem:[%s9708_s8 + $0x718] sm:$0xff] }
  0x62   :  { %4490 = vmatpush1.bf16.msra.mxu1 %v4489_v55  ;;  %v4317_v55 = vpack.c.bf16 %v296_v47, %v292_v46  ;;  %v326_v46 = vld [vmem:[%s9708_s8 + $0x6d0] sm:$0xff]  ;;  %v4527_v47 = vpack.c.bf16 %v331_v40, %v327_v39  ;;  %v339_v52 = vld [vmem:[%s9708_s8 + $0x738] sm:$0xff]  ;;  %v373_v37 = vld [vmem:[%s9708_s8 + $0x848] sm:$0xff] }
  0x63   :  { %4492 = vmatprep.subr.bf16.mxu1 %v4491_v60  ;;  %v294_v60 = vld [vmem:[%s9708_s8 + $0x5d0] sm:$0xff]  ;;  %v4529_v54 = vpack.c.bf16 %v330_v48, %v326_v46  ;;  %v343_v63 = vld [vmem:[%s9708_s8 + $0x758] sm:$0xff]  ;;  %v377_v38 = vld [vmem:[%s9708_s8 + $0x868] sm:$0xff] }
  0x64   :  { %4302 = vmatpush1.bf16.msra.mxu0 %v4301_v2  ;;  %v307_v2 = vld [vmem:[%s9708_s8 + $0x638] sm:$0xff]  ;;  %v376_v46 = vld [vmem:[%s9708_s8 + $0x860] sm:$0xff]  ;;  %v370_v48 = vld [vmem:[%s9708_s8 + $0x830] sm:$0xff] }
  0x65   :  { %4304 = vmatprep.subr.bf16.mxu0 %v4303_v4  ;;  %v4513_v4 = vpack.c.bf16 %v298_v62, %v294_v60  ;;  %v4515_v10 = vpack.c.bf16 %v307_v2, %v303_v1  ;;  %v338_v60 = vld [vmem:[%s9708_s8 + $0x730] sm:$0xff]  ;;  %v353_v62 = vld [vmem:[%s9708_s8 + $0x7a8] sm:$0xff]  ;;  %v347_v0 = vld [vmem:[%s9708_s8 + $0x778] sm:$0xff] }
  0x66   :  { %4494 = vmatpush1.bf16.msra.mxu1 %v4493_v3  ;;  %v4321_v3 = vpack.c.bf16 %v304_v59, %v300_v58  ;;  %v334_v58 = vld [vmem:[%s9708_s8 + $0x710] sm:$0xff]  ;;  %v4531_v59 = vpack.c.bf16 %v339_v52, %v335_v51  ;;  %v351_v12 = vld [vmem:[%s9708_s8 + $0x798] sm:$0xff]  ;;  %v385_v51 = vld [vmem:[%s9708_s8 + $0x8a8] sm:$0xff] }
  0x67   :  { %4496 = vmatprep.subr.bf16.mxu1 %v4495_v9  ;;  %v302_v9 = vld [vmem:[%s9708_s8 + $0x610] sm:$0xff]  ;;  %v4533_v2 = vpack.c.bf16 %v338_v60, %v334_v58  ;;  %v355_v13 = vld [vmem:[%s9708_s8 + $0x7b8] sm:$0xff]  ;;  %v380_v60 = vld [vmem:[%s9708_s8 + $0x880] sm:$0xff] }
  0x68   :  { %4306 = vmatpush1.bf16.msra.mxu0 %v4305_v15  ;;  %v315_v15 = vld [vmem:[%s9708_s8 + $0x678] sm:$0xff]  ;;  %v4539_v20 = vpack.c.bf16 %v355_v13, %v351_v12  ;;  %v386_v13 = vld [vmem:[%s9708_s8 + $0x8b0] sm:$0xff] }
  0x69   :  { %4308 = vmatprep.subr.bf16.mxu0 %v4307_v17  ;;  %v4517_v17 = vpack.c.bf16 %v306_v11, %v302_v9  ;;  %v4519_v22 = vpack.c.bf16 %v315_v15, %v311_v14  ;;  %v346_v9 = vld [vmem:[%s9708_s8 + $0x770] sm:$0xff]  ;;  %v361_v11 = vld [vmem:[%s9708_s8 + $0x7e8] sm:$0xff]  ;;  %v367_v40 = vld [vmem:[%s9708_s8 + $0x818] sm:$0xff] }
  0x6a   :  { %4498 = vmatpush1.bf16.msra.mxu1 %v4497_v16  ;;  %v4325_v16 = vpack.c.bf16 %v312_v8, %v308_v6  ;;  %v342_v6 = vld [vmem:[%s9708_s8 + $0x750] sm:$0xff]  ;;  %v4535_v8 = vpack.c.bf16 %v347_v0, %v343_v63  ;;  %v375_v52 = vld [vmem:[%s9708_s8 + $0x858] sm:$0xff] }
  0x6b   :  { %4500 = vmatprep.subr.bf16.mxu1 %v4499_v21  ;;  %v310_v21 = vld [vmem:[%s9708_s8 + $0x650] sm:$0xff]  ;;  %v4537_v15 = vpack.c.bf16 %v346_v9, %v342_v6  ;;  %v388_v9 = vld [vmem:[%s9708_s8 + $0x8c0] sm:$0xff] }
  0x6c   :  { %4310 = vmatpush1.bf16.msra.mxu0 %v4309_v28  ;;  %v323_v28 = vld [vmem:[%s9708_s8 + $0x6b8] sm:$0xff]  ;;  %v378_v0 = vld [vmem:[%s9708_s8 + $0x870] sm:$0xff] }
  0x6d   :  { %4312 = vmatprep.subr.bf16.mxu0 %v4311_v31  ;;  %v4331_v31 = vpack.c.bf16 %v329_v25, %v325_v24  ;;  %v359_v24 = vld [vmem:[%s9708_s8 + $0x7d8] sm:$0xff] }
  0x6e   :  { %4502 = vmatpush1.bf16.msra.mxu1 %v4501_v30  ;;  %v4521_v30 = vpack.c.bf16 %v314_v23, %v310_v21  ;;  %v354_v21 = vld [vmem:[%s9708_s8 + $0x7b0] sm:$0xff]  ;;  %v369_v23 = vld [vmem:[%s9708_s8 + $0x828] sm:$0xff]  ;;  %v363_v25 = vld [vmem:[%s9708_s8 + $0x7f8] sm:$0xff] }
  0x6f   :  { %4504 = vmatprep.subr.bf16.mxu1 %v4503_v35  ;;  %v4523_v35 = vpack.c.bf16 %v323_v28, %v319_v27  ;;  %v89_v28 = vld [vmem:[%s9709_s30 + $0x10] sm:$0xff] }
  0x70   :  { %4314 = vmatpush1.bf16.msra.mxu0 %v4313_v42  ;;  %v4525_v42 = vpack.c.bf16 %v322_v36, %v318_v34  ;;  %v358_v34 = vld [vmem:[%s9708_s8 + $0x7d0] sm:$0xff] }
  0x71   :  { %4316 = vmatprep.subr.bf16.mxu0 %v4315_v45  ;;  %v336_v45 = vld [vmem:[%s9708_s8 + $0x720] sm:$0xff]  ;;  %v362_v36 = vld [vmem:[%s9708_s8 + $0x7f0] sm:$0xff] }
  0x72   :  { %4506 = vmatpush1.bf16.msra.mxu1 %v4505_v44  ;;  %v332_v44 = vld [vmem:[%s9708_s8 + $0x700] sm:$0xff] }
  0x73   :  { %4508 = vmatprep.subr.bf16.mxu1 %v4507_v49  ;;  %v341_v49 = vld [vmem:[%s9708_s8 + $0x748] sm:$0xff]  ;;  %v4337_v53 = vpack.c.bf16 %v336_v45, %v332_v44  ;;  %v4545_v44 = vpack.c.bf16 %v362_v36, %v358_v34  ;;  %v4355_v45 = vpack.c.bf16 %v377_v38, %v373_v37 }
  0x74   :  { %4318 = vmatpush1.bf16.msra.mxu0 %v4317_v55  ;;  %v4339_v55 = vpack.c.bf16 %v345_v50, %v341_v49  ;;  %v381_v50 = vld [vmem:[%s9708_s8 + $0x888] sm:$0xff] }
  0x75   :  { %4320 = vmatprep.subr.bf16.mxu0 %v4319_v57  ;;  %v344_v57 = vld [vmem:[%s9708_s8 + $0x760] sm:$0xff] }
  0x76   :  { %4510 = vmatpush1.bf16.msra.mxu1 %v4509_v56  ;;  %v340_v56 = vld [vmem:[%s9708_s8 + $0x740] sm:$0xff] }
  0x77   :  { %4512 = vmatprep.subr.bf16.mxu1 %v4511_v61  ;;  %v349_v61 = vld [vmem:[%s9708_s8 + $0x788] sm:$0xff]  ;;  %v4341_v1 = vpack.c.bf16 %v344_v57, %v340_v56 }
  0x78   :  { %4322 = vmatpush1.bf16.msra.mxu0 %v4321_v3  ;;  %v4343_v3 = vpack.c.bf16 %v353_v62, %v349_v61  ;;  %v384_v61 = vld [vmem:[%s9708_s8 + $0x8a0] sm:$0xff]  ;;  %v374_v62 = vld [vmem:[%s9708_s8 + $0x850] sm:$0xff] }
  0x79   :  { %4324 = vmatprep.subr.bf16.mxu0 %v4323_v5  ;;  %v352_v5 = vld [vmem:[%s9708_s8 + $0x7a0] sm:$0xff]  ;;  %v4553_v6 = vpack.c.bf16 %v378_v0, %v374_v62 }
  0x7a   :  { %4514 = vmatpush1.bf16.msra.mxu1 %v4513_v4  ;;  %v348_v4 = vld [vmem:[%s9708_s8 + $0x780] sm:$0xff] }
  0x7b   :  { %4516 = vmatprep.subr.bf16.mxu1 %v4515_v10  ;;  %v357_v10 = vld [vmem:[%s9708_s8 + $0x7c8] sm:$0xff]  ;;  %v4345_v14 = vpack.c.bf16 %v352_v5, %v348_v4  ;;  %v387_v4 = vld [vmem:[%s9708_s8 + $0x8b8] sm:$0xff]  ;;  %v4361_v5 = vpack.c.bf16 %v384_v61, %v380_v60 }
  0x7c   :  { %4326 = vmatpush1.bf16.msra.mxu0 %v4325_v16  ;;  %v4347_v16 = vpack.c.bf16 %v361_v11, %v357_v10  ;;  %v392_v10 = vld [vmem:[%s9708_s8 + $0x8e0] sm:$0xff]  ;;  %v382_v11 = vld [vmem:[%s9708_s8 + $0x890] sm:$0xff] }
  0x7d   :  { %4328 = vmatprep.subr.bf16.mxu0 %v4327_v18  ;;  %v360_v18 = vld [vmem:[%s9708_s8 + $0x7e0] sm:$0xff] }
  0x7e   :  { %4518 = vmatpush1.bf16.msra.mxu1 %v4517_v17  ;;  %v356_v17 = vld [vmem:[%s9708_s8 + $0x7c0] sm:$0xff] }
  0x7f   :  { %4520 = vmatprep.subr.bf16.mxu1 %v4519_v22  ;;  %v365_v22 = vld [vmem:[%s9708_s8 + $0x808] sm:$0xff]  ;;  %v4349_v27 = vpack.c.bf16 %v360_v18, %v356_v17  ;;  %v395_v17 = vld [vmem:[%s9708_s8 + $0x8f8] sm:$0xff]  ;;  %v4365_v18 = vpack.c.bf16 %v392_v10, %v388_v9 }
  0x80   :  { %4330 = vmatpush1.bf16.msra.mxu0 %v4329_v29  ;;  %v96_v29 = vld [vmem:[%s9710_s28 + $0x10] sm:$0xff] }
  0x81   :  { %4332 = vmatprep.subr.bf16.mxu0 %v4331_v31  ;;  %v4351_v31 = vpack.c.bf16 %v369_v23, %v365_v22  ;;  %v103_v39 = vadd.f32 %v96_v29, %v89_v28  ;;  %v400_v22 = vld [vmem:[%s9708_s8 + $0x920] sm:$0xff]  ;;  %v390_v23 = vld [vmem:[%s9708_s8 + $0x8d0] sm:$0xff]  ;;  %v409_v28 = vld [vmem:[%s9708_s8 + $0x968] sm:$0xff] }
  0x82   :  { %4522 = vmatpush1.bf16.msra.mxu1 %v4521_v30  ;;  %v4541_v30 = vpack.c.bf16 %v354_v21, %v350_v19  ;;  %v4557_v19 = vpack.c.bf16 %v386_v13, %v382_v11  ;;  %v396_v21 = vld [vmem:[%s9708_s8 + $0x900] sm:$0xff]  ;;  %v399_v29 = vld [vmem:[%s9708_s8 + $0x918] sm:$0xff] }
  0x83   :  { %4524 = vmatprep.subr.bf16.mxu1 %v4523_v35  ;;  %v4543_v35 = vpack.c.bf16 %v363_v25, %v359_v24  ;;  %v394_v25 = vld [vmem:[%s9708_s8 + $0x8f0] sm:$0xff] }
  0x84   :  { %4334 = vmatpush1.bf16.msra.mxu0 %v4333_v41  ;;  %v371_v41 = vld [vmem:[%s9708_s8 + $0x838] sm:$0xff] }
  0x85   :  { %4336 = vmatprep.subr.bf16.mxu0 %v4335_v43  ;;  %v372_v43 = vld [vmem:[%s9708_s8 + $0x840] sm:$0xff]  ;;  %v4547_v49 = vpack.c.bf16 %v371_v41, %v367_v40 }
  0x86   :  { %4526 = vmatpush1.bf16.msra.mxu1 %v4525_v42  ;;  %v4353_v42 = vpack.c.bf16 %v368_v33, %v364_v32  ;;  %v4357_v56 = vpack.c.bf16 %v376_v46, %v372_v43 }
  0x87   :  { %4528 = vmatprep.subr.bf16.mxu1 %v4527_v47  ;;  %v366_v47 = vld [vmem:[%s9708_s8 + $0x810] sm:$0xff] }
  0x88   :  { %4338 = vmatpush1.bf16.msra.mxu0 %v4337_v53  ;;  %v379_v53 = vld [vmem:[%s9708_s8 + $0x878] sm:$0xff]  ;;  %v4549_v58 = vpack.c.bf16 %v370_v48, %v366_v47 }
  0x89   :  { %4340 = vmatprep.subr.bf16.mxu0 %v4339_v55  ;;  %v99_v55 = vld [vmem:[%s9710_s28 + $0x28] sm:$0xff]  ;;  %v4551_v63 = vpack.c.bf16 %v379_v53, %v375_v52 }
  0x8a   :  { %4530 = vmatpush1.bf16.msra.mxu1 %v4529_v54  ;;  %v92_v54 = vld [vmem:[%s9709_s30 + $0x28] sm:$0xff] }
  0x8b   :  { %4532 = vmatprep.subr.bf16.mxu1 %v4531_v59  ;;  %v106_v57 = vadd.f32 %v99_v55, %v92_v54  ;;  %v4359_v59 = vpack.c.bf16 %v385_v51, %v381_v50 }
  0x8c   :  { %4342 = vmatpush1.bf16.msra.mxu0 %v4341_v1  ;;  %v389_v1 = vld [vmem:[%s9708_s8 + $0x8c8] sm:$0xff] }
  0x8d   :  { %4344 = vmatprep.subr.bf16.mxu0 %v4343_v3  ;;  %v383_v3 = vld [vmem:[%s9708_s8 + $0x898] sm:$0xff] }
  0x8e   :  { %4534 = vmatpush1.bf16.msra.mxu1 %v4533_v2  ;;  %v393_v2 = vld [vmem:[%s9708_s8 + $0x8e8] sm:$0xff]  ;;  %v4555_v12 = vpack.c.bf16 %v387_v4, %v383_v3 }
  0x8f   :  { %4536 = vmatprep.subr.bf16.mxu1 %v4535_v8  ;;  %v4363_v8 = vpack.c.bf16 %v393_v2, %v389_v1 }
  0x90   :  { %4346 = vmatpush1.bf16.msra.mxu0 %v4345_v14  ;;  %v397_v14 = vld [vmem:[%s9708_s8 + $0x908] sm:$0xff] }
  0x91   :  { %4348 = vmatprep.subr.bf16.mxu0 %v4347_v16  ;;  %v391_v16 = vld [vmem:[%s9708_s8 + $0x8d8] sm:$0xff] }
  0x92   :  { %4538 = vmatpush1.bf16.msra.mxu1 %v4537_v15  ;;  %v401_v15 = vld [vmem:[%s9708_s8 + $0x928] sm:$0xff]  ;;  %v4559_v24 = vpack.c.bf16 %v395_v17, %v391_v16 }
  0x93   :  { %4540 = vmatprep.subr.bf16.mxu1 %v4539_v20  ;;  %v4367_v20 = vpack.c.bf16 %v401_v15, %v397_v14 }
  0x94   :  { %4350 = vmatpush1.bf16.msra.mxu0 %v4349_v27  ;;  %v405_v27 = vld [vmem:[%s9708_s8 + $0x948] sm:$0xff] }
  0x95   :  { %4352 = vmatprep.subr.bf16.mxu0 %v4351_v31 }
  0x96   :  { %4542 = vmatpush1.bf16.msra.mxu1 %v4541_v30  ;;  %v403_v30 = vld [vmem:[%s9708_s8 + $0x938] sm:$0xff] }
  0x97   :  { %4544 = vmatprep.subr.bf16.mxu1 %v4543_v35  ;;  %662 = vmatmul.mubr.f32.vlgmr.msra.gmra.mrb[0].mxu0 %v103_v39 }
  0x98   :  { %4354 = vmatpush1.bf16.msra.mxu0 %v4353_v42  ;;  %732 = vmatprep.mubr.f32.mxu0 %v106_v57 }
  0x99   :  { %4356 = vmatprep.subr.bf16.mxu0 %v4355_v45 }
  0x9a   :  { %4546 = vmatpush1.bf16.msra.mxu1 %v4545_v44 }
  0x9b   :  { %4548 = vmatprep.subr.bf16.mxu1 %v4547_v49 }
  0x9c   :  { %4358 = vmatpush1.bf16.msra.mxu0 %v4357_v56 }
  0x9d   :  { %946 = vmatmul.mubr.f32.vlgmr.msra.gmra.mrb[2].mxu1 %v103_v39  ;;  %4360 = vmatprep.subr.bf16.mxu0 %v4359_v59 }
  0x9e   :  { %4550 = vmatpush1.bf16.msra.mxu1 %v4549_v58  ;;  %1016 = vmatprep.mubr.f32.mxu1 %v106_v57 }
  0x9f   :  { %4552 = vmatprep.subr.bf16.mxu1 %v4551_v63 }
  0xa0   :  { %4362 = vmatpush1.bf16.msra.mxu0 %v4361_v5 }
  0xa1   :  { %4364 = vmatprep.subr.bf16.mxu0 %v4363_v8 }
  0xa2   :  { %4554 = vmatpush1.bf16.msra.mxu1 %v4553_v6 }
  0xa3   :  { %4556 = vmatprep.subr.bf16.mxu1 %v4555_v12 }
  0xa4   :  { %34 = vsyncpa [#allocation5], 0  ;;  %4366 = vmatpush1.bf16.msra.mxu0 %v4365_v18  ;;  %v4369_v31 = vpack.c.bf16 %v400_v22, %v396_v21  ;;  %v4561_v32 = vpack.c.bf16 %v394_v25, %v390_v23  ;;  %v4371_v33 = vpack.c.bf16 %v409_v28, %v405_v27  ;;  %v404_v34 = vld [vmem:[%s9708_s8 + $0x940] sm:$0xff]  ;;  %v398_v36 = vld [vmem:[%s9708_s8 + $0x910] sm:$0xff]  ;;  %v4563_v37 = vpack.c.bf16 %v403_v30, %v399_v29  ;;  %s9711_s2 = sld [smem:[#allocation12_spill]]  ;;  %s9712_s9 = sld [smem:[#allocation11_spill]] }
  0xa5   :  { %4368 = vmatprep.subr.bf16.mxu0 %v4367_v20  ;;  %v408_v35 = vld [vmem:[%s9708_s8 + $0x960] sm:$0xff]  ;;  %v402_v38 = vld [vmem:[%s9708_s8 + $0x930] sm:$0xff]  ;;  %v413_v39 = vld [vmem:[%s9708_s8 + $0x988] sm:$0xff]  ;;  %s9714_s6 = sld [smem:[#allocation13_spill]]  ;;  %s9715_s3 = sld [smem:[#allocation16_spill]]  ;;  %vm5597_vm1 = vmmov 0  }
  0xa6   :  { %4558 = vmatpush1.bf16.msra.mxu1 %v4557_v19  ;;  %v417_v40 = vld [vmem:[%s9708_s8 + $0x9a8] sm:$0xff]  ;;  %v407_v41 = vld [vmem:[%s9708_s8 + $0x958] sm:$0xff]  ;;  %v4373_v43 = vpack.c.bf16 %v408_v35, %v404_v34  ;;  %v4565_v44 = vpack.c.bf16 %v402_v38, %v398_v36  ;;  %v412_v46 = vld [vmem:[%s9708_s8 + $0x980] sm:$0xff]  ;;  %s9718_s29 = sld [smem:[#allocation17_spill]]  ;;  %vm1732_vm2 = vcmask 523264   ;;  %vm1845_vm3 = vcmask 261120  }
  0xa7   :  { %4560 = vmatprep.subr.bf16.mxu1 %v4559_v24  ;;  %v411_v42 = vld [vmem:[%s9708_s8 + $0x978] sm:$0xff]  ;;  %v4375_v45 = vpack.c.bf16 %v417_v40, %v413_v39  ;;  %v416_v47 = vld [vmem:[%s9708_s8 + $0x9a0] sm:$0xff]  ;;  %v406_v48 = vld [vmem:[%s9708_s8 + $0x950] sm:$0xff] }
  0xa8   :  { %4370 = vmatpush1.bf16.msra.mxu0 %v4369_v31  ;;  %v4567_v49 = vpack.c.bf16 %v411_v42, %v407_v41  ;;  %v410_v50 = vld [vmem:[%s9708_s8 + $0x970] sm:$0xff]  ;;  %v421_v51 = vld [vmem:[%s9708_s8 + $0x9c8] sm:$0xff]  ;;  %v415_v53 = vld [vmem:[%s9708_s8 + $0x998] sm:$0xff]  ;;  %v4377_v55 = vpack.c.bf16 %v416_v47, %v412_v46 }
  0xa9   :  { %4372 = vmatprep.subr.bf16.mxu0 %v4371_v33  ;;  %v425_v52 = vld [vmem:[%s9708_s8 + $0x9e8] sm:$0xff]  ;;  %v419_v54 = vld [vmem:[%s9708_s8 + $0x9b8] sm:$0xff]  ;;  %v4569_v56 = vpack.c.bf16 %v410_v50, %v406_v48  ;;  %v420_v58 = vld [vmem:[%s9708_s8 + $0x9c0] sm:$0xff] }
  0xaa   :  { %4562 = vmatpush1.bf16.msra.mxu1 %v4561_v32  ;;  %v4379_v57 = vpack.c.bf16 %v425_v52, %v421_v51  ;;  %v424_v59 = vld [vmem:[%s9708_s8 + $0x9e0] sm:$0xff]  ;;  %v414_v60 = vld [vmem:[%s9708_s8 + $0x990] sm:$0xff]  ;;  %v4571_v61 = vpack.c.bf16 %v419_v54, %v415_v53  ;;  %v429_v63 = vld [vmem:[%s9708_s8 + $0xa08] sm:$0xff] }
  0xab   :  { %4564 = vmatprep.subr.bf16.mxu1 %v4563_v37  ;;  %v418_v62 = vld [vmem:[%s9708_s8 + $0x9b0] sm:$0xff]  ;;  %v433_v0 = vld [vmem:[%s9708_s8 + $0xa28] sm:$0xff]  ;;  %v423_v1 = vld [vmem:[%s9708_s8 + $0x9d8] sm:$0xff]  ;;  %v4381_v3 = vpack.c.bf16 %v424_v59, %v420_v58 }
  0xac   :  { %4374 = vmatpush1.bf16.msra.mxu0 %v4373_v43  ;;  %v427_v2 = vld [vmem:[%s9708_s8 + $0x9f8] sm:$0xff]  ;;  %v4573_v4 = vpack.c.bf16 %v418_v62, %v414_v60  ;;  %v4383_v5 = vpack.c.bf16 %v433_v0, %v429_v63  ;;  %v428_v6 = vld [vmem:[%s9708_s8 + $0xa00] sm:$0xff]  ;;  %v422_v9 = vld [vmem:[%s9708_s8 + $0x9d0] sm:$0xff] }
  0xad   :  { %4376 = vmatprep.subr.bf16.mxu0 %v4375_v45  ;;  %v432_v8 = vld [vmem:[%s9708_s8 + $0xa20] sm:$0xff]  ;;  %v4575_v10 = vpack.c.bf16 %v427_v2, %v423_v1  ;;  %v426_v11 = vld [vmem:[%s9708_s8 + $0x9f0] sm:$0xff]  ;;  %v437_v12 = vld [vmem:[%s9708_s8 + $0xa48] sm:$0xff] }
  0xae   :  { %4566 = vmatpush1.bf16.msra.mxu1 %v4565_v44  ;;  %v441_v13 = vld [vmem:[%s9708_s8 + $0xa68] sm:$0xff]  ;;  %v431_v14 = vld [vmem:[%s9708_s8 + $0xa18] sm:$0xff]  ;;  %v4385_v16 = vpack.c.bf16 %v432_v8, %v428_v6  ;;  %v4577_v17 = vpack.c.bf16 %v426_v11, %v422_v9  ;;  %v436_v19 = vld [vmem:[%s9708_s8 + $0xa40] sm:$0xff] }
  0xaf   :  { %4568 = vmatprep.subr.bf16.mxu1 %v4567_v49  ;;  %v435_v15 = vld [vmem:[%s9708_s8 + $0xa38] sm:$0xff]  ;;  %v4387_v18 = vpack.c.bf16 %v441_v13, %v437_v12  ;;  %v440_v20 = vld [vmem:[%s9708_s8 + $0xa60] sm:$0xff]  ;;  %v430_v21 = vld [vmem:[%s9708_s8 + $0xa10] sm:$0xff] }
  0xb0   :  { %4378 = vmatpush1.bf16.msra.mxu0 %v4377_v55  ;;  %v4579_v22 = vpack.c.bf16 %v435_v15, %v431_v14  ;;  %v434_v23 = vld [vmem:[%s9708_s8 + $0xa30] sm:$0xff]  ;;  %v445_v24 = vld [vmem:[%s9708_s8 + $0xa88] sm:$0xff]  ;;  %v439_v27 = vld [vmem:[%s9708_s8 + $0xa58] sm:$0xff]  ;;  %v4389_v29 = vpack.c.bf16 %v440_v20, %v436_v19 }
  0xb1   :  { %4380 = vmatprep.subr.bf16.mxu0 %v4379_v57  ;;  %v449_v25 = vld [vmem:[%s9708_s8 + $0xaa8] sm:$0xff]  ;;  %v443_v28 = vld [vmem:[%s9708_s8 + $0xa78] sm:$0xff]  ;;  %v4581_v30 = vpack.c.bf16 %v434_v23, %v430_v21  ;;  %v444_v32 = vld [vmem:[%s9708_s8 + $0xa80] sm:$0xff] }
  0xb2   :  { %4570 = vmatpush1.bf16.msra.mxu1 %v4569_v56  ;;  %v4391_v31 = vpack.c.bf16 %v449_v25, %v445_v24  ;;  %v448_v33 = vld [vmem:[%s9708_s8 + $0xaa0] sm:$0xff]  ;;  %v438_v34 = vld [vmem:[%s9708_s8 + $0xa50] sm:$0xff]  ;;  %v4583_v35 = vpack.c.bf16 %v443_v28, %v439_v27  ;;  %v453_v37 = vld [vmem:[%s9708_s8 + $0xac8] sm:$0xff] }
  0xb3   :  { %4572 = vmatprep.subr.bf16.mxu1 %v4571_v61  ;;  %v442_v36 = vld [vmem:[%s9708_s8 + $0xa70] sm:$0xff]  ;;  %v457_v38 = vld [vmem:[%s9708_s8 + $0xae8] sm:$0xff]  ;;  %v447_v39 = vld [vmem:[%s9708_s8 + $0xa98] sm:$0xff]  ;;  %v4393_v41 = vpack.c.bf16 %v448_v33, %v444_v32 }
  0xb4   :  { %4382 = vmatpush1.bf16.msra.mxu0 %v4381_v3  ;;  %v451_v40 = vld [vmem:[%s9708_s8 + $0xab8] sm:$0xff]  ;;  %v4585_v42 = vpack.c.bf16 %v442_v36, %v438_v34  ;;  %v4395_v43 = vpack.c.bf16 %v457_v38, %v453_v37  ;;  %v452_v44 = vld [vmem:[%s9708_s8 + $0xac0] sm:$0xff]  ;;  %v446_v46 = vld [vmem:[%s9708_s8 + $0xa90] sm:$0xff] }
  0xb5   :  { %4384 = vmatprep.subr.bf16.mxu0 %v4383_v5  ;;  %v456_v45 = vld [vmem:[%s9708_s8 + $0xae0] sm:$0xff]  ;;  %v4587_v47 = vpack.c.bf16 %v451_v40, %v447_v39  ;;  %v450_v48 = vld [vmem:[%s9708_s8 + $0xab0] sm:$0xff]  ;;  %v461_v49 = vld [vmem:[%s9708_s8 + $0xb08] sm:$0xff] }
  0xb6   :  { %4574 = vmatpush1.bf16.msra.mxu1 %v4573_v4  ;;  %v465_v50 = vld [vmem:[%s9708_s8 + $0xb28] sm:$0xff]  ;;  %v455_v51 = vld [vmem:[%s9708_s8 + $0xad8] sm:$0xff]  ;;  %v4397_v53 = vpack.c.bf16 %v456_v45, %v452_v44  ;;  %v4589_v54 = vpack.c.bf16 %v450_v48, %v446_v46  ;;  %v460_v56 = vld [vmem:[%s9708_s8 + $0xb00] sm:$0xff] }
  0xb7   :  { %4576 = vmatprep.subr.bf16.mxu1 %v4575_v10  ;;  %v459_v52 = vld [vmem:[%s9708_s8 + $0xaf8] sm:$0xff]  ;;  %v4399_v55 = vpack.c.bf16 %v465_v50, %v461_v49  ;;  %v464_v57 = vld [vmem:[%s9708_s8 + $0xb20] sm:$0xff]  ;;  %v454_v58 = vld [vmem:[%s9708_s8 + $0xad0] sm:$0xff] }
  0xb8   :  { %4386 = vmatpush1.bf16.msra.mxu0 %v4385_v16  ;;  %v4591_v59 = vpack.c.bf16 %v459_v52, %v455_v51  ;;  %v458_v60 = vld [vmem:[%s9708_s8 + $0xaf0] sm:$0xff]  ;;  %v469_v61 = vld [vmem:[%s9708_s8 + $0xb48] sm:$0xff]  ;;  %v463_v63 = vld [vmem:[%s9708_s8 + $0xb18] sm:$0xff]  ;;  %v4401_v1 = vpack.c.bf16 %v464_v57, %v460_v56 }
  0xb9   :  { %4388 = vmatprep.subr.bf16.mxu0 %v4387_v18  ;;  %v473_v62 = vld [vmem:[%s9708_s8 + $0xb68] sm:$0xff]  ;;  %v467_v0 = vld [vmem:[%s9708_s8 + $0xb38] sm:$0xff]  ;;  %v4593_v2 = vpack.c.bf16 %v458_v60, %v454_v58  ;;  %v468_v4 = vld [vmem:[%s9708_s8 + $0xb40] sm:$0xff] }
  0xba   :  { %4578 = vmatpush1.bf16.msra.mxu1 %v4577_v17  ;;  %v4403_v3 = vpack.c.bf16 %v473_v62, %v469_v61  ;;  %v472_v5 = vld [vmem:[%s9708_s8 + $0xb60] sm:$0xff]  ;;  %v462_v6 = vld [vmem:[%s9708_s8 + $0xb10] sm:$0xff]  ;;  %v4595_v8 = vpack.c.bf16 %v467_v0, %v463_v63  ;;  %v477_v10 = vld [vmem:[%s9708_s8 + $0xb88] sm:$0xff] }
  0xbb   :  { %4580 = vmatprep.subr.bf16.mxu1 %v4579_v22  ;;  %v466_v9 = vld [vmem:[%s9708_s8 + $0xb30] sm:$0xff]  ;;  %v481_v11 = vld [vmem:[%s9708_s8 + $0xba8] sm:$0xff]  ;;  %v471_v12 = vld [vmem:[%s9708_s8 + $0xb58] sm:$0xff]  ;;  %v4405_v14 = vpack.c.bf16 %v472_v5, %v468_v4 }
  0xbc   :  { %4390 = vmatpush1.bf16.msra.mxu0 %v4389_v29  ;;  %v475_v13 = vld [vmem:[%s9708_s8 + $0xb78] sm:$0xff]  ;;  %v4597_v15 = vpack.c.bf16 %v466_v9, %v462_v6  ;;  %v4407_v16 = vpack.c.bf16 %v481_v11, %v477_v10  ;;  %v476_v17 = vld [vmem:[%s9708_s8 + $0xb80] sm:$0xff]  ;;  %v470_v19 = vld [vmem:[%s9708_s8 + $0xb50] sm:$0xff] }
  0xbd   :  { %4392 = vmatprep.subr.bf16.mxu0 %v4391_v31  ;;  %v480_v18 = vld [vmem:[%s9708_s8 + $0xba0] sm:$0xff]  ;;  %v4599_v20 = vpack.c.bf16 %v475_v13, %v471_v12  ;;  %v474_v21 = vld [vmem:[%s9708_s8 + $0xb70] sm:$0xff]  ;;  %v485_v22 = vld [vmem:[%s9708_s8 + $0xbc8] sm:$0xff] }
  0xbe   :  { %4582 = vmatpush1.bf16.msra.mxu1 %v4581_v30  ;;  %v489_v23 = vld [vmem:[%s9708_s8 + $0xbe8] sm:$0xff]  ;;  %v479_v24 = vld [vmem:[%s9708_s8 + $0xb98] sm:$0xff]  ;;  %v4409_v27 = vpack.c.bf16 %v480_v18, %v476_v17  ;;  %v4601_v28 = vpack.c.bf16 %v474_v21, %v470_v19  ;;  %v484_v30 = vld [vmem:[%s9708_s8 + $0xbc0] sm:$0xff] }
  0xbf   :  { %4584 = vmatprep.subr.bf16.mxu1 %v4583_v35  ;;  %v483_v25 = vld [vmem:[%s9708_s8 + $0xbb8] sm:$0xff]  ;;  %v4411_v29 = vpack.c.bf16 %v489_v23, %v485_v22  ;;  %v488_v31 = vld [vmem:[%s9708_s8 + $0xbe0] sm:$0xff]  ;;  %v478_v32 = vld [vmem:[%s9708_s8 + $0xb90] sm:$0xff] }
  0xc0   :  { %4394 = vmatpush1.bf16.msra.mxu0 %v4393_v41  ;;  %v4603_v33 = vpack.c.bf16 %v483_v25, %v479_v24  ;;  %v482_v34 = vld [vmem:[%s9708_s8 + $0xbb0] sm:$0xff]  ;;  %v1183_v35 = vld [vmem:[%s9711_s2 + $0x8] sm:$0xff]  ;;  %v1185_v36 = vld [vmem:[%s9711_s2 + $0x18] sm:$0xff]  ;;  %v4413_v39 = vpack.c.bf16 %v488_v31, %v484_v30 }
  0xc1   :  { %4396 = vmatprep.subr.bf16.mxu0 %v4395_v43  ;;  %v487_v37 = vld [vmem:[%s9708_s8 + $0xbd8] sm:$0xff]  ;;  %v91_v40 = vld [vmem:[%s9709_s30 + $0x20] sm:$0xff]  ;;  %v486_v43 = vld [vmem:[%s9708_s8 + $0xbd0] sm:$0xff]  ;;  %v4615_v44 = vpack.c.bf16 %v1185_v36, %v1183_v35  ;;  %s9716_s30 = sld [smem:[#allocation15_spill]] }
  0xc2   :  { %4586 = vmatpush1.bf16.msra.mxu1 %v4585_v42  ;;  %v491_v38 = vld [vmem:[%s9708_s8 + $0xbf8] sm:$0xff]  ;;  %v98_v41 = vld [vmem:[%s9710_s28 + $0x20] sm:$0xff]  ;;  %v4605_v42 = vpack.c.bf16 %v482_v34, %v478_v32  ;;  %v1184_v46 = vld [vmem:[%s9711_s2 + $0x10] sm:$0xff]  ;;  %s9717_s28 = sld [smem:[#allocation18_spill]] }
  0xc3   :  { %4588 = vmatprep.subr.bf16.mxu1 %v4587_v47  ;;  %v1182_v45 = vld [vmem:[%s9711_s2] sm:$0xff]  ;;  %v4607_v47 = vpack.c.bf16 %v491_v38, %v487_v37  ;;  %v490_v48 = vld [vmem:[%s9708_s8 + $0xbf0] sm:$0xff]  ;;  %v1187_v49 = vld [vmem:[%s9711_s2 + $0x28] sm:$0xff]  ;;  %v105_v51 = vadd.f32 %v98_v41, %v91_v40 }
  0xc4   :  { %4398 = vmatpush1.bf16.msra.mxu0 %v4397_v53  ;;  %v1189_v50 = vld [vmem:[%s9711_s2 + $0x38] sm:$0xff]  ;;  %v1186_v57 = vld [vmem:[%s9711_s2 + $0x20] sm:$0xff]  ;;  %v1188_v58 = vld [vmem:[%s9711_s2 + $0x30] sm:$0xff] }
  0xc5   :  { %4400 = vmatprep.subr.bf16.mxu0 %v4399_v55  ;;  %v495_v52 = vld [vmem:[%s9708_s8 + $0xc18] sm:$0xff]  ;;  %v4609_v55 = vpack.c.bf16 %v490_v48, %v486_v43  ;;  %v4619_v56 = vpack.c.bf16 %v1189_v50, %v1187_v49  ;;  %v494_v60 = vld [vmem:[%s9708_s8 + $0xc10] sm:$0xff]  ;;  %v1191_v62 = vld [vmem:[%s9711_s2 + $0x48] sm:$0xff]  ;;  %v4621_v0 = vpack.c.bf16 %v1188_v58, %v1186_v57 }
  0xc6   :  { %4590 = vmatpush1.bf16.msra.mxu1 %v4589_v54  ;;  %v499_v53 = vld [vmem:[%s9708_s8 + $0xc38] sm:$0xff]  ;;  %v4617_v54 = vpack.c.bf16 %v1184_v46, %v1182_v45  ;;  %v498_v61 = vld [vmem:[%s9708_s8 + $0xc30] sm:$0xff]  ;;  %v1195_v5 = vld [vmem:[%s9711_s2 + $0x68] sm:$0xff]  ;;  %s9713_s8 = sld [smem:[#allocation14_spill]] }
  0xc7   :  { %4592 = vmatprep.subr.bf16.mxu1 %v4591_v59  ;;  %v4611_v59 = vpack.c.bf16 %v499_v53, %v495_v52  ;;  %v1193_v63 = vld [vmem:[%s9711_s2 + $0x58] sm:$0xff]  ;;  %v1194_v10 = vld [vmem:[%s9711_s2 + $0x60] sm:$0xff]  ;;  %v1196_v11 = vld [vmem:[%s9711_s2 + $0x70] sm:$0xff] }
  0xc8   :  { %4402 = vmatpush1.bf16.msra.mxu0 %v4401_v1  ;;  %v4613_v1 = vpack.c.bf16 %v498_v61, %v494_v60  ;;  %v4623_v4 = vpack.c.bf16 %v1193_v63, %v1191_v62  ;;  %v1197_v6 = vld [vmem:[%s9711_s2 + $0x78] sm:$0xff]  ;;  %v1199_v12 = vld [vmem:[%s9711_s2 + $0x88] sm:$0xff]  ;;  %v1200_v17 = vld [vmem:[%s9711_s2 + $0x90] sm:$0xff] }
  0xc9   :  { %4404 = vmatprep.subr.bf16.mxu0 %v4403_v3  ;;  %v1192_v3 = vld [vmem:[%s9711_s2 + $0x50] sm:$0xff]  ;;  %v4627_v9 = vpack.c.bf16 %v1197_v6, %v1195_v5  ;;  %v1201_v13 = vld [vmem:[%s9711_s2 + $0x98] sm:$0xff]  ;;  %v1203_v18 = vld [vmem:[%s9711_s2 + $0xa8] sm:$0xff] }
  0xca   :  { %4594 = vmatpush1.bf16.msra.mxu1 %v4593_v2  ;;  %v1190_v2 = vld [vmem:[%s9711_s2 + $0x40] sm:$0xff]  ;;  %v1205_v19 = vld [vmem:[%s9711_s2 + $0xb8] sm:$0xff]  ;;  %v1204_v23 = vld [vmem:[%s9711_s2 + $0xb0] sm:$0xff] }
  0xcb   :  { %4596 = vmatprep.subr.bf16.mxu1 %v4595_v8  ;;  %v4625_v8 = vpack.c.bf16 %v1192_v3, %v1190_v2  ;;  %v4635_v21 = vpack.c.bf16 %v1205_v19, %v1203_v18  ;;  %v1202_v22 = vld [vmem:[%s9711_s2 + $0xa0] sm:$0xff]  ;;  %v1208_v31 = vld [vmem:[%s9711_s2 + $0xd0] sm:$0xff]  ;;  %v1213_v34 = vld [vmem:[%s9711_s2 + $0xf8] sm:$0xff] }
  0xcc   :  { %4406 = vmatpush1.bf16.msra.mxu0 %v4405_v14  ;;  %v4629_v14 = vpack.c.bf16 %v1196_v11, %v1194_v10  ;;  %v4637_v24 = vpack.c.bf16 %v1204_v23, %v1202_v22  ;;  %v1206_v30 = vld [vmem:[%s9711_s2 + $0xc0] sm:$0xff]  ;;  %v1212_v37 = vld [vmem:[%s9711_s2 + $0xf0] sm:$0xff]  ;;  %v1217_v40 = vld [vmem:[%s9711_s2 + $0x118] sm:$0xff] }
  0xcd   :  { %4408 = vmatprep.subr.bf16.mxu0 %v4407_v16  ;;  %v1198_v16 = vld [vmem:[%s9711_s2 + $0x80] sm:$0xff]  ;;  %v4641_v32 = vpack.c.bf16 %v1208_v31, %v1206_v30  ;;  %v1216_v43 = vld [vmem:[%s9711_s2 + $0x110] sm:$0xff]  ;;  %v1219_v45 = vld [vmem:[%s9711_s2 + $0x128] sm:$0xff] }
  0xce   :  { %4598 = vmatpush1.bf16.msra.mxu1 %v4597_v15  ;;  %v4631_v15 = vpack.c.bf16 %v1201_v13, %v1199_v12  ;;  %v1210_v36 = vld [vmem:[%s9711_s2 + $0xe0] sm:$0xff]  ;;  %v1221_v46 = vld [vmem:[%s9711_s2 + $0x138] sm:$0xff]  ;;  %v1220_v49 = vld [vmem:[%s9711_s2 + $0x130] sm:$0xff] }
  0xcf   :  { %4600 = vmatprep.subr.bf16.mxu1 %v4599_v20  ;;  %v4633_v20 = vpack.c.bf16 %v1200_v17, %v1198_v16  ;;  %v4645_v38 = vpack.c.bf16 %v1212_v37, %v1210_v36  ;;  %v1218_v48 = vld [vmem:[%s9711_s2 + $0x120] sm:$0xff]  ;;  %v1225_v52 = vld [vmem:[%s9711_s2 + $0x158] sm:$0xff]  ;;  %v1227_v57 = vld [vmem:[%s9711_s2 + $0x168] sm:$0xff] }
  0xd0   :  { %4410 = vmatpush1.bf16.msra.mxu0 %v4409_v27  ;;  %v4653_v50 = vpack.c.bf16 %v1220_v49, %v1218_v48  ;;  %v1229_v58 = vld [vmem:[%s9711_s2 + $0x178] sm:$0xff]  ;;  %v1226_v60 = vld [vmem:[%s9711_s2 + $0x160] sm:$0xff]  ;;  %v1228_v61 = vld [vmem:[%s9711_s2 + $0x170] sm:$0xff] }
  0xd1   :  { %4412 = vmatprep.subr.bf16.mxu0 %v4411_v29  ;;  %v4661_v62 = vpack.c.bf16 %v1228_v61, %v1226_v60  ;;  %v1231_v63 = vld [vmem:[%s9711_s2 + $0x188] sm:$0xff]  ;;  %v1230_v2 = vld [vmem:[%s9711_s2 + $0x180] sm:$0xff]  ;;  %v1232_v3 = vld [vmem:[%s9711_s2 + $0x190] sm:$0xff] }
  0xd2   :  { %4602 = vmatpush1.bf16.msra.mxu1 %v4601_v28  ;;  %v1209_v28 = vld [vmem:[%s9711_s2 + $0xd8] sm:$0xff]  ;;  %v1235_v5 = vld [vmem:[%s9711_s2 + $0x1a8] sm:$0xff]  ;;  %v1236_v10 = vld [vmem:[%s9711_s2 + $0x1b0] sm:$0xff] }
  0xd3   :  { %4604 = vmatprep.subr.bf16.mxu1 %v4603_v33  ;;  %v1211_v33 = vld [vmem:[%s9711_s2 + $0xe8] sm:$0xff]  ;;  %v1237_v6 = vld [vmem:[%s9711_s2 + $0x1b8] sm:$0xff]  ;;  %v1240_v16 = vld [vmem:[%s9711_s2 + $0x1d0] sm:$0xff] }
  0xd4   :  { %4414 = vmatpush1.bf16.msra.mxu0 %v4413_v39  ;;  %v4643_v35 = vpack.c.bf16 %v1213_v34, %v1211_v33  ;;  %v1215_v39 = vld [vmem:[%s9711_s2 + $0x108] sm:$0xff]  ;;  %v1241_v13 = vld [vmem:[%s9711_s2 + $0x1d8] sm:$0xff]  ;;  %v1244_v22 = vld [vmem:[%s9711_s2 + $0x1f0] sm:$0xff] }
  0xd5   :  { %4616 = vmatprep.subr.bf16.mxu0 %v4615_v44  ;;  %v4647_v41 = vpack.c.bf16 %v1217_v40, %v1215_v39  ;;  %v1239_v12 = vld [vmem:[%s9711_s2 + $0x1c8] sm:$0xff]  ;;  %v1245_v19 = vld [vmem:[%s9711_s2 + $0x1f8] sm:$0xff] }
  0xd6   :  { %4606 = vmatpush1.bf16.msra.mxu1 %v4605_v42  ;;  %v1214_v42 = vld [vmem:[%s9711_s2 + $0x100] sm:$0xff]  ;;  %v1243_v18 = vld [vmem:[%s9711_s2 + $0x1e8] sm:$0xff] }
  0xd7   :  { %4608 = vmatprep.subr.bf16.mxu1 %v4607_v47  ;;  %733 = vmatmul.mubr.f32.vlgmr.msra.gmra.mrb[0].mxu0 %v105_v51  ;;  %v4649_v44 = vpack.c.bf16 %v1216_v43, %v1214_v42  ;;  %v4651_v47 = vpack.c.bf16 %v1221_v46, %v1219_v45 }
  0xd8   :  { %4618 = vmatpush1.bf16.msra.mxu0 %v4617_v54  ;;  %v1222_v54 = vld [vmem:[%s9711_s2 + $0x140] sm:$0xff] }
  0xd9   :  { %4620 = vmatprep.subr.bf16.mxu0 %v4619_v56 }
  0xda   :  { %4610 = vmatpush1.bf16.msra.mxu1 %v4609_v55  ;;  %v1224_v55 = vld [vmem:[%s9711_s2 + $0x150] sm:$0xff] }
  0xdb   :  { %4612 = vmatprep.subr.bf16.mxu1 %v4611_v59  ;;  %v4657_v56 = vpack.c.bf16 %v1224_v55, %v1222_v54  ;;  %v4659_v59 = vpack.c.bf16 %v1229_v58, %v1227_v57 }
  0xdc   :  { %4622 = vmatpush1.bf16.msra.mxu0 %v4621_v0  ;;  %v1233_v0 = vld [vmem:[%s9711_s2 + $0x198] sm:$0xff] }
  0xdd   :  { %1017 = vmatmul.mubr.f32.vlgmr.msra.gmra.mrb[2].mxu1 %v105_v51  ;;  %4624 = vmatprep.subr.bf16.mxu0 %v4623_v4  ;;  %v1223_v51 = vld [vmem:[%s9711_s2 + $0x148] sm:$0xff]  ;;  %v4665_v4 = vpack.c.bf16 %v1232_v3, %v1230_v2 }
  0xde   :  { %4614 = vmatpush1.bf16.msra.mxu1 %v4613_v1  ;;  %1087 = vmatprep.mubr.f32.mxu1 %v5595_v7  ;;  %v4655_v53 = vpack.c.bf16 %v1225_v52, %v1223_v51  ;;  %v4663_v1 = vpack.c.bf16 %v1233_v0, %v1231_v63 }
  0xe0   :  { %4626 = vmatpush1.bf16.msra.mxu0 %v4625_v8  ;;  %v4667_v8 = vpack.c.bf16 %v1237_v6, %v1235_v5 }
  0xe1   :  { %4628 = vmatprep.subr.bf16.mxu0 %v4627_v9  ;;  %v1234_v9 = vld [vmem:[%s9711_s2 + $0x1a0] sm:$0xff] }
  0xe2   :  { %v4669_v11 = vpack.c.bf16 %v1236_v10, %v1234_v9 }
  0xe4   :  { %4630 = vmatpush1.bf16.msra.mxu0 %v4629_v14  ;;  %v4671_v14 = vpack.c.bf16 %v1241_v13, %v1239_v12 }
  0xe5   :  { %3948 = vmatmul.mubr.msk.f32.vlgmr.msra.gmra.mrb[2].mxu1 %vm522_vm0, %v5795_v26  ;;  %4632 = vmatprep.subr.bf16.mxu0 %v4631_v15  ;;  %v1207_v26 = vld [vmem:[%s9711_s2 + $0xc8] sm:$0xff]  ;;  %v1238_v15 = vld [vmem:[%s9711_s2 + $0x1c0] sm:$0xff] }
  0xe6   :  { %v4639_v29 = vpack.c.bf16 %v1209_v28, %v1207_v26  ;;  %v4673_v17 = vpack.c.bf16 %v1240_v16, %v1238_v15  ;;  %v1249_v26 = vld [vmem:[%s9711_s2 + $0x218] sm:$0xff] }
  0xe8   :  { %4634 = vmatpush1.bf16.msra.mxu0 %v4633_v20  ;;  %v4675_v20 = vpack.c.bf16 %v1245_v19, %v1243_v18 }
  0xe9   :  { %4636 = vmatprep.subr.bf16.mxu0 %v4635_v21  ;;  %v1242_v21 = vld [vmem:[%s9711_s2 + $0x1e0] sm:$0xff] }
  0xea   :  { %v4677_v23 = vpack.c.bf16 %v1244_v22, %v1242_v21 }
  0xec   :  { %4638 = vmatpush1.bf16.msra.mxu0 %v4637_v24  ;;  %v1247_v24 = vld [vmem:[%s9711_s2 + $0x208] sm:$0xff] }
  0xed   :  { %4640 = vmatprep.subr.bf16.mxu0 %v4639_v29  ;;  %v4679_v28 = vpack.c.bf16 %v1249_v26, %v1247_v24  ;;  %v502_v29 = vlaneseq }
  0xef   :  { %v7168_v30 = vshrl.u32 %v502_v29, 7 }
  0xf0   :  { %v7038_v25 = vpop.f32.mrb[0].mxu1  ;;  %4642 = vmatpush1.bf16.msra.mxu0 %v4641_v32  ;;  %v7176_v32 = vld [vmem:[%s9712_s9] sm:$0xf] }
  0xf1   :  { %v7040_v27 = vpop.f32.mrb[1].mxu1  ;;  %4644 = vmatprep.subr.bf16.mxu0 %v4643_v35  ;;  %v7171_v31 = vsub.s32 0, %v7168_v30  ;;  %v7179_v33 = vsub.s32 1, %v7168_v30  ;;  %v7199_v48 = vsub.s32 3, %v7168_v30 }
  0xf3   :  { %v505_v34 = vrot.slane %v7176_v32, %v7171_v31  ;;  %v509_v35 = vrot.slane %v7176_v32, %v7179_v33  ;;  %v517_v55 = vrot.slane %v7176_v32, %v7199_v48 }
  0xf4   :  { %4646 = vmatpush1.bf16.msra.mxu0 %v4645_v38 }
  0xf5   :  { %4648 = vmatprep.subr.bf16.mxu0 %v4647_v41 }
  0xf8   :  { %4650 = vmatpush1.bf16.msra.mxu0 %v4649_v44 }
  0xf9   :  { %4652 = vmatprep.subr.bf16.mxu0 %v4651_v47 }
  0xfc   :  { %4654 = vmatpush1.bf16.msra.mxu0 %v4653_v50 }
  0xfd   :  { %4656 = vmatprep.subr.bf16.mxu0 %v4655_v53 }
 0x100   :  { %4658 = vmatpush1.bf16.msra.mxu0 %v4657_v56 }
 0x101   :  { %4660 = vmatprep.subr.bf16.mxu0 %v4659_v59 }
 0x104   :  { %4662 = vmatpush1.bf16.msra.mxu0 %v4661_v62 }
 0x105   :  { %4664 = vmatprep.subr.bf16.mxu0 %v4663_v1 }
 0x108   :  { %4666 = vmatpush1.bf16.msra.mxu0 %v4665_v4 }
 0x109   :  { %4668 = vmatprep.subr.bf16.mxu0 %v4667_v8 }
 0x10c   :  { %4670 = vmatpush1.bf16.msra.mxu0 %v4669_v11 }
 0x10d   :  { %4672 = vmatprep.subr.bf16.mxu0 %v4671_v14 }
 0x110   :  { %4674 = vmatpush1.bf16.msra.mxu0 %v4673_v17 }
 0x111   :  { %4676 = vmatprep.subr.bf16.mxu0 %v4675_v20 }
 0x114   :  { %4678 = vmatpush1.bf16.msra.mxu0 %v4677_v23 }
 0x115   :  { %4680 = vmatprep.subr.bf16.mxu0 %v4679_v28 }
 0x1aa   :  { %v734_v36 = vpop.f32.mrb[0].mxu0 }
 0x1ab   :  { %v5446_v37 = vadd.f32 %v734_v36, %v505_v34  ;;  %v736_v38 = vpop.f32.mrb[1].mxu0 }
 0x1ac   :  { %v5448_v39 = vadd.f32 %v736_v38, %v509_v35 }
 0x1ad   :  { %v7186_v40 = vadd.f32 %v5446_v37, %v7038_v25 }
 0x1ae   :  { %v7189_v41 = vadd.f32 %v5448_v39, %v7040_v27 }
 0x1af   :  { %v1094_v42 = vrot.slane %v7186_v40, 4  ;;  %v1122_v43 = vmul.f32 %v7186_v40, %v7186_v40 }
 0x1b0   :  { %v1100_v44 = vrot.slane %v7189_v41, 4  ;;  %v1123_v45 = vmul.f32 %v7189_v41, %v7189_v41 }
 0x1b1   :  { %v1095_v46 = vadd.f32 %v7186_v40, %v1094_v42  ;;  %v1126_v47 = vrot.slane %v1122_v43, 4 }
 0x1b2   :  { %v1101_v25 = vadd.f32 %v7189_v41, %v1100_v44  ;;  %v1132_v27 = vrot.slane %v1123_v45, 4 }
 0x1b3   :  { %v1096_v49 = vrot.slane %v1095_v46, 2  ;;  %v1127_v50 = vadd.f32 %v1126_v47, %v1122_v43 }
 0x1b4   :  { %v1102_v51 = vrot.slane %v1101_v25, 2  ;;  %v1133_v52 = vadd.f32 %v1132_v27, %v1123_v45  ;;  %v7214_v45 = vsub.s32 2, %v7168_v30 }
 0x1b5   :  { %v1097_v53 = vadd.f32 %v1096_v49, %v1095_v46  ;;  %v1128_v54 = vrot.slane %v1127_v50, 2  ;;  %v1246_v49 = vld [vmem:[%s9711_s2 + $0x200] sm:$0xff] }
 0x1b6   :  { %v1134_v56 = vrot.slane %v1133_v52, 2  ;;  %v1103_v57 = vadd.f32 %v1102_v51, %v1101_v25 }
 0x1b7   :  { %v1129_v58 = vadd.f32 %v1128_v54, %v1127_v50  ;;  %v1098_v60 = vrot.slane %v1097_v53, 1  ;;  %v1248_v50 = vld [vmem:[%s9711_s2 + $0x210] sm:$0xff] }
 0x1b8   :  { %v7204_v59 = vpop.f32.mrb[2].mxu1  ;;  %v1135_v61 = vadd.f32 %v1134_v56, %v1133_v52  ;;  %v1104_v63 = vrot.slane %v1103_v57, 1  ;;  %v513_v52 = vrot.slane %v7176_v32, %v7214_v45  ;;  %v4681_v54 = vpack.c.bf16 %v1248_v50, %v1246_v49  ;;  %v1257_v32 = vld [vmem:[%s9711_s2 + $0x258] sm:$0xff] }
 0x1b9   :  { %v1091_v62 = vpop.f32.mrb[3].mxu1  ;;  %v1130_v0 = vrot.slane %v1129_v58, 1  ;;  %v1099_v2 = vadd.f32 %v1098_v60, %v1097_v53  ;;  %v1255_v60 = vld [vmem:[%s9711_s2 + $0x248] sm:$0xff] }
 0x1ba   :  { %v7206_v1 = vadd.f32 %v1091_v62, %v517_v55  ;;  %v1136_v3 = vrot.slane %v1135_v61, 1  ;;  %v1105_v4 = vadd.f32 %v1104_v63, %v1103_v57  ;;  %v1250_v57 = vld [vmem:[%s9711_s2 + $0x220] sm:$0xff]  ;;  %v4687_v63 = vpack.c.bf16 %v1257_v32, %v1255_v60  ;;  %v1280_v60 = vld [vmem:[%s9711_s2 + $0x310] sm:$0xff]  ;;  %v1283_v32 = vld [vmem:[%s9711_s2 + $0x328] sm:$0xff] }
 0x1bb   :  { %v1131_v5 = vadd.f32 %v1130_v0, %v1129_v58  ;;  %v1118_v9 = vmul.f32 0.125, %v1099_v2  ;;  %v1252_v58 = vld [vmem:[%s9711_s2 + $0x230] sm:$0xff]  ;;  %v1254_v0 = vld [vmem:[%s9711_s2 + $0x240] sm:$0xff] }
 0x1bc   :  { %v1112_v6 = vrot.slane %v7206_v1, 4  ;;  %v1125_v8 = vmul.f32 %v7206_v1, %v7206_v1  ;;  %v1119_v10 = vmul.f32 0.125, %v1105_v4  ;;  %v1137_v11 = vadd.f32 %v1136_v3, %v1135_v61  ;;  %v1256_v2 = vld [vmem:[%s9711_s2 + $0x250] sm:$0xff]  ;;  %v1259_v3 = vld [vmem:[%s9711_s2 + $0x268] sm:$0xff] }
 0x1bd   :  { %v1150_v12 = vmul.f32 0.125, %v1131_v5  ;;  %v1154_v15 = vmul.f32 %v1118_v9, %v1118_v9  ;;  %v1162_v43 = vsub.f32 %v7186_v40, %v1118_v9  ;;  %v1251_v40 = vld [vmem:[%s9711_s2 + $0x228] sm:$0xff]  ;;  %v7244_v61 = vadd.f32 %v7204_v59, %v513_v52  ;;  %v1261_v59 = vld [vmem:[%s9711_s2 + $0x278] sm:$0xff] }
 0x1be   :  { %v1113_v13 = vadd.f32 %v7206_v1, %v1112_v6  ;;  %v1144_v14 = vrot.slane %v1125_v8, 4  ;;  %v1151_v16 = vmul.f32 0.125, %v1137_v11  ;;  %v1155_v17 = vmul.f32 %v1119_v10, %v1119_v10  ;;  %v1279_v52 = vld [vmem:[%s9711_s2 + $0x308] sm:$0xff] }
 0x1bf   :  { %v1158_v20 = vsub.f32 %v1150_v12, %v1154_v15  ;;  %v1163_v46 = vsub.f32 %v7189_v41, %v1119_v10  ;;  %v1253_v41 = vld [vmem:[%s9711_s2 + $0x238] sm:$0xff]  ;;  %v4685_v62 = vpack.c.bf16 %v1252_v58, %v1250_v57  ;;  %v1106_v6 = vrot.slane %v7244_v61, 4  ;;  %v1258_v12 = vld [vmem:[%s9711_s2 + $0x260] sm:$0xff] }
 0x1c0   :  { %v1114_v18 = vrot.slane %v1113_v13, 2  ;;  %v1145_v19 = vadd.f32 %v1144_v14, %v1125_v8  ;;  %v1159_v21 = vsub.f32 %v1151_v16, %v1155_v17  ;;  %v4683_v56 = vpack.c.bf16 %v1253_v41, %v1251_v40  ;;  %v1265_v14 = vld [vmem:[%s9711_s2 + $0x298] sm:$0xff]  ;;  %v1274_v40 = vld [vmem:[%s9711_s2 + $0x2e0] sm:$0xff]  ;;  %v1276_v41 = vld [vmem:[%s9711_s2 + $0x2f0] sm:$0xff] }
 0x1c1   :  { %v1166_v24 = vadd.f32 1e-05, %v1158_v20  ;;  %v1124_v8 = vmul.f32 %v7244_v61, %v7244_v61  ;;  %v4689_v9 = vpack.c.bf16 %v1256_v2, %v1254_v0  ;;  %v4691_v11 = vpack.c.bf16 %v1261_v59, %v1259_v3  ;;  %v1262_v20 = vld [vmem:[%s9711_s2 + $0x280] sm:$0xff] }
 0x1c2   :  { %v1115_v22 = vadd.f32 %v1114_v18, %v1113_v13  ;;  %v1146_v23 = vrot.slane %v1145_v19, 2  ;;  %v1167_v26 = vadd.f32 1e-05, %v1159_v21  ;;  %v1260_v13 = vld [vmem:[%s9711_s2 + $0x270] sm:$0xff]  ;;  %v1107_v16 = vadd.f32 %v7244_v61, %v1106_v6  ;;  %v1278_v58 = vld [vmem:[%s9711_s2 + $0x300] sm:$0xff]  ;;  %v1289_v6 = vld [vmem:[%s9711_s2 + $0x358] sm:$0xff] }
 0x1c3   :  { %5483 = vrsqrt.f32 %v1166_v24  ;;  %v1138_v17 = vrot.slane %v1124_v8, 4  ;;  %v4693_v18 = vpack.c.bf16 %v1260_v13, %v1258_v12  ;;  %v1264_v21 = vld [vmem:[%s9711_s2 + $0x290] sm:$0xff]  ;;  %v4713_v2 = vpack.c.bf16 %v1280_v60, %v1278_v58  ;;  %v1282_v59 = vld [vmem:[%s9711_s2 + $0x320] sm:$0xff]  ;;  %v1509_v60 = vld [vmem:[%s9713_s8 + $0x8] sm:$0xff] }
 0x1c4   :  { %v1147_v28 = vadd.f32 %v1146_v23, %v1145_v19  ;;  %v1116_v29 = vrot.slane %v1115_v22, 1  ;;  %5485 = vrsqrt.f32 %v1167_v26  ;;  %v1269_v23 = vld [vmem:[%s9711_s2 + $0x2b8] sm:$0xff]  ;;  %v1108_v24 = vrot.slane %v1107_v16, 2  ;;  %v1286_v12 = vld [vmem:[%s9711_s2 + $0x340] sm:$0xff]  ;;  %v1288_v13 = vld [vmem:[%s9711_s2 + $0x350] sm:$0xff] }
 0x1c5   :  { %v1139_v26 = vadd.f32 %v1138_v17, %v1124_v8 }
 0x1c6   :  { %v1148_v34 = vrot.slane %v1147_v28, 1  ;;  %v1117_v35 = vadd.f32 %v1116_v29, %v1115_v22  ;;  %v1267_v22 = vld [vmem:[%s9711_s2 + $0x2a8] sm:$0xff] }
 0x1c7   :  { %v4699_v29 = vpack.c.bf16 %v1269_v23, %v1267_v22 }
 0x1c8   :  { %v1149_v36 = vadd.f32 %v1148_v34, %v1147_v28  ;;  %v1121_v37 = vmul.f32 0.125, %v1117_v35  ;;  %v4697_v28 = vpack.c.bf16 %v1264_v21, %v1262_v20  ;;  %v1266_v34 = vld [vmem:[%s9711_s2 + $0x2a0] sm:$0xff]  ;;  %v1268_v35 = vld [vmem:[%s9711_s2 + $0x2b0] sm:$0xff]  ;;  %v1295_v20 = vld [vmem:[%s9711_s2 + $0x388] sm:$0xff] }
 0x1c9   :  { %v1297_v21 = vld [vmem:[%s9711_s2 + $0x398] sm:$0xff] }
 0x1ca   :  { %v1153_v38 = vmul.f32 0.125, %v1149_v36  ;;  %v1157_v39 = vmul.f32 %v1121_v37, %v1121_v37  ;;  %v1165_v4 = vsub.f32 %v7206_v1, %v1121_v37  ;;  %v1263_v1 = vld [vmem:[%s9711_s2 + $0x288] sm:$0xff]  ;;  %v1273_v37 = vld [vmem:[%s9711_s2 + $0x2d8] sm:$0xff] }
 0x1cb   :  { %v4695_v19 = vpack.c.bf16 %v1265_v14, %v1263_v1  ;;  %v1271_v36 = vld [vmem:[%s9711_s2 + $0x2c8] sm:$0xff]  ;;  %v1293_v14 = vld [vmem:[%s9711_s2 + $0x378] sm:$0xff] }
 0x1cc   :  { %v1161_v42 = vsub.f32 %v1153_v38, %v1157_v39  ;;  %v1109_v38 = vadd.f32 %v1108_v24, %v1107_v16  ;;  %v1140_v39 = vrot.slane %v1139_v26, 2  ;;  %v1291_v1 = vld [vmem:[%s9711_s2 + $0x368] sm:$0xff]  ;;  %v4721_v16 = vpack.c.bf16 %v1288_v13, %v1286_v12  ;;  %v1531_v12 = vld [vmem:[%s9713_s8 + $0xb8] sm:$0xff] }
 0x1cd   :  { %v5484_v44 = vpop.eup %5483  ;;  %v4723_v17 = vpack.c.bf16 %v1293_v14, %v1291_v1  ;;  %v4727_v24 = vpack.c.bf16 %v1297_v21, %v1295_v20  ;;  %v1514_v1 = vld [vmem:[%s9713_s8 + $0x30] sm:$0xff]  ;;  %v1515_v14 = vld [vmem:[%s9713_s8 + $0x38] sm:$0xff]  ;;  %v1517_v20 = vld [vmem:[%s9713_s8 + $0x48] sm:$0xff] }
 0x1ce   :  { %v1169_v47 = vadd.f32 1e-05, %v1161_v42  ;;  %v5486_v25 = vpop.eup %5485  ;;  %v1174_v27 = vmul.f32 %v5484_v44, %v1162_v43  ;;  %v4701_v42 = vpack.c.bf16 %v1268_v35, %v1266_v34  ;;  %v4703_v43 = vpack.c.bf16 %v1273_v37, %v1271_v36  ;;  %v1270_v44 = vld [vmem:[%s9711_s2 + $0x2c0] sm:$0xff]  ;;  %v1301_v34 = vld [vmem:[%s9711_s2 + $0x3b8] sm:$0xff]  ;;  %v1534_v21 = vld [vmem:[%s9713_s8 + $0xd0] sm:$0xff] }
 0x1cf   :  { %v1175_v51 = vmul.f32 %v5486_v25, %v1163_v46  ;;  %v1272_v46 = vld [vmem:[%s9711_s2 + $0x2d0] sm:$0xff]  ;;  %v1277_v25 = vld [vmem:[%s9711_s2 + $0x2f8] sm:$0xff]  ;;  %v1141_v49 = vadd.f32 %v1140_v39, %v1139_v26  ;;  %v1294_v26 = vld [vmem:[%s9711_s2 + $0x380] sm:$0xff] }
 0x1d0   :  { %5487 = vrsqrt.f32 %v1169_v47  ;;  %v1178_v55 = vmax.f32 %v1174_v27, 0.0  ;;  %v1275_v47 = vld [vmem:[%s9711_s2 + $0x2e8] sm:$0xff]  ;;  %v1110_v27 = vrot.slane %v1109_v38, 1  ;;  %v4705_v50 = vpack.c.bf16 %v1272_v46, %v1270_v44  ;;  %v1298_v37 = vld [vmem:[%s9711_s2 + $0x3a0] sm:$0xff] }
 0x1d1   :  { %v1179_v53 = vmax.f32 %v1175_v51, 0.0  ;;  %v4707_v51 = vpack.c.bf16 %v1277_v25, %v1275_v47  ;;  %v1303_v39 = vld [vmem:[%s9711_s2 + $0x3c8] sm:$0xff]  ;;  %v1302_v46 = vld [vmem:[%s9711_s2 + $0x3c0] sm:$0xff]  ;;  %v1304_v47 = vld [vmem:[%s9711_s2 + $0x3d0] sm:$0xff] }
 0x1d2   :  { %v1307_v25 = vld [vmem:[%s9711_s2 + $0x3e8] sm:$0xff] }
 0x1d3   :  { %1386 = vmatprep.mubr.f32.mxu0 %v1179_v53  ;;  %v1281_v53 = vld [vmem:[%s9711_s2 + $0x318] sm:$0xff] }
 0x1d4   :  { %1387 = vmatmul.mubr.f32.vlgmr.msra.gmra.mrb[2].mxu0 %v1178_v55  ;;  %v1142_v55 = vrot.slane %v1141_v49, 1  ;;  %v4711_v57 = vpack.c.bf16 %v1281_v53, %v1279_v52 }
 0x1d5   :  { %4682 = vmatpush1.bf16.msra.mxu0 %v4681_v54  ;;  %v1111_v54 = vadd.f32 %v1110_v27, %v1109_v38  ;;  %v1300_v38 = vld [vmem:[%s9711_s2 + $0x3b0] sm:$0xff]  ;;  %v1309_v27 = vld [vmem:[%s9711_s2 + $0x3f8] sm:$0xff] }
 0x1d6   :  { %4684 = vmatprep.subr.bf16.mxu0 %v4683_v56  ;;  %v4709_v56 = vpack.c.bf16 %v1276_v41, %v1274_v40  ;;  %v1143_v0 = vadd.f32 %v1142_v55, %v1141_v49  ;;  %v4737_v49 = vpack.c.bf16 %v1304_v47, %v1302_v46  ;;  %v1308_v40 = vld [vmem:[%s9711_s2 + $0x3f0] sm:$0xff]  ;;  %v1523_v47 = vld [vmem:[%s9713_s8 + $0x78] sm:$0xff] }
 0x1d7   :  { %v1522_v46 = vld [vmem:[%s9713_s8 + $0x70] sm:$0xff] }
 0x1d8   :  { %v1152_v8 = vmul.f32 0.125, %v1143_v0 }
 0x1d9   :  { %4686 = vmatpush1.bf16.msra.mxu0 %v4685_v62  ;;  %v1285_v62 = vld [vmem:[%s9711_s2 + $0x338] sm:$0xff] }
 0x1da   :  { %v5488_v5 = vpop.eup %5487  ;;  %4688 = vmatprep.subr.bf16.mxu0 %v4687_v63  ;;  %v7335_v63 = vmul.f32 0.125, %v1111_v54  ;;  %v4715_v3 = vpack.c.bf16 %v1285_v62, %v1283_v32  ;;  %v1526_v62 = vld [vmem:[%s9713_s8 + $0x90] sm:$0xff] }
 0x1db   :  { %v1177_v10 = vmul.f32 %v5488_v5, %v1165_v4  ;;  %v1284_v4 = vld [vmem:[%s9711_s2 + $0x330] sm:$0xff]  ;;  %v1287_v5 = vld [vmem:[%s9711_s2 + $0x348] sm:$0xff] }
 0x1dc   :  { %v1164_v52 = vsub.f32 %v7244_v61, %v7335_v63  ;;  %v1508_v61 = vld [vmem:[%s9713_s8] sm:$0xff] }
 0x1dd   :  { %v1181_v15 = vmax.f32 %v1177_v10, 0.0  ;;  %4690 = vmatpush1.bf16.msra.mxu0 %v4689_v9  ;;  %v1156_v9 = vmul.f32 %v7335_v63, %v7335_v63  ;;  %v4717_v10 = vpack.c.bf16 %v1284_v4, %v1282_v59  ;;  %v4745_v32 = vpack.c.bf16 %v1509_v60, %v1508_v61  ;;  %v1527_v63 = vld [vmem:[%s9713_s8 + $0x98] sm:$0xff]  ;;  %v1528_v4 = vld [vmem:[%s9713_s8 + $0xa0] sm:$0xff] }
 0x1de   :  { %4692 = vmatprep.subr.bf16.mxu0 %v4691_v11  ;;  %v4719_v11 = vpack.c.bf16 %v1289_v6, %v1287_v5  ;;  %v4747_v0 = vpack.c.bf16 %v1527_v63, %v1526_v62  ;;  %v1529_v5 = vld [vmem:[%s9713_s8 + $0xa8] sm:$0xff] }
 0x1df   :  { %1457 = vmatprep.mubr.f32.mxu0 %v1181_v15  ;;  %v1160_v15 = vsub.f32 %v1152_v8, %v1156_v9  ;;  %v4751_v6 = vpack.c.bf16 %v1529_v5, %v1528_v4  ;;  %v1512_v8 = vld [vmem:[%s9713_s8 + $0x20] sm:$0xff]  ;;  %v1513_v9 = vld [vmem:[%s9713_s8 + $0x28] sm:$0xff] }
 0x1e1   :  { %4694 = vmatpush1.bf16.msra.mxu0 %v4693_v18  ;;  %v1290_v18 = vld [vmem:[%s9711_s2 + $0x360] sm:$0xff]  ;;  %v1168_v22 = vadd.f32 1e-05, %v1160_v15  ;;  %v4757_v15 = vpack.c.bf16 %v1515_v14, %v1514_v1 }
 0x1e2   :  { %4696 = vmatprep.subr.bf16.mxu0 %v4695_v19  ;;  %v1292_v19 = vld [vmem:[%s9711_s2 + $0x370] sm:$0xff] }
 0x1e3   :  { %v4725_v23 = vpack.c.bf16 %v1292_v19, %v1290_v18  ;;  %5489 = vrsqrt.f32 %v1168_v22  ;;  %v1516_v18 = vld [vmem:[%s9713_s8 + $0x40] sm:$0xff]  ;;  %v1535_v22 = vld [vmem:[%s9713_s8 + $0xd8] sm:$0xff] }
 0x1e5   :  { %4698 = vmatpush1.bf16.msra.mxu0 %v4697_v28  ;;  %v1296_v28 = vld [vmem:[%s9711_s2 + $0x390] sm:$0xff] }
 0x1e6   :  { %4700 = vmatprep.subr.bf16.mxu0 %v4699_v29  ;;  %v1299_v29 = vld [vmem:[%s9711_s2 + $0x3a8] sm:$0xff]  ;;  %v4729_v35 = vpack.c.bf16 %v1296_v28, %v1294_v26  ;;  %v1518_v26 = vld [vmem:[%s9713_s8 + $0x50] sm:$0xff]  ;;  %v1519_v28 = vld [vmem:[%s9713_s8 + $0x58] sm:$0xff] }
 0x1e7   :  { %v4731_v36 = vpack.c.bf16 %v1301_v34, %v1299_v29  ;;  %v1536_v29 = vld [vmem:[%s9713_s8 + $0xe0] sm:$0xff]  ;;  %v1537_v34 = vld [vmem:[%s9713_s8 + $0xe8] sm:$0xff] }
 0x1e9   :  { %4702 = vmatpush1.bf16.msra.mxu0 %v4701_v42  ;;  %v1305_v42 = vld [vmem:[%s9711_s2 + $0x3d8] sm:$0xff] }
 0x1ea   :  { %4704 = vmatprep.subr.bf16.mxu0 %v4703_v43  ;;  %v4733_v43 = vpack.c.bf16 %v1300_v38, %v1298_v37  ;;  %v4735_v44 = vpack.c.bf16 %v1305_v42, %v1303_v39  ;;  %v1520_v37 = vld [vmem:[%s9713_s8 + $0x60] sm:$0xff]  ;;  %v1521_v38 = vld [vmem:[%s9713_s8 + $0x68] sm:$0xff]  ;;  %v1538_v39 = vld [vmem:[%s9713_s8 + $0xf0] sm:$0xff] }
 0x1eb   :  { %v1539_v42 = vld [vmem:[%s9713_s8 + $0xf8] sm:$0xff] }
 0x1ed   :  { %4706 = vmatpush1.bf16.msra.mxu0 %v4705_v50  ;;  %v4739_v50 = vpack.c.bf16 %v1309_v27, %v1307_v25  ;;  %v5490_v41 = vpop.eup %5489  ;;  %v4773_v25 = vpack.c.bf16 %v1523_v47, %v1522_v46  ;;  %v1310_v27 = vld [vmem:[%s9714_s6] sm:$0x3]  ;;  %v1641_v46 = vld [vmem:[%s9715_s3 + $0x10] sm:$0xff]  ;;  %v1642_v47 = vld [vmem:[%s9715_s3 + $0x18] sm:$0xff] }
 0x1ee   :  { %4708 = vmatprep.subr.bf16.mxu0 %v4707_v51  ;;  %v1306_v51 = vld [vmem:[%s9711_s2 + $0x3e0] sm:$0xff]  ;;  %v1176_v54 = vmul.f32 %v5490_v41, %v1164_v52 }
 0x1ef   :  { %v4741_v53 = vpack.c.bf16 %v1308_v40, %v1306_v51 }
 0x1f0   :  { %v1180_v55 = vmax.f32 %v1176_v54, 0.0 }
 0x1f1   :  { %4710 = vmatpush1.bf16.msra.mxu0 %v4709_v56  ;;  %v1524_v56 = vld [vmem:[%s9713_s8 + $0x80] sm:$0xff] }
 0x1f2   :  { %4712 = vmatprep.subr.bf16.mxu0 %v4711_v57  ;;  %v1525_v57 = vld [vmem:[%s9713_s8 + $0x88] sm:$0xff] }
 0x1f3   :  { %v4743_v58 = vpack.c.bf16 %v1525_v57, %v1524_v56 }
 0x1f5   :  { %4714 = vmatpush1.bf16.msra.mxu0 %v4713_v2  ;;  %4744 = vmatprep.subr.bf16.mxu1 %v4743_v58  ;;  %v1510_v2 = vld [vmem:[%s9713_s8 + $0x10] sm:$0xff] }
 0x1f6   :  { %4716 = vmatprep.subr.bf16.mxu0 %v4715_v3  ;;  %4746 = vmatpush3.bf16.msra.mxu1 %v4745_v32  ;;  %v1511_v3 = vld [vmem:[%s9713_s8 + $0x18] sm:$0xff] }
 0x1f7   :  { %v4749_v59 = vpack.c.bf16 %v1511_v3, %v1510_v2  ;;  %4748 = vmatprep.subr.bf16.mxu1 %v4747_v0 }
 0x1f9   :  { %4718 = vmatpush1.bf16.msra.mxu0 %v4717_v10  ;;  %v4753_v10 = vpack.c.bf16 %v1513_v9, %v1512_v8 }
 0x1fa   :  { %4720 = vmatprep.subr.bf16.mxu0 %v4719_v11  ;;  %4750 = vmatpush3.bf16.msra.mxu1 %v4749_v59  ;;  %v1530_v11 = vld [vmem:[%s9713_s8 + $0xb0] sm:$0xff] }
 0x1fb   :  { %4752 = vmatprep.subr.bf16.mxu1 %v4751_v6  ;;  %v4755_v13 = vpack.c.bf16 %v1531_v12, %v1530_v11 }
 0x1fd   :  { %4722 = vmatpush1.bf16.msra.mxu0 %v4721_v16  ;;  %v1532_v16 = vld [vmem:[%s9713_s8 + $0xc0] sm:$0xff] }
 0x1fe   :  { %4724 = vmatprep.subr.bf16.mxu0 %v4723_v17  ;;  %4754 = vmatpush3.bf16.msra.mxu1 %v4753_v10  ;;  %v1533_v17 = vld [vmem:[%s9713_s8 + $0xc8] sm:$0xff] }
 0x1ff   :  { %4756 = vmatprep.subr.bf16.mxu1 %v4755_v13  ;;  %v4759_v19 = vpack.c.bf16 %v1533_v17, %v1532_v16 }
 0x201   :  { %4726 = vmatpush1.bf16.msra.mxu0 %v4725_v23  ;;  %v4761_v23 = vpack.c.bf16 %v1517_v20, %v1516_v18 }
 0x202   :  { %4728 = vmatprep.subr.bf16.mxu0 %v4727_v24  ;;  %4758 = vmatpush3.bf16.msra.mxu1 %v4757_v15  ;;  %v4763_v24 = vpack.c.bf16 %v1535_v22, %v1534_v21 }
 0x203   :  { %4760 = vmatprep.subr.bf16.mxu1 %v4759_v19 }
 0x205   :  { %4730 = vmatpush1.bf16.msra.mxu0 %v4729_v35  ;;  %v4765_v35 = vpack.c.bf16 %v1519_v28, %v1518_v26 }
 0x206   :  { %4732 = vmatprep.subr.bf16.mxu0 %v4731_v36  ;;  %4762 = vmatpush3.bf16.msra.mxu1 %v4761_v23  ;;  %v4767_v36 = vpack.c.bf16 %v1537_v34, %v1536_v29 }
 0x207   :  { %4764 = vmatprep.subr.bf16.mxu1 %v4763_v24 }
 0x209   :  { %4734 = vmatpush1.bf16.msra.mxu0 %v4733_v43  ;;  %v4769_v43 = vpack.c.bf16 %v1521_v38, %v1520_v37 }
 0x20a   :  { %4736 = vmatprep.subr.bf16.mxu0 %v4735_v44  ;;  %4766 = vmatpush3.bf16.msra.mxu1 %v4765_v35  ;;  %v4771_v44 = vpack.c.bf16 %v1539_v42, %v1538_v39  ;;  %v1639_v39 = vld [vmem:[%s9715_s3] sm:$0xff]  ;;  %v1640_v42 = vld [vmem:[%s9715_s3 + $0x8] sm:$0xff] }
 0x20b   :  { %4768 = vmatprep.subr.bf16.mxu1 %v4767_v36 }
 0x20d   :  { %4738 = vmatpush1.bf16.msra.mxu0 %v4737_v49  ;;  %v1315_v49 = vrot.slane %v1310_v27, %v7171_v31 }
 0x20e   :  { %4740 = vmatprep.subr.bf16.mxu0 %v4739_v50  ;;  %4770 = vmatpush3.bf16.msra.mxu1 %v4769_v43  ;;  %v1319_v50 = vrot.slane %v1310_v27, %v7179_v33  ;;  %v4776_v43 = vpack.c.bf16 %v1640_v42, %v1639_v39  ;;  %v1643_v27 = vld [vmem:[%s9715_s3 + $0x20] sm:$0xff]  ;;  %v1762_v42 = vld [vmem:[%s9717_s28 + $0x28] sm:$0xff] }
 0x20f   :  { %4772 = vmatprep.subr.bf16.mxu1 %v4771_v44  ;;  %v5596_v44 = vmov 0.0|0.0   ;;  %v1761_v39 = vld [vmem:[%s9717_s28 + $0x20] sm:$0xff] }
 0x211   :  { %4742 = vmatpush1.bf16.msra.mxu0 %v4741_v53 }
 0x212   :  { %4774 = vmatpush3.bf16.msra.mxu1 %v4773_v25  ;;  %v4779_v25 = vpack.c.bf16 %v1642_v47, %v1641_v46  ;;  %v1763_v46 = vld [vmem:[%s9717_s28 + $0x30] sm:$0xff]  ;;  %v1764_v47 = vld [vmem:[%s9717_s28 + $0x38] sm:$0xff] }
 0x213   :  { %4775 = vmatprep.subr.bf16.mxu1 %v5596_v44 }
 0x214   :  { %1458 = vmatmul.mubr.f32.vlgmr.msra.gmra.mrb[2].mxu0 %v1180_v55 }
 0x2e7   :  { %v1459_v51 = vpop.f32.mrb[2].mxu0 }
 0x2e8   :  { %v5452_v40 = vadd.f32 %v1459_v51, %v1315_v49  ;;  %v1461_v41 = vpop.f32.mrb[3].mxu0  ;;  %v1644_v49 = vld [vmem:[%s9715_s3 + $0x28] sm:$0xff]  ;;  %v1645_v51 = vld [vmem:[%s9715_s3 + $0x30] sm:$0xff] }
 0x2e9   :  { %v5453_v52 = vadd.f32 %v1461_v41, %v1319_v50  ;;  %v4782_v50 = vpack.c.bf16 %v1644_v49, %v1643_v27  ;;  %v3950_v27 = vld [vmem:[%s9718_s29] ss:$0 sm:$0xff] }
 0x2ea   :  { %v1464_v53 = vrot.slane %v5452_v40, 4  ;;  %v1478_v54 = vmul.f32 %v5452_v40, %v5452_v40 }
 0x2eb   :  { %v1470_v55 = vrot.slane %v5453_v52, 4  ;;  %v1479_v56 = vmul.f32 %v5453_v52, %v5453_v52 }
 0x2ec   :  { %v1465_v57 = vadd.f32 %v5452_v40, %v1464_v53  ;;  %v1480_v58 = vrot.slane %v1478_v54, 4  ;;  %v1648_v53 = vld [vmem:[%s9715_s3 + $0x48] sm:$0xff] }
 0x2ed   :  { %v1471_v61 = vadd.f32 %v5453_v52, %v1470_v55  ;;  %v1486_v60 = vrot.slane %v1479_v56, 4  ;;  %v1649_v55 = vld [vmem:[%s9715_s3 + $0x50] sm:$0xff] }
 0x2ee   :  { %v1466_v32 = vrot.slane %v1465_v57, 2  ;;  %v1481_v62 = vadd.f32 %v1480_v58, %v1478_v54  ;;  %v1651_v58 = vld [vmem:[%s9715_s3 + $0x60] sm:$0xff] }
 0x2ef   :  { %v1472_v63 = vrot.slane %v1471_v61, 2  ;;  %v1487_v0 = vadd.f32 %v1486_v60, %v1479_v56  ;;  %v1650_v56 = vld [vmem:[%s9715_s3 + $0x58] sm:$0xff] }
 0x2f0   :  { %v1467_v2 = vadd.f32 %v1466_v32, %v1465_v57  ;;  %v1482_v3 = vrot.slane %v1481_v62, 2  ;;  %v4791_v57 = vpack.c.bf16 %v1650_v56, %v1649_v55  ;;  %v1653_v32 = vld [vmem:[%s9715_s3 + $0x70] sm:$0xff] }
 0x2f1   :  { %v1473_v59 = vadd.f32 %v1472_v63, %v1471_v61  ;;  %v1488_v4 = vrot.slane %v1487_v0, 2  ;;  %v1652_v61 = vld [vmem:[%s9715_s3 + $0x68] sm:$0xff] }
 0x2f2   :  { %v1468_v5 = vrot.slane %v1467_v2, 1  ;;  %v1483_v6 = vadd.f32 %v1482_v3, %v1481_v62  ;;  %v4794_v60 = vpack.c.bf16 %v1652_v61, %v1651_v58  ;;  %v1654_v62 = vld [vmem:[%s9715_s3 + $0x78] sm:$0xff] }
 0x2f3   :  { %v1489_v8 = vadd.f32 %v1488_v4, %v1487_v0  ;;  %v1474_v9 = vrot.slane %v1473_v59, 1  ;;  %v4797_v63 = vpack.c.bf16 %v1654_v62, %v1653_v32 }
 0x2f4   :  { %v1469_v10 = vadd.f32 %v1468_v5, %v1467_v2  ;;  %v1484_v11 = vrot.slane %v1483_v6, 1  ;;  %v3949_v2 = vld [vmem:[%s9716_s30] ss:$0 sm:$0xff] }
 0x2f5   :  { %v1490_v12 = vrot.slane %v1489_v8, 1  ;;  %v1475_v13 = vadd.f32 %v1474_v9, %v1473_v59 }
 0x2f6   :  { %v1476_v1 = vmul.f32 0.125, %v1469_v10  ;;  %v1485_v14 = vadd.f32 %v1484_v11, %v1483_v6 }
 0x2f7   :  { %v1491_v15 = vadd.f32 %v1490_v12, %v1489_v8  ;;  %v1477_v16 = vmul.f32 0.125, %v1475_v13 }
 0x2f8   :  { %v1492_v17 = vmul.f32 0.125, %v1485_v14  ;;  %v1494_v18 = vmul.f32 %v1476_v1, %v1476_v1  ;;  %v1498_v26 = vsub.f32 %v5452_v40, %v1476_v1  ;;  %v1646_v40 = vld [vmem:[%s9715_s3 + $0x38] sm:$0xff] }
 0x2f9   :  { %v1493_v19 = vmul.f32 0.125, %v1491_v15  ;;  %v1495_v20 = vmul.f32 %v1477_v16, %v1477_v16  ;;  %v1499_v29 = vsub.f32 %v5453_v52, %v1477_v16  ;;  %v4785_v41 = vpack.c.bf16 %v1646_v40, %v1645_v51  ;;  %v1647_v52 = vld [vmem:[%s9715_s3 + $0x40] sm:$0xff]  ;;  %s9719_s3 = sld [smem:[#allocation19_spill]] }
 0x2fa   :  { %v1496_v21 = vsub.f32 %v1492_v17, %v1494_v18  ;;  %v4788_v54 = vpack.c.bf16 %v1648_v53, %v1647_v52 }
 0x2fb   :  { %v1497_v22 = vsub.f32 %v1493_v19, %v1495_v20 }
 0x2fc   :  { %v1500_v23 = vadd.f32 1e-05, %v1496_v21 }
 0x2fd   :  { %v1501_v24 = vadd.f32 1e-05, %v1497_v22 }
 0x2fe   :  { %5491 = vrsqrt.f32 %v1500_v23 }
 0x2ff   :  { %5493 = vrsqrt.f32 %v1501_v24 }
 0x308   :  { %v5492_v28 = vpop.eup %5491 }
 0x309   :  { %v5494_v34 = vpop.eup %5493  ;;  %v1504_v35 = vmul.f32 %v5492_v28, %v1498_v26 }
 0x30a   :  { %v1505_v36 = vmul.f32 %v5494_v34, %v1499_v29  ;;  %v1757_v29 = vld [vmem:[%s9717_s28] sm:$0xff]  ;;  %v1758_v34 = vld [vmem:[%s9717_s28 + $0x8] sm:$0xff] }
 0x30b   :  { %v1506_v38 = vmax.f32 %v1504_v35, 0.0  ;;  %v4800_v35 = vpack.c.bf16 %v1758_v34, %v1757_v29 }
 0x30c   :  { %v1507_v37 = vmax.f32 %v1505_v36, 0.0  ;;  %v1759_v36 = vld [vmem:[%s9717_s28 + $0x10] sm:$0xff] }
 0x30e   :  { %1611 = vmatprep.mubr.f32.mxu1 %v1507_v37  ;;  %v1760_v37 = vld [vmem:[%s9717_s28 + $0x18] sm:$0xff] }
 0x30f   :  { %1612 = vmatmul.mubr.f32.vlgmr.msra.gmra.mrb[4].mxu1 %v1506_v38  ;;  %v4803_v38 = vpack.c.bf16 %v1760_v37, %v1759_v36 }
 0x310   :  { %4777 = vmatpush3.bf16.msra.mxu1 %v4776_v43  ;;  %4153 = vmatprep.mubr.msk.f32.mxu1 %vm5597_vm1, %v5595_v7  ;;  %v4806_v43 = vpack.c.bf16 %v1762_v42, %v1761_v39 }
 0x311   :  { %4778 = vmatprep.subr.bf16.mxu1 %v5596_v44 }
 0x314   :  { %4780 = vmatpush3.bf16.msra.mxu1 %v4779_v25  ;;  %v4809_v25 = vpack.c.bf16 %v1764_v47, %v1763_v46 }
 0x315   :  { %4781 = vmatprep.subr.bf16.mxu1 %v5596_v44 }
 0x318   :  { %4783 = vmatpush3.bf16.msra.mxu1 %v4782_v50 }
 0x319   :  { %4784 = vmatprep.subr.bf16.mxu1 %v5596_v44 }
 0x31c   :  { %4786 = vmatpush3.bf16.msra.mxu1 %v4785_v41 }
 0x31d   :  { %4787 = vmatprep.subr.bf16.mxu1 %v5596_v44 }
 0x320   :  { %4789 = vmatpush3.bf16.msra.mxu1 %v4788_v54 }
 0x321   :  { %4790 = vmatprep.subr.bf16.mxu1 %v5596_v44 }
 0x324   :  { %4792 = vmatpush3.bf16.msra.mxu1 %v4791_v57 }
 0x325   :  { %4793 = vmatprep.subr.bf16.mxu1 %v5596_v44 }
 0x328   :  { %4795 = vmatpush3.bf16.msra.mxu1 %v4794_v60 }
 0x329   :  { %4796 = vmatprep.subr.bf16.mxu1 %v5596_v44 }
 0x32c   :  { %4798 = vmatpush3.bf16.msra.mxu1 %v4797_v63 }
 0x32d   :  { %4799 = vmatprep.subr.bf16.mxu1 %v5596_v44 }
 0x3e2   :  { %v4000_v0 = vpop.f32.mrb[4].mxu1 }
 0x3e3   :  { %v4001_v3 = vpop.f32.mrb[5].mxu1 }
 0x3e4   :  { %v4002_v59 = vadd.f32 %v4001_v3, %v4000_v0 }
 0x3e6   :  { %v1614_v4 = vadd.f32 %v4002_v59, %v3949_v2 }
 0x3e8   :  { %v1617_v5 = vrot.slane %v1614_v4, 4  ;;  %v1624_v6 = vmul.f32 %v1614_v4, %v1614_v4 }
 0x3ea   :  { %v1618_v8 = vadd.f32 %v1617_v5, %v1614_v4  ;;  %v1625_v9 = vrot.slane %v1624_v6, 4 }
 0x3ec   :  { %v1619_v10 = vrot.slane %v1618_v8, 2  ;;  %v1626_v11 = vadd.f32 %v1625_v9, %v1624_v6 }
 0x3ee   :  { %v1620_v12 = vadd.f32 %v1619_v10, %v1618_v8  ;;  %v1627_v13 = vrot.slane %v1626_v11, 2 }
 0x3f0   :  { %v1628_v1 = vadd.f32 %v1627_v13, %v1626_v11  ;;  %v1621_v14 = vrot.slane %v1620_v12, 1  ;;  %v1870_v11 = vld [vmem:[%s9673_s12] sm:$0xff] }
 0x3f2   :  { %v1629_v15 = vrot.slane %v1628_v1, 1  ;;  %v1622_v16 = vadd.f32 %v1621_v14, %v1620_v12  ;;  %v1871_v12 = vld [vmem:[%s9673_s12 + $0x8] sm:$0xff]  ;;  %v1873_v14 = vld [vmem:[%s9673_s12 + $0x18] sm:$0xff] }
 0x3f3   :  { %v4812_v13 = vpack.c.bf16 %v1871_v12, %v1870_v11 }
 0x3f4   :  { %v1630_v17 = vadd.f32 %v1629_v15, %v1628_v1  ;;  %v1623_v18 = vmul.f32 0.125, %v1622_v16  ;;  %v1872_v1 = vld [vmem:[%s9673_s12 + $0x10] sm:$0xff]  ;;  %v3951_v16 = vld [vmem:[%s9719_s3] ss:$0 sm:$0xff] }
 0x3f5   :  { %v4815_v15 = vpack.c.bf16 %v1873_v14, %v1872_v1 }
 0x3f6   :  { %v1631_v19 = vmul.f32 0.125, %v1630_v17  ;;  %v1632_v20 = vmul.f32 %v1623_v18, %v1623_v18  ;;  %v1634_v23 = vsub.f32 %v1614_v4, %v1623_v18 }
 0x3f8   :  { %v1633_v21 = vsub.f32 %v1631_v19, %v1632_v20 }
 0x3fa   :  { %v1635_v22 = vadd.f32 1e-05, %v1633_v21 }
 0x3fc   :  { %5495 = vrsqrt.f32 %v1635_v22 }
 0x406   :  { %v5496_v24 = vpop.eup %5495 }
 0x407   :  { %v1637_v26 = vmul.f32 %v5496_v24, %v1634_v23 }
 0x409   :  { %v1638_v28 = vmax.f32 %v1637_v26, 0.0 }
 0x40b   :  { %4154 = vmatmul.mubr.f32.vlgmr.msra.gmra.mrb[6].mxu1 %v1638_v28 }
 0x40c   :  { %4172 = vmatprep.mubr.msk.f32.mxu1 %vm5597_vm1, %v5595_v7  ;;  %4801 = vmatpush3.bf16.msra.mxu1 %v4800_v35 }
 0x40d   :  { %4802 = vmatprep.subr.bf16.mxu1 %v5596_v44 }
 0x410   :  { %4804 = vmatpush3.bf16.msra.mxu1 %v4803_v38 }
 0x411   :  { %4805 = vmatprep.subr.bf16.mxu1 %v5596_v44 }
 0x414   :  { %4807 = vmatpush3.bf16.msra.mxu1 %v4806_v43 }
 0x415   :  { %4808 = vmatprep.subr.bf16.mxu1 %v5596_v44 }
 0x418   :  { %4810 = vmatpush3.bf16.msra.mxu1 %v4809_v25 }
 0x419   :  { %4811 = vmatprep.subr.bf16.mxu1 %v5596_v44 }
 0x4de   :  { %v1728_v49 = vpop.f32.mrb[6].mxu1 }
 0x4df   :  { %v1729_v50 = vadd.f32 %v3950_v27, %v1728_v49  ;;  %v4155_v51 = vpop.f32.mrb[7].mxu1 }
 0x4e1   :  { %v1733_v40 = vsel %vm1732_vm2, %v1729_v50, 0.0  ;;  %v1741_v41 = vmul.f32 %v1729_v50, %v1729_v50 }
 0x4e2   :  { %v1734_v52 = vrot.slane %v1733_v40, 4 }
 0x4e3   :  { %v1742_v53 = vsel %vm1732_vm2, %v1741_v41, 0.0  ;;  %v1956_v41 = vld [vmem:[%s9675_s14] sm:$0xff] }
 0x4e4   :  { %v1735_v54 = vadd.f32 %v1734_v52, %v1733_v40  ;;  %v1743_v55 = vrot.slane %v1742_v53, 4  ;;  %v1957_v52 = vld [vmem:[%s9675_s14 + $0x8] sm:$0xff] }
 0x4e6   :  { %v1736_v56 = vrot.slane %v1735_v54, 2  ;;  %v1744_v57 = vadd.f32 %v1743_v55, %v1742_v53  ;;  %v4818_v53 = vpack.c.bf16 %v1957_v52, %v1956_v41 }
 0x4e8   :  { %v1737_v58 = vadd.f32 %v1736_v56, %v1735_v54  ;;  %v1745_v61 = vrot.slane %v1744_v57, 2  ;;  %v3953_v54 = vld [vmem:[%s9674_s13] ss:$0 sm:$0xff] }
 0x4ea   :  { %v1738_v60 = vrot.slane %v1737_v58, 1  ;;  %v1746_v32 = vadd.f32 %v1745_v61, %v1744_v57  ;;  %v2062_v61 = vld [vmem:[%s9677_s16] sm:$0xff] }
 0x4ec   :  { %v1739_v62 = vadd.f32 %v1738_v60, %v1737_v58  ;;  %v1747_v63 = vrot.slane %v1746_v32, 1  ;;  %v2063_v60 = vld [vmem:[%s9677_s16 + $0x8] sm:$0xff] }
 0x4ee   :  { %v1740_v0 = vmul.f32 0.125, %v1739_v62  ;;  %v1748_v2 = vadd.f32 %v1747_v63, %v1746_v32  ;;  %v4821_v32 = vpack.c.bf16 %v2063_v60, %v2062_v61  ;;  %v2064_v62 = vld [vmem:[%s9677_s16 + $0x10] sm:$0xff]  ;;  %v2065_v63 = vld [vmem:[%s9677_s16 + $0x18] sm:$0xff] }
 0x4f0   :  { %v1749_v3 = vmul.f32 0.125, %v1748_v2  ;;  %v1750_v59 = vmul.f32 %v1740_v0, %v1740_v0  ;;  %v1752_v6 = vsub.f32 %v1729_v50, %v1740_v0  ;;  %v4824_v0 = vpack.c.bf16 %v2065_v63, %v2064_v62  ;;  %v3955_v2 = vld [vmem:[%s9676_s15] ss:$0 sm:$0xff] }
 0x4f2   :  { %v1751_v4 = vsub.f32 %v1749_v3, %v1750_v59 }
 0x4f4   :  { %v1753_v5 = vadd.f32 1e-05, %v1751_v4 }
 0x4f6   :  { %5497 = vrsqrt.f32 %v1753_v5 }
 0x500   :  { %v5498_v8 = vpop.eup %5497 }
 0x501   :  { %v1755_v9 = vmul.f32 %v5498_v8, %v1752_v6 }
 0x503   :  { %v1756_v10 = vmax.f32 %v1755_v9, 0.0 }
 0x505   :  { %4173 = vmatmul.mubr.msk.f32.vlgmr.msra.gmra.mrb[8].mxu1 %vm1732_vm2, %v1756_v10 }
 0x506   :  { %4183 = vmatprep.mubr.msk.f32.mxu1 %vm5597_vm1, %v5595_v7  ;;  %4813 = vmatpush3.bf16.msra.mxu1 %v4812_v13 }
 0x507   :  { %4814 = vmatprep.subr.bf16.mxu1 %v5596_v44 }
 0x50a   :  { %4816 = vmatpush3.bf16.msra.mxu1 %v4815_v15 }
 0x50b   :  { %4817 = vmatprep.subr.bf16.mxu1 %v5596_v44 }
 0x5d8   :  { %v1841_v17 = vpop.f32.mrb[8].mxu1 }
 0x5d9   :  { %v1842_v18 = vadd.f32 %v3951_v16, %v1841_v17  ;;  %v4174_v19 = vpop.f32.mrb[9].mxu1 }
 0x5db   :  { %v1846_v20 = vsel %vm1845_vm3, %v1842_v18, 0.0  ;;  %v1854_v21 = vmul.f32 %v1842_v18, %v1842_v18 }
 0x5dc   :  { %v1847_v22 = vrot.slane %v1846_v20, 4 }
 0x5dd   :  { %v1855_v23 = vsel %vm1845_vm3, %v1854_v21, 0.0 }
 0x5de   :  { %v1848_v24 = vadd.f32 %v1847_v22, %v1846_v20  ;;  %v1856_v26 = vrot.slane %v1855_v23, 4 }
 0x5e0   :  { %v1849_v28 = vrot.slane %v1848_v24, 2  ;;  %v1857_v29 = vadd.f32 %v1856_v26, %v1855_v23 }
 0x5e2   :  { %v1850_v34 = vadd.f32 %v1849_v28, %v1848_v24  ;;  %v1858_v35 = vrot.slane %v1857_v29, 2 }
 0x5e4   :  { %v1851_v36 = vrot.slane %v1850_v34, 1  ;;  %v1859_v37 = vadd.f32 %v1858_v35, %v1857_v29  ;;  %v2170_v35 = vld [vmem:[%s9679_s18] sm:$0xff] }
 0x5e6   :  { %v1852_v38 = vadd.f32 %v1851_v36, %v1850_v34  ;;  %v1860_v39 = vrot.slane %v1859_v37, 1  ;;  %v2171_v36 = vld [vmem:[%s9679_s18 + $0x8] sm:$0xff] }
 0x5e8   :  { %v1853_v42 = vmul.f32 0.125, %v1852_v38  ;;  %v1861_v43 = vadd.f32 %v1860_v39, %v1859_v37  ;;  %v4827_v37 = vpack.c.bf16 %v2171_v36, %v2170_v35  ;;  %v2172_v38 = vld [vmem:[%s9679_s18 + $0x10] sm:$0xff]  ;;  %v2173_v39 = vld [vmem:[%s9679_s18 + $0x18] sm:$0xff] }
 0x5e9   :  { %v2295_v35 = vld [vmem:[%s9681_s20 + $0x78] sm:$0xff] }
 0x5ea   :  { %v1862_v46 = vmul.f32 0.125, %v1861_v43  ;;  %v1863_v47 = vmul.f32 %v1853_v42, %v1853_v42  ;;  %v1865_v49 = vsub.f32 %v1842_v18, %v1853_v42  ;;  %v4830_v42 = vpack.c.bf16 %v2173_v39, %v2172_v38  ;;  %v2174_v43 = vld [vmem:[%s9679_s18 + $0x20] sm:$0xff]  ;;  %v2294_v38 = vld [vmem:[%s9681_s20 + $0x70] sm:$0xff] }
 0x5ec   :  { %v1864_v25 = vsub.f32 %v1862_v46, %v1863_v47  ;;  %v2175_v46 = vld [vmem:[%s9679_s18 + $0x28] sm:$0xff] }
 0x5ed   :  { %v4833_v47 = vpack.c.bf16 %v2175_v46, %v2174_v43  ;;  %v2299_v43 = vld [vmem:[%s9681_s20 + $0x98] sm:$0xff] }
 0x5ee   :  { %v1866_v27 = vadd.f32 1e-05, %v1864_v25  ;;  %v2176_v25 = vld [vmem:[%s9679_s18 + $0x30] sm:$0xff] }
 0x5f0   :  { %5499 = vrsqrt.f32 %v1866_v27  ;;  %v2177_v27 = vld [vmem:[%s9679_s18 + $0x38] sm:$0xff] }
 0x5fa   :  { %v5500_v50 = vpop.eup %5499 }
 0x5fb   :  { %v1868_v51 = vmul.f32 %v5500_v50, %v1865_v49  ;;  %v4836_v49 = vpack.c.bf16 %v2177_v27, %v2176_v25  ;;  %v3957_v50 = vld [vmem:[%s9678_s17] ss:$0 sm:$0xff]  ;;  %v2298_v25 = vld [vmem:[%s9681_s20 + $0x90] sm:$0xff] }
 0x5fd   :  { %v1869_v40 = vmax.f32 %v1868_v51, 0.0 }
 0x5ff   :  { %4184 = vmatmul.mubr.msk.f32.vlgmr.msra.gmra.mrb[10].mxu1 %vm1845_vm3, %v1869_v40 }
 0x600   :  { %4190 = vmatprep.mubr.msk.f32.mxu1 %vm5597_vm1, %v5595_v7  ;;  %4819 = vmatpush3.bf16.msra.mxu1 %v4818_v53 }
 0x601   :  { %4820 = vmatprep.subr.bf16.mxu1 %v5596_v44 }
 0x6d2   :  { %v1950_v55 = vpop.f32.mrb[10].mxu1 }
 0x6d3   :  { %v1951_v56 = vadd.f32 %v3953_v54, %v1950_v55  ;;  %v4185_v57 = vpop.f32.mrb[11].mxu1 }
 0x6d5   :  { %v1954_v58 = vmax.f32 %v1951_v56, 0.0 }
 0x6d7   :  { %1955 = vst.msk [vmem:[#allocation2] sm:$0xff] %vm522_vm0, %v1954_v58  ;;  %4191 = vmatmul.mubr.msk.f32.vlgmr.msra.gmra.mrb[12].mxu1 %vm522_vm0, %v1954_v58 }
 0x6d8   :  { %4201 = vmatprep.mubr.msk.f32.mxu1 %vm5597_vm1, %v5595_v7  ;;  %4822 = vmatpush3.bf16.msra.mxu1 %v4821_v32 }
 0x6d9   :  { %4823 = vmatprep.subr.bf16.mxu1 %v5596_v44 }
 0x6dc   :  { %4825 = vmatpush3.bf16.msra.mxu1 %v4824_v0 }
 0x6dd   :  { %4826 = vmatprep.subr.bf16.mxu1 %v5596_v44 }
 0x7aa   :  { %v2034_v3 = vpop.f32.mrb[12].mxu1 }
 0x7ab   :  { %v2035_v59 = vadd.f32 %v3955_v2, %v2034_v3  ;;  %v4192_v4 = vpop.f32.mrb[13].mxu1 }
 0x7ad   :  { %v2038_v5 = vsel %vm1845_vm3, %v2035_v59, 0.0  ;;  %v2046_v6 = vmul.f32 %v2035_v59, %v2035_v59 }
 0x7ae   :  { %v2039_v8 = vrot.slane %v2038_v5, 4 }
 0x7af   :  { %v2047_v9 = vsel %vm1845_vm3, %v2046_v6, 0.0 }
 0x7b0   :  { %v2040_v10 = vadd.f32 %v2039_v8, %v2038_v5  ;;  %v2048_v11 = vrot.slane %v2047_v9, 4 }
 0x7b2   :  { %v2041_v12 = vrot.slane %v2040_v10, 2  ;;  %v2049_v13 = vadd.f32 %v2048_v11, %v2047_v9 }
 0x7b4   :  { %v2042_v1 = vadd.f32 %v2041_v12, %v2040_v10  ;;  %v2050_v14 = vrot.slane %v2049_v13, 2  ;;  %v2281_v12 = vld [vmem:[%s9681_s20 + $0x8] sm:$0xff] }
 0x7b6   :  { %v2043_v15 = vrot.slane %v2042_v1, 1  ;;  %v2051_v16 = vadd.f32 %v2050_v14, %v2049_v13  ;;  %v2283_v13 = vld [vmem:[%s9681_s20 + $0x18] sm:$0xff]  ;;  %v2280_v14 = vld [vmem:[%s9681_s20] sm:$0xff] }
 0x7b8   :  { %v2044_v17 = vadd.f32 %v2043_v15, %v2042_v1  ;;  %v2052_v18 = vrot.slane %v2051_v16, 1  ;;  %v4838_v1 = vpack.c.bf16 %v2283_v13, %v2281_v12  ;;  %v2282_v15 = vld [vmem:[%s9681_s20 + $0x10] sm:$0xff]  ;;  %v2447_v13 = vld [vmem:[%s9683_s22 + $0x40] sm:$0xff] }
 0x7ba   :  { %v2045_v19 = vmul.f32 0.125, %v2044_v17  ;;  %v2053_v20 = vadd.f32 %v2052_v18, %v2051_v16  ;;  %v4840_v16 = vpack.c.bf16 %v2282_v15, %v2280_v14  ;;  %v2287_v17 = vld [vmem:[%s9681_s20 + $0x38] sm:$0xff]  ;;  %v2456_v15 = vld [vmem:[%s9683_s22 + $0x88] sm:$0xff] }
 0x7bc   :  { %v2054_v21 = vmul.f32 0.125, %v2053_v20  ;;  %v2055_v22 = vmul.f32 %v2045_v19, %v2045_v19  ;;  %v2057_v26 = vsub.f32 %v2035_v59, %v2045_v19  ;;  %v2284_v19 = vld [vmem:[%s9681_s20 + $0x20] sm:$0xff]  ;;  %v2286_v20 = vld [vmem:[%s9681_s20 + $0x30] sm:$0xff] }
 0x7be   :  { %v2056_v23 = vsub.f32 %v2054_v21, %v2055_v22  ;;  %v4844_v21 = vpack.c.bf16 %v2286_v20, %v2284_v19  ;;  %v2289_v22 = vld [vmem:[%s9681_s20 + $0x48] sm:$0xff] }
 0x7bf   :  { %v2464_v20 = vld [vmem:[%s9683_s22 + $0xc8] sm:$0xff] }
 0x7c0   :  { %v2058_v24 = vadd.f32 1e-05, %v2056_v23  ;;  %v2291_v23 = vld [vmem:[%s9681_s20 + $0x58] sm:$0xff] }
 0x7c2   :  { %5501 = vrsqrt.f32 %v2058_v24  ;;  %v4846_v24 = vpack.c.bf16 %v2291_v23, %v2289_v22  ;;  %v2463_v23 = vld [vmem:[%s9683_s22 + $0xc0] sm:$0xff] }
 0x7cc   :  { %v5502_v28 = vpop.eup %5501 }
 0x7cd   :  { %v2060_v29 = vmul.f32 %v5502_v28, %v2057_v26  ;;  %v2288_v26 = vld [vmem:[%s9681_s20 + $0x40] sm:$0xff]  ;;  %v2290_v28 = vld [vmem:[%s9681_s20 + $0x50] sm:$0xff] }
 0x7cf   :  { %v2061_v34 = vmax.f32 %v2060_v29, 0.0  ;;  %v4848_v29 = vpack.c.bf16 %v2290_v28, %v2288_v26  ;;  %v2472_v28 = vld [vmem:[%s9683_s22 + $0x108] sm:$0xff] }
 0x7d1   :  { %4202 = vmatmul.mubr.msk.f32.vlgmr.msra.gmra.mrb[14].mxu1 %vm1845_vm3, %v2061_v34  ;;  %v2293_v34 = vld [vmem:[%s9681_s20 + $0x68] sm:$0xff] }
 0x7d2   :  { %4220 = vmatprep.mubr.msk.f32.mxu1 %vm5597_vm1, %v5595_v7  ;;  %4828 = vmatpush3.bf16.msra.mxu1 %v4827_v37  ;;  %v4850_v36 = vpack.c.bf16 %v2295_v35, %v2293_v34  ;;  %v2292_v37 = vld [vmem:[%s9681_s20 + $0x60] sm:$0xff] }
 0x7d3   :  { %4829 = vmatprep.subr.bf16.mxu1 %v5596_v44  ;;  %v4852_v39 = vpack.c.bf16 %v2294_v38, %v2292_v37  ;;  %v2471_v35 = vld [vmem:[%s9683_s22 + $0x100] sm:$0xff]  ;;  %v2480_v38 = vld [vmem:[%s9683_s22 + $0x148] sm:$0xff] }
 0x7d6   :  { %4831 = vmatpush3.bf16.msra.mxu1 %v4830_v42  ;;  %v2297_v42 = vld [vmem:[%s9681_s20 + $0x88] sm:$0xff] }
 0x7d7   :  { %4832 = vmatprep.subr.bf16.mxu1 %v5596_v44  ;;  %v4854_v46 = vpack.c.bf16 %v2299_v43, %v2297_v42  ;;  %v2479_v43 = vld [vmem:[%s9683_s22 + $0x140] sm:$0xff] }
 0x7da   :  { %4834 = vmatpush3.bf16.msra.mxu1 %v4833_v47  ;;  %v2296_v47 = vld [vmem:[%s9681_s20 + $0x80] sm:$0xff] }
 0x7db   :  { %4835 = vmatprep.subr.bf16.mxu1 %v5596_v44  ;;  %v4856_v27 = vpack.c.bf16 %v2298_v25, %v2296_v47  ;;  %v3959_v25 = vld [vmem:[%s9680_s19] ss:$0 sm:$0xff] }
 0x7de   :  { %4837 = vmatpush3.bf16.msra.mxu1 %v4836_v49  ;;  %v2301_v49 = vld [vmem:[%s9681_s20 + $0xa8] sm:$0xff] }
 0x7df   :  { %4839 = vmatprep.subr.bf16.mxu1 %v4838_v1  ;;  %v2451_v1 = vld [vmem:[%s9683_s22 + $0x60] sm:$0xff] }
 0x7e0   :  { %v4876_v14 = vpack.c.bf16 %v2451_v1, %v2447_v13  ;;  %v2449_v13 = vld [vmem:[%s9683_s22 + $0x50] sm:$0xff] }
 0x7e1   :  { %v2453_v1 = vld [vmem:[%s9683_s22 + $0x70] sm:$0xff] }
 0x8a4   :  { %v2142_v51 = vpop.f32.mrb[14].mxu1 }
 0x8a5   :  { %v2143_v40 = vadd.f32 %v3957_v50, %v2142_v51  ;;  %v4203_v41 = vpop.f32.mrb[15].mxu1  ;;  %v2303_v50 = vld [vmem:[%s9681_s20 + $0xb8] sm:$0xff]  ;;  %v2300_v51 = vld [vmem:[%s9681_s20 + $0xa0] sm:$0xff] }
 0x8a6   :  { %v2302_v41 = vld [vmem:[%s9681_s20 + $0xb0] sm:$0xff] }
 0x8a7   :  { %v2146_v52 = vsel %vm1732_vm2, %v2143_v40, 0.0  ;;  %v2154_v44 = vmul.f32 %v2143_v40, %v2143_v40 }
 0x8a8   :  { %v2147_v53 = vrot.slane %v2146_v52, 4 }
 0x8a9   :  { %v2155_v54 = vsel %vm1732_vm2, %v2154_v44, 0.0  ;;  %v2307_v44 = vld [vmem:[%s9681_s20 + $0xd8] sm:$0xff] }
 0x8aa   :  { %v2148_v55 = vadd.f32 %v2147_v53, %v2146_v52  ;;  %v2156_v56 = vrot.slane %v2155_v54, 4  ;;  %v2305_v52 = vld [vmem:[%s9681_s20 + $0xc8] sm:$0xff]  ;;  %v4860_v53 = vpack.c.bf16 %v2302_v41, %v2300_v51 }
 0x8ac   :  { %v2149_v57 = vrot.slane %v2148_v55, 2  ;;  %v2157_v58 = vadd.f32 %v2156_v56, %v2155_v54  ;;  %v4862_v54 = vpack.c.bf16 %v2307_v44, %v2305_v52  ;;  %v2306_v56 = vld [vmem:[%s9681_s20 + $0xd0] sm:$0xff] }
 0x8ae   :  { %v2150_v61 = vadd.f32 %v2149_v57, %v2148_v55  ;;  %v2158_v60 = vrot.slane %v2157_v58, 2  ;;  %v2304_v55 = vld [vmem:[%s9681_s20 + $0xc0] sm:$0xff]  ;;  %v2309_v57 = vld [vmem:[%s9681_s20 + $0xe8] sm:$0xff] }
 0x8b0   :  { %v2151_v32 = vrot.slane %v2150_v61, 1  ;;  %v2159_v62 = vadd.f32 %v2158_v60, %v2157_v58  ;;  %v2311_v58 = vld [vmem:[%s9681_s20 + $0xf8] sm:$0xff] }
 0x8b1   :  { %v4866_v60 = vpack.c.bf16 %v2311_v58, %v2309_v57 }
 0x8b2   :  { %v2152_v63 = vadd.f32 %v2151_v32, %v2150_v61  ;;  %v2160_v0 = vrot.slane %v2159_v62, 1  ;;  %v4864_v61 = vpack.c.bf16 %v2306_v56, %v2304_v55  ;;  %v2308_v32 = vld [vmem:[%s9681_s20 + $0xe0] sm:$0xff] }
 0x8b4   :  { %v2153_v2 = vmul.f32 0.125, %v2152_v63  ;;  %v2161_v3 = vadd.f32 %v2160_v0, %v2159_v62  ;;  %v2310_v62 = vld [vmem:[%s9681_s20 + $0xf0] sm:$0xff]  ;;  %v2440_v0 = vld [vmem:[%s9683_s22 + $0x8] sm:$0xff] }
 0x8b5   :  { %v4868_v63 = vpack.c.bf16 %v2310_v62, %v2308_v32 }
 0x8b6   :  { %v2162_v59 = vmul.f32 0.125, %v2161_v3  ;;  %v2163_v4 = vmul.f32 %v2153_v2, %v2153_v2  ;;  %v2165_v8 = vsub.f32 %v2143_v40, %v2153_v2  ;;  %v4858_v40 = vpack.c.bf16 %v2303_v50, %v2301_v49  ;;  %v2444_v2 = vld [vmem:[%s9683_s22 + $0x28] sm:$0xff]  ;;  %v2442_v3 = vld [vmem:[%s9683_s22 + $0x18] sm:$0xff] }
 0x8b8   :  { %v2164_v5 = vsub.f32 %v2162_v59, %v2163_v4  ;;  %v4870_v59 = vpack.c.bf16 %v2444_v2, %v2440_v0  ;;  %v2446_v4 = vld [vmem:[%s9683_s22 + $0x38] sm:$0xff] }
 0x8ba   :  { %v2166_v6 = vadd.f32 1e-05, %v2164_v5  ;;  %v2439_v5 = vld [vmem:[%s9683_s22] sm:$0xff]  ;;  %4871 = vmatprep.subr.bf16.mxu0 %v4870_v59  ;;  %v2441_v59 = vld [vmem:[%s9683_s22 + $0x10] sm:$0xff] }
 0x8bc   :  { %5503 = vrsqrt.f32 %v2166_v6  ;;  %v2443_v6 = vld [vmem:[%s9683_s22 + $0x20] sm:$0xff] }
 0x8c6   :  { %v5504_v9 = vpop.eup %5503 }
 0x8c7   :  { %v2168_v10 = vmul.f32 %v5504_v9, %v2165_v8  ;;  %v4934_v8 = vpack.c.bf16 %v2446_v4, %v2442_v3  ;;  %v4872_v9 = vpack.c.bf16 %v2443_v6, %v2439_v5  ;;  %v2445_v4 = vld [vmem:[%s9683_s22 + $0x30] sm:$0xff]  ;;  %v2450_v6 = vld [vmem:[%s9683_s22 + $0x58] sm:$0xff] }
 0x8c9   :  { %v2169_v11 = vmax.f32 %v2168_v10, 0.0  ;;  %v2448_v10 = vld [vmem:[%s9683_s22 + $0x48] sm:$0xff]  ;;  %4873 = vmatpush1.bf16.msra.mxu0 %v4872_v9 }
 0x8cb   :  { %4221 = vmatmul.mubr.msk.f32.vlgmr.msra.gmra.mrb[16].mxu1 %vm1732_vm2, %v2169_v11  ;;  %v2452_v11 = vld [vmem:[%s9683_s22 + $0x68] sm:$0xff] }
 0x8cc   :  { %2388 = vmatprep.mubr.f32.mxu1 %v5595_v7  ;;  %4841 = vmatpush1.bf16.msra.mxu1 %v4840_v16  ;;  %v2285_v7 = vld [vmem:[%s9681_s20 + $0x28] sm:$0xff]  ;;  %v4874_v12 = vpack.c.bf16 %v2452_v11, %v2448_v10  ;;  %v4936_v10 = vpack.c.bf16 %v2445_v4, %v2441_v59 }
 0x8cd   :  { %v4842_v18 = vpack.c.bf16 %v2287_v17, %v2285_v7  ;;  %v2460_v16 = vld [vmem:[%s9683_s22 + $0xa8] sm:$0xff]  ;;  %v2455_v17 = vld [vmem:[%s9683_s22 + $0x80] sm:$0xff] }
 0x8ce   :  { %4875 = vmatprep.subr.bf16.mxu0 %v4874_v12  ;;  %v4878_v7 = vpack.c.bf16 %v2460_v16, %v2456_v15  ;;  %v2462_v15 = vld [vmem:[%s9683_s22 + $0xb8] sm:$0xff]  ;;  %v4940_v16 = vpack.c.bf16 %v2453_v1, %v2449_v13  ;;  %v2504_v4 = vld [vmem:[%s9683_s22 + $0x208] sm:$0xff]  ;;  %v2505_v1 = vld [vmem:[%s9683_s22 + $0x210] sm:$0xff] }
 0x8cf   :  { %4843 = vmatprep.subr.bf16.mxu1 %v4842_v18  ;;  %v2459_v18 = vld [vmem:[%s9683_s22 + $0xa0] sm:$0xff]  ;;  %4877 = vmatpush1.bf16.msra.mxu0 %v4876_v14  ;;  %v2458_v14 = vld [vmem:[%s9683_s22 + $0x98] sm:$0xff] }
 0x8d0   :  { %4845 = vmatpush1.bf16.msra.mxu1 %v4844_v21  ;;  %v4880_v19 = vpack.c.bf16 %v2459_v18, %v2455_v17  ;;  %4879 = vmatprep.subr.bf16.mxu0 %v4878_v7  ;;  %v2468_v21 = vld [vmem:[%s9683_s22 + $0xe8] sm:$0xff]  ;;  %v4942_v7 = vpack.c.bf16 %v2462_v15, %v2458_v14  ;;  %v2457_v17 = vld [vmem:[%s9683_s22 + $0x90] sm:$0xff] }
 0x8d1   :  { %4847 = vmatprep.subr.bf16.mxu1 %v4846_v24  ;;  %v4882_v22 = vpack.c.bf16 %v2468_v21, %v2464_v20  ;;  %v2467_v24 = vld [vmem:[%s9683_s22 + $0xe0] sm:$0xff]  ;;  %v2461_v18 = vld [vmem:[%s9683_s22 + $0xb0] sm:$0xff]  ;;  %v2470_v20 = vld [vmem:[%s9683_s22 + $0xf8] sm:$0xff] }
 0x8d2   :  { %v4884_v26 = vpack.c.bf16 %v2467_v24, %v2463_v23  ;;  %v4944_v21 = vpack.c.bf16 %v2461_v18, %v2457_v17  ;;  %v2465_v23 = vld [vmem:[%s9683_s22 + $0xd0] sm:$0xff]  ;;  %v2514_v17 = vld [vmem:[%s9683_s22 + $0x258] sm:$0xff] }
 0x8d3   :  { %4881 = vmatpush1.bf16.msra.mxu0 %v4880_v19  ;;  %v2466_v19 = vld [vmem:[%s9683_s22 + $0xd8] sm:$0xff]  ;;  %v2469_v24 = vld [vmem:[%s9683_s22 + $0xf0] sm:$0xff] }
 0x8d4   :  { %4849 = vmatpush1.bf16.msra.mxu1 %v4848_v29  ;;  %4883 = vmatprep.subr.bf16.mxu0 %v4882_v22  ;;  %v2476_v29 = vld [vmem:[%s9683_s22 + $0x128] sm:$0xff]  ;;  %v4946_v22 = vpack.c.bf16 %v2470_v20, %v2466_v19  ;;  %v2509_v14 = vld [vmem:[%s9683_s22 + $0x230] sm:$0xff]  ;;  %v2518_v19 = vld [vmem:[%s9683_s22 + $0x278] sm:$0xff] }
 0x8d5   :  { %4851 = vmatprep.subr.bf16.mxu1 %v4850_v36  ;;  %v4886_v34 = vpack.c.bf16 %v2476_v29, %v2472_v28  ;;  %v2475_v36 = vld [vmem:[%s9683_s22 + $0x120] sm:$0xff]  ;;  %v2478_v28 = vld [vmem:[%s9683_s22 + $0x138] sm:$0xff]  ;;  %v4948_v29 = vpack.c.bf16 %v2469_v24, %v2465_v23  ;;  %v4968_v15 = vpack.c.bf16 %v2509_v14, %v2505_v1  ;;  %v2513_v24 = vld [vmem:[%s9683_s22 + $0x250] sm:$0xff] }
 0x8d6   :  { %v4888_v37 = vpack.c.bf16 %v2475_v36, %v2471_v35  ;;  %v2473_v35 = vld [vmem:[%s9683_s22 + $0x110] sm:$0xff]  ;;  %v2511_v20 = vld [vmem:[%s9683_s22 + $0x240] sm:$0xff] }
 0x8d7   :  { %4885 = vmatpush1.bf16.msra.mxu0 %v4884_v26  ;;  %v2474_v26 = vld [vmem:[%s9683_s22 + $0x118] sm:$0xff]  ;;  %v2477_v36 = vld [vmem:[%s9683_s22 + $0x130] sm:$0xff] }
 0x8d8   :  { %4853 = vmatpush1.bf16.msra.mxu1 %v4852_v39  ;;  %4887 = vmatprep.subr.bf16.mxu0 %v4886_v34  ;;  %v2484_v39 = vld [vmem:[%s9683_s22 + $0x168] sm:$0xff]  ;;  %v4950_v34 = vpack.c.bf16 %v2478_v28, %v2474_v26  ;;  %v2517_v26 = vld [vmem:[%s9683_s22 + $0x270] sm:$0xff] }
 0x8d9   :  { %4855 = vmatprep.subr.bf16.mxu1 %v4854_v46  ;;  %v4890_v42 = vpack.c.bf16 %v2484_v39, %v2480_v38  ;;  %v2483_v46 = vld [vmem:[%s9683_s22 + $0x160] sm:$0xff]  ;;  %v2486_v38 = vld [vmem:[%s9683_s22 + $0x178] sm:$0xff]  ;;  %v4952_v39 = vpack.c.bf16 %v2477_v36, %v2473_v35  ;;  %v4972_v28 = vpack.c.bf16 %v2517_v26, %v2513_v24  ;;  %v2545_v1 = vld [vmem:[%s9683_s22 + $0x350] sm:$0xff] }
 0x8da   :  { %v4892_v47 = vpack.c.bf16 %v2483_v46, %v2479_v43  ;;  %v2481_v43 = vld [vmem:[%s9683_s22 + $0x150] sm:$0xff]  ;;  %v2522_v35 = vld [vmem:[%s9683_s22 + $0x298] sm:$0xff] }
 0x8db   :  { %4889 = vmatpush1.bf16.msra.mxu0 %v4888_v37  ;;  %v2482_v37 = vld [vmem:[%s9683_s22 + $0x158] sm:$0xff]  ;;  %v2485_v46 = vld [vmem:[%s9683_s22 + $0x170] sm:$0xff] }
 0x8dc   :  { %4857 = vmatpush1.bf16.msra.mxu1 %v4856_v27  ;;  %4891 = vmatprep.subr.bf16.mxu0 %v4890_v42  ;;  %v4954_v42 = vpack.c.bf16 %v2486_v38, %v2482_v37  ;;  %v2526_v37 = vld [vmem:[%s9683_s22 + $0x2b8] sm:$0xff]  ;;  %v2519_v38 = vld [vmem:[%s9683_s22 + $0x280] sm:$0xff]  ;;  %v2553_v24 = vld [vmem:[%s9683_s22 + $0x390] sm:$0xff] }
 0x8dd   :  { %4859 = vmatprep.subr.bf16.mxu1 %v4858_v40  ;;  %v2557_v26 = vld [vmem:[%s9683_s22 + $0x3b0] sm:$0xff] }
 0x8df   :  { %4893 = vmatpush1.bf16.msra.mxu0 %v4892_v47  ;;  %v4956_v47 = vpack.c.bf16 %v2485_v46, %v2481_v43  ;;  %v2521_v46 = vld [vmem:[%s9683_s22 + $0x290] sm:$0xff] }
 0x8e0   :  { %4861 = vmatpush1.bf16.msra.mxu1 %v4860_v53 }
 0x8e1   :  { %4863 = vmatprep.subr.bf16.mxu1 %v4862_v54 }
 0x8e4   :  { %4865 = vmatpush1.bf16.msra.mxu1 %v4864_v61 }
 0x8e5   :  { %4867 = vmatprep.subr.bf16.mxu1 %v4866_v60 }
 0x8e8   :  { %4869 = vmatpush1.bf16.msra.mxu1 %v4868_v63 }
 0x8e9   :  { %4935 = vmatprep.subr.bf16.mxu1 %v4934_v8  ;;  %v2454_v8 = vld [vmem:[%s9683_s22 + $0x78] sm:$0xff] }
 0x8ea   :  { %v4938_v12 = vpack.c.bf16 %v2454_v8, %v2450_v6  ;;  %v2506_v6 = vld [vmem:[%s9683_s22 + $0x218] sm:$0xff] }
 0x99e   :  { %v2254_v27 = vpop.f32.mrb[16].mxu1 }
 0x99f   :  { %v2255_v49 = vadd.f32 %v3959_v25, %v2254_v27  ;;  %v4222_v50 = vpop.f32.mrb[17].mxu1  ;;  %v2488_v25 = vld [vmem:[%s9683_s22 + $0x188] sm:$0xff] }
 0x9a0   :  { %v2492_v27 = vld [vmem:[%s9683_s22 + $0x1a8] sm:$0xff] }
 0x9a1   :  { %v2258_v51 = vrot.slane %v2255_v49, 4  ;;  %v2265_v40 = vmul.f32 %v2255_v49, %v2255_v49  ;;  %v4894_v50 = vpack.c.bf16 %v2492_v27, %v2488_v25  ;;  %v2528_v27 = vld [vmem:[%s9683_s22 + $0x2c8] sm:$0xff] }
 0x9a3   :  { %v2259_v41 = vadd.f32 %v2258_v51, %v2255_v49  ;;  %v2266_v52 = vrot.slane %v2265_v40, 4  ;;  %v2494_v51 = vld [vmem:[%s9683_s22 + $0x1b8] sm:$0xff]  ;;  %4895 = vmatprep.subr.bf16.mxu0 %v4894_v50 }
 0x9a4   :  { %v2530_v50 = vld [vmem:[%s9683_s22 + $0x2d8] sm:$0xff] }
 0x9a5   :  { %v2260_v44 = vrot.slane %v2259_v41, 2  ;;  %v2267_v53 = vadd.f32 %v2266_v52, %v2265_v40  ;;  %v2487_v40 = vld [vmem:[%s9683_s22 + $0x180] sm:$0xff] }
 0x9a7   :  { %v2261_v54 = vadd.f32 %v2260_v44, %v2259_v41  ;;  %v2268_v55 = vrot.slane %v2267_v53, 2  ;;  %v2491_v41 = vld [vmem:[%s9683_s22 + $0x1a0] sm:$0xff] }
 0x9a8   :  { %v4896_v44 = vpack.c.bf16 %v2491_v41, %v2487_v40  ;;  %v2534_v40 = vld [vmem:[%s9683_s22 + $0x2f8] sm:$0xff]  ;;  %v2527_v41 = vld [vmem:[%s9683_s22 + $0x2c0] sm:$0xff] }
 0x9a9   :  { %v2262_v56 = vrot.slane %v2261_v54, 1  ;;  %v2269_v57 = vadd.f32 %v2268_v55, %v2267_v53  ;;  %v2489_v53 = vld [vmem:[%s9683_s22 + $0x190] sm:$0xff] }
 0x9aa   :  { %4897 = vmatpush1.bf16.msra.mxu0 %v4896_v44  ;;  %v4978_v44 = vpack.c.bf16 %v2534_v40, %v2530_v50  ;;  %v2827_v50 = vld [vmem:[%s9685_s24 + $0x40] sm:$0xff] }
 0x9ab   :  { %v2263_v58 = vadd.f32 %v2262_v56, %v2261_v54  ;;  %v2270_v61 = vrot.slane %v2269_v57, 1  ;;  %v2493_v54 = vld [vmem:[%s9683_s22 + $0x1b0] sm:$0xff]  ;;  %v2496_v56 = vld [vmem:[%s9683_s22 + $0x1c8] sm:$0xff] }
 0x9ac   :  { %v4960_v55 = vpack.c.bf16 %v2493_v54, %v2489_v53  ;;  %v2529_v54 = vld [vmem:[%s9683_s22 + $0x2d0] sm:$0xff] }
 0x9ad   :  { %v2264_v60 = vmul.f32 0.125, %v2263_v58  ;;  %v2271_v32 = vadd.f32 %v2270_v61, %v2269_v57  ;;  %v2500_v57 = vld [vmem:[%s9683_s22 + $0x1e8] sm:$0xff]  ;;  %v2498_v58 = vld [vmem:[%s9683_s22 + $0x1d8] sm:$0xff] }
 0x9ae   :  { %v4898_v61 = vpack.c.bf16 %v2500_v57, %v2496_v56  ;;  %v2536_v57 = vld [vmem:[%s9683_s22 + $0x308] sm:$0xff] }
 0x9af   :  { %v2272_v62 = vmul.f32 0.125, %v2271_v32  ;;  %v2273_v63 = vmul.f32 %v2264_v60, %v2264_v60  ;;  %v2275_v3 = vsub.f32 %v2255_v49, %v2264_v60  ;;  %v2490_v49 = vld [vmem:[%s9683_s22 + $0x198] sm:$0xff]  ;;  %v2495_v32 = vld [vmem:[%s9683_s22 + $0x1c0] sm:$0xff] }
 0x9b0   :  { %v4958_v52 = vpack.c.bf16 %v2494_v51, %v2490_v49  ;;  %v2502_v60 = vld [vmem:[%s9683_s22 + $0x1f8] sm:$0xff]  ;;  %4899 = vmatprep.subr.bf16.mxu0 %v4898_v61  ;;  %v2532_v49 = vld [vmem:[%s9683_s22 + $0x2e8] sm:$0xff] }
 0x9b1   :  { %v2274_v0 = vsub.f32 %v2272_v62, %v2273_v63  ;;  %v2499_v62 = vld [vmem:[%s9683_s22 + $0x1e0] sm:$0xff]  ;;  %v4962_v63 = vpack.c.bf16 %v2502_v60, %v2498_v58  ;;  %v4914_v51 = vpack.c.bf16 %v2532_v49, %v2528_v27  ;;  %v2540_v58 = vld [vmem:[%s9683_s22 + $0x328] sm:$0xff]  ;;  %v2538_v61 = vld [vmem:[%s9683_s22 + $0x318] sm:$0xff] }
 0x9b2   :  { %v4918_v60 = vpack.c.bf16 %v2540_v58, %v2536_v57  ;;  %v2820_v49 = vld [vmem:[%s9685_s24 + $0x8] sm:$0xff] }
 0x9b3   :  { %v2276_v2 = vadd.f32 1e-05, %v2274_v0  ;;  %v4900_v0 = vpack.c.bf16 %v2499_v62, %v2495_v32  ;;  %v2542_v32 = vld [vmem:[%s9683_s22 + $0x338] sm:$0xff]  ;;  %v2535_v62 = vld [vmem:[%s9683_s22 + $0x300] sm:$0xff]  ;;  %v4998_v40 = vpack.c.bf16 %v2827_v50, %v2820_v49  ;;  %v2841_v50 = vld [vmem:[%s9685_s24 + $0xb0] sm:$0xff] }
 0x9b5   :  { %5505 = vrsqrt.f32 %v2276_v2  ;;  %v2497_v2 = vld [vmem:[%s9683_s22 + $0x1d0] sm:$0xff]  ;;  %4901 = vmatpush1.bf16.msra.mxu0 %v4900_v0  ;;  %v4982_v0 = vpack.c.bf16 %v2542_v32, %v2538_v61 }
 0x9bf   :  { %v5506_v5 = vpop.eup %5505 }
 0x9c0   :  { %v2278_v9 = vmul.f32 %v5506_v5, %v2275_v3  ;;  %v2501_v3 = vld [vmem:[%s9683_s22 + $0x1f0] sm:$0xff]  ;;  %v2508_v5 = vld [vmem:[%s9683_s22 + $0x228] sm:$0xff] }
 0x9c1   :  { %v4964_v59 = vpack.c.bf16 %v2501_v3, %v2497_v2  ;;  %v4902_v8 = vpack.c.bf16 %v2508_v5, %v2504_v4  ;;  %v2537_v3 = vld [vmem:[%s9683_s22 + $0x310] sm:$0xff]  ;;  %v2544_v4 = vld [vmem:[%s9683_s22 + $0x348] sm:$0xff] }
 0x9c2   :  { %v2279_v11 = vmax.f32 %v2278_v9, 0.0  ;;  %v2510_v9 = vld [vmem:[%s9683_s22 + $0x238] sm:$0xff] }
 0x9c3   :  { %4903 = vmatprep.subr.bf16.mxu0 %v4902_v8  ;;  %v2546_v8 = vld [vmem:[%s9683_s22 + $0x358] sm:$0xff] }
 0x9c4   :  { %2389 = vmatmul.mubr.f32.vlgmr.msra.gmra.mrb[18].mxu1 %v2279_v11  ;;  %v2507_v11 = vld [vmem:[%s9683_s22 + $0x220] sm:$0xff] }
 0x9c5   :  { %4937 = vmatpush1.bf16.msra.mxu1 %v4936_v10  ;;  %v2503_v10 = vld [vmem:[%s9683_s22 + $0x200] sm:$0xff] }
 0x9c6   :  { %4939 = vmatprep.subr.bf16.mxu1 %v4938_v12  ;;  %v4966_v12 = vpack.c.bf16 %v2510_v9, %v2506_v6  ;;  %v4904_v13 = vpack.c.bf16 %v2507_v11, %v2503_v10  ;;  %v2548_v6 = vld [vmem:[%s9683_s22 + $0x368] sm:$0xff]  ;;  %v2550_v9 = vld [vmem:[%s9683_s22 + $0x378] sm:$0xff] }
 0x9c7   :  { %v4922_v10 = vpack.c.bf16 %v2548_v6, %v2544_v4  ;;  %v4986_v11 = vpack.c.bf16 %v2550_v9, %v2546_v8 }
 0x9c8   :  { %4905 = vmatpush1.bf16.msra.mxu0 %v4904_v13  ;;  %v2547_v13 = vld [vmem:[%s9683_s22 + $0x360] sm:$0xff] }
 0x9c9   :  { %4941 = vmatpush1.bf16.msra.mxu1 %v4940_v16  ;;  %v2512_v16 = vld [vmem:[%s9683_s22 + $0x248] sm:$0xff] }
 0x9ca   :  { %4943 = vmatprep.subr.bf16.mxu1 %v4942_v7  ;;  %v2516_v7 = vld [vmem:[%s9683_s22 + $0x268] sm:$0xff] }
 0x9cb   :  { %v4906_v18 = vpack.c.bf16 %v2516_v7, %v2512_v16  ;;  %v2552_v16 = vld [vmem:[%s9683_s22 + $0x388] sm:$0xff] }
 0x9cc   :  { %v2556_v7 = vld [vmem:[%s9683_s22 + $0x3a8] sm:$0xff] }
 0x9cd   :  { %4945 = vmatpush1.bf16.msra.mxu1 %v4944_v21  ;;  %v2515_v21 = vld [vmem:[%s9683_s22 + $0x260] sm:$0xff]  ;;  %4907 = vmatprep.subr.bf16.mxu0 %v4906_v18  ;;  %v4926_v18 = vpack.c.bf16 %v2556_v7, %v2552_v16 }
 0x9ce   :  { %4947 = vmatprep.subr.bf16.mxu1 %v4946_v22  ;;  %v4970_v22 = vpack.c.bf16 %v2518_v19, %v2514_v17  ;;  %v4908_v23 = vpack.c.bf16 %v2515_v21, %v2511_v20  ;;  %v2554_v19 = vld [vmem:[%s9683_s22 + $0x398] sm:$0xff]  ;;  %v2551_v21 = vld [vmem:[%s9683_s22 + $0x380] sm:$0xff] }
 0x9cf   :  { %v2558_v20 = vld [vmem:[%s9683_s22 + $0x3b8] sm:$0xff] }
 0x9d0   :  { %4909 = vmatpush1.bf16.msra.mxu0 %v4908_v23  ;;  %v2555_v23 = vld [vmem:[%s9683_s22 + $0x3a0] sm:$0xff] }
 0x9d1   :  { %4949 = vmatpush1.bf16.msra.mxu1 %v4948_v29  ;;  %v2520_v29 = vld [vmem:[%s9683_s22 + $0x288] sm:$0xff] }
 0x9d2   :  { %4951 = vmatprep.subr.bf16.mxu1 %v4950_v34  ;;  %v2524_v34 = vld [vmem:[%s9683_s22 + $0x2a8] sm:$0xff] }
 0x9d3   :  { %v4910_v36 = vpack.c.bf16 %v2524_v34, %v2520_v29  ;;  %v2560_v29 = vld [vmem:[%s9683_s22 + $0x3c8] sm:$0xff] }
 0x9d4   :  { %v2564_v34 = vld [vmem:[%s9683_s22 + $0x3e8] sm:$0xff] }
 0x9d5   :  { %4953 = vmatpush1.bf16.msra.mxu1 %v4952_v39  ;;  %v2523_v39 = vld [vmem:[%s9683_s22 + $0x2a0] sm:$0xff]  ;;  %4911 = vmatprep.subr.bf16.mxu0 %v4910_v36  ;;  %v4992_v36 = vpack.c.bf16 %v2557_v26, %v2553_v24 }
 0x9d6   :  { %4955 = vmatprep.subr.bf16.mxu1 %v4954_v42  ;;  %v4974_v42 = vpack.c.bf16 %v2526_v37, %v2522_v35  ;;  %v4912_v43 = vpack.c.bf16 %v2523_v39, %v2519_v38  ;;  %v2562_v35 = vld [vmem:[%s9683_s22 + $0x3d8] sm:$0xff]  ;;  %v4930_v37 = vpack.c.bf16 %v2564_v34, %v2560_v29  ;;  %v2559_v39 = vld [vmem:[%s9683_s22 + $0x3c0] sm:$0xff] }
 0x9d7   :  { %v2566_v38 = vld [vmem:[%s9683_s22 + $0x3f8] sm:$0xff] }
 0x9d8   :  { %4913 = vmatpush1.bf16.msra.mxu0 %v4912_v43  ;;  %v4994_v43 = vpack.c.bf16 %v2566_v38, %v2562_v35 }
 0x9d9   :  { %4957 = vmatpush1.bf16.msra.mxu1 %v4956_v47  ;;  %v2525_v47 = vld [vmem:[%s9683_s22 + $0x2b0] sm:$0xff]  ;;  %4915 = vmatprep.subr.bf16.mxu0 %v4914_v51  ;;  %v2822_v51 = vld [vmem:[%s9685_s24 + $0x18] sm:$0xff] }
 0x9da   :  { %4959 = vmatprep.subr.bf16.mxu1 %v4958_v52  ;;  %v4976_v25 = vpack.c.bf16 %v2525_v47, %v2521_v46  ;;  %v2531_v52 = vld [vmem:[%s9683_s22 + $0x2e0] sm:$0xff]  ;;  %v2561_v46 = vld [vmem:[%s9683_s22 + $0x3d0] sm:$0xff] }
 0x9db   :  { %v4916_v53 = vpack.c.bf16 %v2531_v52, %v2527_v41  ;;  %v2565_v47 = vld [vmem:[%s9683_s22 + $0x3f0] sm:$0xff] }
 0x9dc   :  { %v4996_v27 = vpack.c.bf16 %v2565_v47, %v2561_v46  ;;  %v2829_v41 = vld [vmem:[%s9685_s24 + $0x50] sm:$0xff] }
 0x9dd   :  { %4961 = vmatpush1.bf16.msra.mxu1 %v4960_v55  ;;  %v2533_v55 = vld [vmem:[%s9683_s22 + $0x2f0] sm:$0xff]  ;;  %4917 = vmatpush1.bf16.msra.mxu0 %v4916_v53  ;;  %v5126_v52 = vpack.c.bf16 %v2829_v41, %v2822_v51  ;;  %v2836_v51 = vld [vmem:[%s9685_s24 + $0x88] sm:$0xff] }
 0x9de   :  { %4963 = vmatprep.subr.bf16.mxu1 %v4962_v63  ;;  %v4980_v56 = vpack.c.bf16 %v2533_v55, %v2529_v54  ;;  %v2539_v63 = vld [vmem:[%s9683_s22 + $0x320] sm:$0xff]  ;;  %4919 = vmatprep.subr.bf16.mxu0 %v4918_v60  ;;  %v2821_v47 = vld [vmem:[%s9685_s24 + $0x10] sm:$0xff] }
 0x9df   :  { %v4920_v2 = vpack.c.bf16 %v2539_v63, %v2535_v62 }
 0x9e1   :  { %4965 = vmatpush1.bf16.msra.mxu1 %v4964_v59  ;;  %v2541_v59 = vld [vmem:[%s9683_s22 + $0x330] sm:$0xff]  ;;  %4921 = vmatpush1.bf16.msra.mxu0 %v4920_v2 }
 0x9e2   :  { %4967 = vmatprep.subr.bf16.mxu1 %v4966_v12  ;;  %v4984_v5 = vpack.c.bf16 %v2541_v59, %v2537_v3  ;;  %v2543_v12 = vld [vmem:[%s9683_s22 + $0x340] sm:$0xff]  ;;  %4923 = vmatprep.subr.bf16.mxu0 %v4922_v10 }
 0x9e3   :  { %v4924_v14 = vpack.c.bf16 %v2547_v13, %v2543_v12 }
 0x9e5   :  { %4969 = vmatpush1.bf16.msra.mxu1 %v4968_v15  ;;  %v2549_v15 = vld [vmem:[%s9683_s22 + $0x370] sm:$0xff]  ;;  %4925 = vmatpush1.bf16.msra.mxu0 %v4924_v14 }
 0x9e6   :  { %4971 = vmatprep.subr.bf16.mxu1 %v4970_v22  ;;  %v4988_v17 = vpack.c.bf16 %v2549_v15, %v2545_v1  ;;  %v4990_v22 = vpack.c.bf16 %v2558_v20, %v2554_v19  ;;  %4927 = vmatprep.subr.bf16.mxu0 %v4926_v18 }
 0x9e9   :  { %4973 = vmatpush1.bf16.msra.mxu1 %v4972_v28  ;;  %v4928_v28 = vpack.c.bf16 %v2555_v23, %v2551_v21 }
 0x9ea   :  { %4975 = vmatprep.subr.bf16.mxu1 %v4974_v42  ;;  %v2563_v42 = vld [vmem:[%s9683_s22 + $0x3e0] sm:$0xff] }
 0x9eb   :  { %4929 = vmatpush1.bf16.msra.mxu0 %v4928_v28 }
 0x9ec   :  { %4931 = vmatprep.subr.bf16.mxu0 %v4930_v37 }
 0x9ed   :  { %4977 = vmatpush1.bf16.msra.mxu1 %v4976_v25  ;;  %v4932_v25 = vpack.c.bf16 %v2563_v42, %v2559_v39  ;;  %v2819_v39 = vld [vmem:[%s9685_s24] sm:$0xff]  ;;  %v2826_v42 = vld [vmem:[%s9685_s24 + $0x38] sm:$0xff] }
 0x9ee   :  { %4979 = vmatprep.subr.bf16.mxu1 %v4978_v44  ;;  %v2312_v44 = vld [vmem:[%s9682_s21] sm:$0x3] }
 0x9ef   :  { %4933 = vmatpush1.bf16.msra.mxu0 %v4932_v25  ;;  %v2317_v53 = vrot.slane %v2312_v44, %v7171_v31  ;;  %v2321_v54 = vrot.slane %v2312_v44, %v7179_v33  ;;  %v2828_v25 = vld [vmem:[%s9685_s24 + $0x48] sm:$0xff] }
 0x9f0   :  { %4999 = vmatprep.subr.bf16.mxu0 %v4998_v40  ;;  %v2843_v40 = vld [vmem:[%s9685_s24 + $0xc0] sm:$0xff]  ;;  %v5128_v44 = vpack.c.bf16 %v2828_v25, %v2821_v47  ;;  %v2889_v47 = vld [vmem:[%s9685_s24 + $0x230] sm:$0xff]  ;;  %v2896_v25 = vld [vmem:[%s9685_s24 + $0x268] sm:$0xff] }
 0x9f1   :  { %4981 = vmatpush1.bf16.msra.mxu1 %v4980_v56 }
 0x9f2   :  { %4983 = vmatprep.subr.bf16.mxu1 %v4982_v0 }
 0x9f5   :  { %4985 = vmatpush1.bf16.msra.mxu1 %v4984_v5 }
 0x9f6   :  { %4987 = vmatprep.subr.bf16.mxu1 %v4986_v11 }
 0x9f9   :  { %4989 = vmatpush1.bf16.msra.mxu1 %v4988_v17 }
 0x9fa   :  { %4991 = vmatprep.subr.bf16.mxu1 %v4990_v22 }
 0x9fd   :  { %4993 = vmatpush1.bf16.msra.mxu1 %v4992_v36 }
 0x9fe   :  { %4995 = vmatprep.subr.bf16.mxu1 %v4994_v43 }
 0xa01   :  { %4997 = vmatpush1.bf16.msra.mxu1 %v4996_v27  ;;  %v2834_v27 = vld [vmem:[%s9685_s24 + $0x78] sm:$0xff] }
 0xa02   :  { %5127 = vmatprep.subr.bf16.mxu1 %v5126_v52  ;;  %v5000_v52 = vpack.c.bf16 %v2826_v42, %v2819_v39  ;;  %v2892_v39 = vld [vmem:[%s9685_s24 + $0x248] sm:$0xff]  ;;  %v2899_v42 = vld [vmem:[%s9685_s24 + $0x280] sm:$0xff] }
 0xa97   :  { %v2390_v55 = vpop.f32.mrb[18].mxu1 }
 0xa98   :  { %v2391_v56 = vadd.f32 %v2390_v55, %v2317_v53  ;;  %v2392_v57 = vpop.f32.mrb[19].mxu1  ;;  %v2833_v53 = vld [vmem:[%s9685_s24 + $0x70] sm:$0xff] }
 0xa99   :  { %v2393_v58 = vadd.f32 %v2392_v57, %v2321_v54  ;;  %v2840_v54 = vld [vmem:[%s9685_s24 + $0xa8] sm:$0xff]  ;;  %v5130_v57 = vpack.c.bf16 %v2843_v40, %v2836_v51  ;;  %v2898_v51 = vld [vmem:[%s9685_s24 + $0x278] sm:$0xff] }
 0xa9a   :  { %v2395_v61 = vrot.slane %v2391_v56, 4  ;;  %v2409_v60 = vmul.f32 %v2391_v56, %v2391_v56  ;;  %v2904_v40 = vld [vmem:[%s9685_s24 + $0x2a8] sm:$0xff] }
 0xa9b   :  { %v2401_v32 = vrot.slane %v2393_v58, 4  ;;  %v2410_v62 = vmul.f32 %v2393_v58, %v2393_v58 }
 0xa9c   :  { %v2396_v63 = vadd.f32 %v2395_v61, %v2391_v56  ;;  %v2411_v0 = vrot.slane %v2409_v60, 4  ;;  %v2842_v61 = vld [vmem:[%s9685_s24 + $0xb8] sm:$0xff] }
 0xa9d   :  { %v2402_v2 = vadd.f32 %v2401_v32, %v2393_v58  ;;  %v2417_v3 = vrot.slane %v2410_v62, 4  ;;  %v2855_v32 = vld [vmem:[%s9685_s24 + $0x120] sm:$0xff] }
 0xa9e   :  { %v2397_v59 = vrot.slane %v2396_v63, 2  ;;  %v2412_v4 = vadd.f32 %v2411_v0, %v2409_v60  ;;  %v2848_v60 = vld [vmem:[%s9685_s24 + $0xe8] sm:$0xff]  ;;  %v5004_v0 = vpack.c.bf16 %v2840_v54, %v2833_v53  ;;  %v5020_v53 = vpack.c.bf16 %v2896_v25, %v2889_v47  ;;  %v2969_v25 = vld [vmem:[%s9685_s24 + $0x4b0] sm:$0xff] }
 0xa9f   :  { %v2403_v5 = vrot.slane %v2402_v2, 2  ;;  %v2418_v6 = vadd.f32 %v2417_v3, %v2410_v62  ;;  %v2850_v62 = vld [vmem:[%s9685_s24 + $0xf8] sm:$0xff]  ;;  %v2847_v3 = vld [vmem:[%s9685_s24 + $0xe0] sm:$0xff] }
 0xaa0   :  { %v2398_v8 = vadd.f32 %v2397_v59, %v2396_v63  ;;  %v2413_v9 = vrot.slane %v2412_v4, 2  ;;  %v2857_v63 = vld [vmem:[%s9685_s24 + $0x130] sm:$0xff]  ;;  %v2854_v59 = vld [vmem:[%s9685_s24 + $0x118] sm:$0xff] }
 0xaa1   :  { %v2404_v10 = vadd.f32 %v2403_v5, %v2402_v2  ;;  %v2419_v11 = vrot.slane %v2418_v6, 2  ;;  %v5134_v5 = vpack.c.bf16 %v2857_v63, %v2850_v62  ;;  %v2918_v63 = vld [vmem:[%s9685_s24 + $0x318] sm:$0xff] }
 0xaa2   :  { %v2399_v12 = vrot.slane %v2398_v8, 1  ;;  %v2414_v13 = vadd.f32 %v2413_v9, %v2412_v4  ;;  %v5006_v4 = vpack.c.bf16 %v2855_v32, %v2848_v60  ;;  %v2862_v9 = vld [vmem:[%s9685_s24 + $0x158] sm:$0xff]  ;;  %v2912_v32 = vld [vmem:[%s9685_s24 + $0x2e8] sm:$0xff] }
 0xaa3   :  { %v2420_v1 = vadd.f32 %v2419_v11, %v2418_v6  ;;  %v2405_v14 = vrot.slane %v2404_v10, 1  ;;  %v2849_v6 = vld [vmem:[%s9685_s24 + $0xf0] sm:$0xff]  ;;  %v2864_v11 = vld [vmem:[%s9685_s24 + $0x168] sm:$0xff] }
 0xaa4   :  { %v2400_v15 = vadd.f32 %v2399_v12, %v2398_v8  ;;  %v2415_v16 = vrot.slane %v2414_v13, 1  ;;  %v2856_v8 = vld [vmem:[%s9685_s24 + $0x128] sm:$0xff]  ;;  %v2871_v12 = vld [vmem:[%s9685_s24 + $0x1a0] sm:$0xff] }
 0xaa5   :  { %v2421_v7 = vrot.slane %v2420_v1, 1  ;;  %v2406_v17 = vadd.f32 %v2405_v14, %v2404_v10  ;;  %v2869_v10 = vld [vmem:[%s9685_s24 + $0x190] sm:$0xff] }
 0xaa6   :  { %v2407_v18 = vmul.f32 0.125, %v2400_v15  ;;  %v2416_v19 = vadd.f32 %v2415_v16, %v2414_v13  ;;  %v5008_v13 = vpack.c.bf16 %v2854_v59, %v2847_v3  ;;  %v2861_v14 = vld [vmem:[%s9685_s24 + $0x150] sm:$0xff]  ;;  %v2868_v15 = vld [vmem:[%s9685_s24 + $0x188] sm:$0xff]  ;;  %v5010_v16 = vpack.c.bf16 %v2869_v10, %v2862_v9  ;;  %v2927_v59 = vld [vmem:[%s9685_s24 + $0x360] sm:$0xff] }
 0xaa7   :  { %v2422_v20 = vadd.f32 %v2421_v7, %v2420_v1  ;;  %v2408_v21 = vmul.f32 0.125, %v2406_v17  ;;  %v5136_v1 = vpack.c.bf16 %v2856_v8, %v2849_v6  ;;  %v5138_v7 = vpack.c.bf16 %v2871_v12, %v2864_v11  ;;  %v2863_v17 = vld [vmem:[%s9685_s24 + $0x160] sm:$0xff]  ;;  %v2926_v10 = vld [vmem:[%s9685_s24 + $0x358] sm:$0xff]  ;;  %v2932_v12 = vld [vmem:[%s9685_s24 + $0x388] sm:$0xff] }
 0xaa8   :  { %v2423_v22 = vmul.f32 0.125, %v2416_v19  ;;  %v2425_v23 = vmul.f32 %v2407_v18, %v2407_v18  ;;  %v2429_v36 = vsub.f32 %v2391_v56, %v2407_v18  ;;  %v5002_v56 = vpack.c.bf16 %v2841_v50, %v2834_v27  ;;  %v2870_v18 = vld [vmem:[%s9685_s24 + $0x198] sm:$0xff]  ;;  %v2876_v19 = vld [vmem:[%s9685_s24 + $0x1c8] sm:$0xff]  ;;  %v2891_v50 = vld [vmem:[%s9685_s24 + $0x240] sm:$0xff] }
 0xaa9   :  { %v2424_v24 = vmul.f32 0.125, %v2422_v20  ;;  %v2426_v26 = vmul.f32 %v2408_v21, %v2408_v21  ;;  %v2430_v38 = vsub.f32 %v2393_v58, %v2408_v21  ;;  %v2835_v58 = vld [vmem:[%s9685_s24 + $0x80] sm:$0xff]  ;;  %v2878_v21 = vld [vmem:[%s9685_s24 + $0x1d8] sm:$0xff]  ;;  %v5148_v54 = vpack.c.bf16 %v2898_v51, %v2891_v50 }
 0xaaa   :  { %v2427_v28 = vsub.f32 %v2423_v22, %v2425_v23  ;;  %v5132_v2 = vpack.c.bf16 %v2842_v61, %v2835_v58  ;;  %v2883_v20 = vld [vmem:[%s9685_s24 + $0x200] sm:$0xff]  ;;  %v2885_v22 = vld [vmem:[%s9685_s24 + $0x210] sm:$0xff]  ;;  %v5012_v23 = vpack.c.bf16 %v2868_v15, %v2861_v14  ;;  %v2910_v58 = vld [vmem:[%s9685_s24 + $0x2d8] sm:$0xff] }
 0xaab   :  { %v2428_v29 = vsub.f32 %v2424_v24, %v2426_v26  ;;  %v5140_v24 = vpack.c.bf16 %v2870_v18, %v2863_v17  ;;  %v2875_v26 = vld [vmem:[%s9685_s24 + $0x1c0] sm:$0xff]  ;;  %v2905_v61 = vld [vmem:[%s9685_s24 + $0x2b0] sm:$0xff] }
 0xaac   :  { %v2431_v34 = vadd.f32 1e-05, %v2427_v28  ;;  %v2882_v28 = vld [vmem:[%s9685_s24 + $0x1f8] sm:$0xff]  ;;  %v5152_v62 = vpack.c.bf16 %v2912_v32, %v2905_v61  ;;  %v2919_v9 = vld [vmem:[%s9685_s24 + $0x320] sm:$0xff]  ;;  %v2941_v15 = vld [vmem:[%s9685_s24 + $0x3d0] sm:$0xff] }
 0xaad   :  { %v2432_v35 = vadd.f32 1e-05, %v2428_v29  ;;  %v5014_v29 = vpack.c.bf16 %v2883_v20, %v2876_v19  ;;  %v5156_v11 = vpack.c.bf16 %v2926_v10, %v2919_v9  ;;  %v2933_v19 = vld [vmem:[%s9685_s24 + $0x390] sm:$0xff]  ;;  %v2940_v20 = vld [vmem:[%s9685_s24 + $0x3c8] sm:$0xff]  ;;  %v2975_v32 = vld [vmem:[%s9685_s24 + $0x4e0] sm:$0xff] }
 0xaae   :  { %5507 = vrsqrt.f32 %v2431_v34  ;;  %v5142_v34 = vpack.c.bf16 %v2885_v22, %v2878_v21  ;;  %v5160_v21 = vpack.c.bf16 %v2940_v20, %v2933_v19  ;;  %v2946_v22 = vld [vmem:[%s9685_s24 + $0x3f8] sm:$0xff]  ;;  %v2989_v10 = vld [vmem:[%s9685_s24 + $0x550] sm:$0xff]  ;;  %v3003_v20 = vld [vmem:[%s9685_s24 + $0x5c0] sm:$0xff] }
 0xaaf   :  { %5509 = vrsqrt.f32 %v2432_v35  ;;  %v2877_v35 = vld [vmem:[%s9685_s24 + $0x1d0] sm:$0xff] }
 0xab8   :  { %v5508_v37 = vpop.eup %5507 }
 0xab9   :  { %v5510_v43 = vpop.eup %5509  ;;  %v2435_v46 = vmul.f32 %v5508_v37, %v2429_v36  ;;  %v2884_v36 = vld [vmem:[%s9685_s24 + $0x208] sm:$0xff]  ;;  %v2890_v37 = vld [vmem:[%s9685_s24 + $0x238] sm:$0xff] }
 0xaba   :  { %v2436_v49 = vmul.f32 %v5510_v43, %v2430_v38  ;;  %v2897_v38 = vld [vmem:[%s9685_s24 + $0x270] sm:$0xff]  ;;  %v5016_v43 = vpack.c.bf16 %v2882_v28, %v2875_v26  ;;  %v2955_v28 = vld [vmem:[%s9685_s24 + $0x440] sm:$0xff] }
 0xabb   :  { %v2437_v55 = vmax.f32 %v2435_v46, 0.0  ;;  %v5144_v46 = vpack.c.bf16 %v2884_v36, %v2877_v35  ;;  %v5018_v27 = vpack.c.bf16 %v2897_v38, %v2890_v37  ;;  %v2947_v37 = vld [vmem:[%s9685_s24 + $0x400] sm:$0xff]  ;;  %v2954_v38 = vld [vmem:[%s9685_s24 + $0x438] sm:$0xff] }
 0xabc   :  { %v2438_v41 = vmax.f32 %v2436_v49, 0.0  ;;  %v5146_v49 = vpack.c.bf16 %v2899_v42, %v2892_v39  ;;  %v5164_v39 = vpack.c.bf16 %v2954_v38, %v2947_v37  ;;  %v2960_v42 = vld [vmem:[%s9685_s24 + $0x468] sm:$0xff]  ;;  %v3017_v37 = vld [vmem:[%s9685_s24 + $0x630] sm:$0xff] }
 0xabe   :  { %2653 = vmatprep.mubr.f32.mxu0 %v2438_v41  ;;  %2724 = vmatprep.mubr.f32.mxu1 %v2438_v41  ;;  %v2911_v41 = vld [vmem:[%s9685_s24 + $0x2e0] sm:$0xff] }
 0xabf   :  { %2654 = vmatmul.mubr.f32.vlgmr.msra.gmra.mrb[4].mxu0 %v2437_v55  ;;  %2725 = vmatmul.mubr.f32.vlgmr.msra.gmra.mrb[20].mxu1 %v2437_v55  ;;  %v5022_v55 = vpack.c.bf16 %v2911_v41, %v2904_v40  ;;  %v2961_v40 = vld [vmem:[%s9685_s24 + $0x470] sm:$0xff]  ;;  %v2968_v41 = vld [vmem:[%s9685_s24 + $0x4a8] sm:$0xff] }
 0xac0   :  { %5001 = vmatpush1.bf16.msra.mxu0 %v5000_v52  ;;  %5129 = vmatpush1.bf16.msra.mxu1 %v5128_v44  ;;  %v2906_v52 = vld [vmem:[%s9685_s24 + $0x2b8] sm:$0xff]  ;;  %v2913_v44 = vld [vmem:[%s9685_s24 + $0x2f0] sm:$0xff] }
 0xac1   :  { %5003 = vmatprep.subr.bf16.mxu0 %v5002_v56  ;;  %5131 = vmatprep.subr.bf16.mxu1 %v5130_v57  ;;  %v5150_v56 = vpack.c.bf16 %v2913_v44, %v2906_v52  ;;  %v2903_v57 = vld [vmem:[%s9685_s24 + $0x2a0] sm:$0xff]  ;;  %v5168_v52 = vpack.c.bf16 %v2968_v41, %v2961_v40  ;;  %v2974_v44 = vld [vmem:[%s9685_s24 + $0x4d8] sm:$0xff] }
 0xac2   :  { %v5024_v60 = vpack.c.bf16 %v2910_v58, %v2903_v57  ;;  %v2973_v57 = vld [vmem:[%s9685_s24 + $0x4d0] sm:$0xff]  ;;  %v2980_v58 = vld [vmem:[%s9685_s24 + $0x508] sm:$0xff]  ;;  %v3031_v40 = vld [vmem:[%s9685_s24 + $0x6a0] sm:$0xff] }
 0xac3   :  { %v3038_v41 = vld [vmem:[%s9685_s24 + $0x6d8] sm:$0xff] }
 0xac4   :  { %5005 = vmatpush1.bf16.msra.mxu0 %v5004_v0  ;;  %5133 = vmatpush1.bf16.msra.mxu1 %v5132_v2  ;;  %v2925_v0 = vld [vmem:[%s9685_s24 + $0x350] sm:$0xff]  ;;  %v2920_v2 = vld [vmem:[%s9685_s24 + $0x328] sm:$0xff] }
 0xac5   :  { %5007 = vmatprep.subr.bf16.mxu0 %v5006_v4  ;;  %5135 = vmatprep.subr.bf16.mxu1 %v5134_v5  ;;  %v5026_v3 = vpack.c.bf16 %v2925_v0, %v2918_v63  ;;  %v2917_v4 = vld [vmem:[%s9685_s24 + $0x310] sm:$0xff]  ;;  %v2924_v5 = vld [vmem:[%s9685_s24 + $0x348] sm:$0xff]  ;;  %v5154_v6 = vpack.c.bf16 %v2927_v59, %v2920_v2  ;;  %v2995_v2 = vld [vmem:[%s9685_s24 + $0x580] sm:$0xff] }
 0xac6   :  { %v5028_v8 = vpack.c.bf16 %v2924_v5, %v2917_v4  ;;  %v2988_v0 = vld [vmem:[%s9685_s24 + $0x548] sm:$0xff]  ;;  %v2997_v4 = vld [vmem:[%s9685_s24 + $0x590] sm:$0xff]  ;;  %v2987_v5 = vld [vmem:[%s9685_s24 + $0x540] sm:$0xff] }
 0xac7   :  { %v5046_v59 = vpack.c.bf16 %v2995_v2, %v2988_v0 }
 0xac8   :  { %5009 = vmatpush1.bf16.msra.mxu0 %v5008_v13  ;;  %5137 = vmatpush1.bf16.msra.mxu1 %v5136_v1  ;;  %v2939_v13 = vld [vmem:[%s9685_s24 + $0x3c0] sm:$0xff]  ;;  %v2934_v1 = vld [vmem:[%s9685_s24 + $0x398] sm:$0xff] }
 0xac9   :  { %5011 = vmatprep.subr.bf16.mxu0 %v5010_v16  ;;  %5139 = vmatprep.subr.bf16.mxu1 %v5138_v7  ;;  %v5030_v14 = vpack.c.bf16 %v2939_v13, %v2932_v12  ;;  %v2931_v16 = vld [vmem:[%s9685_s24 + $0x380] sm:$0xff]  ;;  %v2938_v7 = vld [vmem:[%s9685_s24 + $0x3b8] sm:$0xff]  ;;  %v5158_v17 = vpack.c.bf16 %v2941_v15, %v2934_v1  ;;  %v3009_v1 = vld [vmem:[%s9685_s24 + $0x5f0] sm:$0xff] }
 0xaca   :  { %v5032_v18 = vpack.c.bf16 %v2938_v7, %v2931_v16  ;;  %v3002_v13 = vld [vmem:[%s9685_s24 + $0x5b8] sm:$0xff]  ;;  %v3011_v16 = vld [vmem:[%s9685_s24 + $0x600] sm:$0xff]  ;;  %v3001_v7 = vld [vmem:[%s9685_s24 + $0x5b0] sm:$0xff] }
 0xacb   :  { %v5050_v15 = vpack.c.bf16 %v3009_v1, %v3002_v13 }
 0xacc   :  { %5013 = vmatpush1.bf16.msra.mxu0 %v5012_v23  ;;  %5141 = vmatpush1.bf16.msra.mxu1 %v5140_v24  ;;  %v2953_v23 = vld [vmem:[%s9685_s24 + $0x430] sm:$0xff]  ;;  %v2948_v24 = vld [vmem:[%s9685_s24 + $0x408] sm:$0xff] }
 0xacd   :  { %5015 = vmatprep.subr.bf16.mxu0 %v5014_v29  ;;  %5143 = vmatprep.subr.bf16.mxu1 %v5142_v34  ;;  %v5034_v26 = vpack.c.bf16 %v2953_v23, %v2946_v22  ;;  %v2945_v29 = vld [vmem:[%s9685_s24 + $0x3f0] sm:$0xff]  ;;  %v2952_v34 = vld [vmem:[%s9685_s24 + $0x428] sm:$0xff]  ;;  %v5162_v35 = vpack.c.bf16 %v2955_v28, %v2948_v24  ;;  %v3023_v24 = vld [vmem:[%s9685_s24 + $0x660] sm:$0xff] }
 0xace   :  { %v5036_v36 = vpack.c.bf16 %v2952_v34, %v2945_v29  ;;  %v3016_v22 = vld [vmem:[%s9685_s24 + $0x628] sm:$0xff]  ;;  %v3025_v28 = vld [vmem:[%s9685_s24 + $0x670] sm:$0xff] }
 0xacf   :  { %v5054_v29 = vpack.c.bf16 %v3023_v24, %v3016_v22 }
 0xad0   :  { %5017 = vmatpush1.bf16.msra.mxu0 %v5016_v43  ;;  %5145 = vmatpush1.bf16.msra.mxu1 %v5144_v46  ;;  %v2967_v43 = vld [vmem:[%s9685_s24 + $0x4a0] sm:$0xff]  ;;  %v2962_v46 = vld [vmem:[%s9685_s24 + $0x478] sm:$0xff] }
 0xad1   :  { %5019 = vmatprep.subr.bf16.mxu0 %v5018_v27  ;;  %5147 = vmatprep.subr.bf16.mxu1 %v5146_v49  ;;  %v5038_v47 = vpack.c.bf16 %v2967_v43, %v2960_v42  ;;  %v2959_v27 = vld [vmem:[%s9685_s24 + $0x460] sm:$0xff]  ;;  %v2966_v49 = vld [vmem:[%s9685_s24 + $0x498] sm:$0xff]  ;;  %v5166_v50 = vpack.c.bf16 %v2969_v25, %v2962_v46  ;;  %v3037_v43 = vld [vmem:[%s9685_s24 + $0x6d0] sm:$0xff] }
 0xad2   :  { %v5040_v51 = vpack.c.bf16 %v2966_v49, %v2959_v27  ;;  %v3030_v42 = vld [vmem:[%s9685_s24 + $0x698] sm:$0xff]  ;;  %v3032_v25 = vld [vmem:[%s9685_s24 + $0x6a8] sm:$0xff]  ;;  %v3039_v27 = vld [vmem:[%s9685_s24 + $0x6e0] sm:$0xff] }
 0xad3   :  { %v3029_v49 = vld [vmem:[%s9685_s24 + $0x690] sm:$0xff] }
 0xad4   :  { %5021 = vmatpush1.bf16.msra.mxu0 %v5020_v53  ;;  %5149 = vmatpush1.bf16.msra.mxu1 %v5148_v54  ;;  %v2981_v53 = vld [vmem:[%s9685_s24 + $0x510] sm:$0xff]  ;;  %v2976_v54 = vld [vmem:[%s9685_s24 + $0x4e8] sm:$0xff] }
 0xad5   :  { %5023 = vmatprep.subr.bf16.mxu0 %v5022_v55  ;;  %5151 = vmatprep.subr.bf16.mxu1 %v5150_v56  ;;  %v5042_v55 = vpack.c.bf16 %v2981_v53, %v2974_v44  ;;  %v2983_v56 = vld [vmem:[%s9685_s24 + $0x520] sm:$0xff]  ;;  %v5188_v44 = vpack.c.bf16 %v3038_v41, %v3031_v40  ;;  %v3044_v53 = vld [vmem:[%s9685_s24 + $0x708] sm:$0xff] }
 0xad6   :  { %v5170_v61 = vpack.c.bf16 %v2983_v56, %v2976_v54  ;;  %v3051_v54 = vld [vmem:[%s9685_s24 + $0x740] sm:$0xff] }
 0xad7   :  { %v5062_v56 = vpack.c.bf16 %v3051_v54, %v3044_v53 }
 0xad8   :  { %5025 = vmatpush1.bf16.msra.mxu0 %v5024_v60  ;;  %5153 = vmatpush1.bf16.msra.mxu1 %v5152_v62  ;;  %v5044_v60 = vpack.c.bf16 %v2980_v58, %v2973_v57  ;;  %v2982_v62 = vld [vmem:[%s9685_s24 + $0x518] sm:$0xff]  ;;  %v3053_v57 = vld [vmem:[%s9685_s24 + $0x750] sm:$0xff] }
 0xad9   :  { %5027 = vmatprep.subr.bf16.mxu0 %v5026_v3  ;;  %5155 = vmatprep.subr.bf16.mxu1 %v5154_v6  ;;  %v5172_v63 = vpack.c.bf16 %v2982_v62, %v2975_v32  ;;  %v2990_v3 = vld [vmem:[%s9685_s24 + $0x558] sm:$0xff] }
 0xada   :  { %v2994_v6 = vld [vmem:[%s9685_s24 + $0x578] sm:$0xff] }
 0xadb   :  { %v5048_v9 = vpack.c.bf16 %v2994_v6, %v2987_v5 }
 0xadc   :  { %5029 = vmatpush1.bf16.msra.mxu0 %v5028_v8  ;;  %5157 = vmatpush1.bf16.msra.mxu1 %v5156_v11  ;;  %v5174_v8 = vpack.c.bf16 %v2997_v4, %v2990_v3  ;;  %v2996_v11 = vld [vmem:[%s9685_s24 + $0x588] sm:$0xff] }
 0xadd   :  { %5031 = vmatprep.subr.bf16.mxu0 %v5030_v14  ;;  %5159 = vmatprep.subr.bf16.mxu1 %v5158_v17  ;;  %v5176_v12 = vpack.c.bf16 %v2996_v11, %v2989_v10  ;;  %v3004_v14 = vld [vmem:[%s9685_s24 + $0x5c8] sm:$0xff] }
 0xade   :  { %v3008_v17 = vld [vmem:[%s9685_s24 + $0x5e8] sm:$0xff] }
 0xadf   :  { %v5052_v19 = vpack.c.bf16 %v3008_v17, %v3001_v7 }
 0xae0   :  { %5033 = vmatpush1.bf16.msra.mxu0 %v5032_v18  ;;  %5161 = vmatpush1.bf16.msra.mxu1 %v5160_v21  ;;  %v5178_v18 = vpack.c.bf16 %v3011_v16, %v3004_v14  ;;  %v3010_v21 = vld [vmem:[%s9685_s24 + $0x5f8] sm:$0xff] }
 0xae1   :  { %5035 = vmatprep.subr.bf16.mxu0 %v5034_v26  ;;  %5163 = vmatprep.subr.bf16.mxu1 %v5162_v35  ;;  %v5180_v23 = vpack.c.bf16 %v3010_v21, %v3003_v20  ;;  %v3018_v26 = vld [vmem:[%s9685_s24 + $0x638] sm:$0xff]  ;;  %v3015_v35 = vld [vmem:[%s9685_s24 + $0x620] sm:$0xff] }
 0xae2   :  { %v5182_v34 = vpack.c.bf16 %v3025_v28, %v3018_v26 }
 0xae4   :  { %5037 = vmatpush1.bf16.msra.mxu0 %v5036_v36  ;;  %5165 = vmatpush1.bf16.msra.mxu1 %v5164_v39  ;;  %v3022_v36 = vld [vmem:[%s9685_s24 + $0x658] sm:$0xff]  ;;  %v3024_v39 = vld [vmem:[%s9685_s24 + $0x668] sm:$0xff] }
 0xae5   :  { %5039 = vmatprep.subr.bf16.mxu0 %v5038_v47  ;;  %5167 = vmatprep.subr.bf16.mxu1 %v5166_v50  ;;  %v5056_v38 = vpack.c.bf16 %v3022_v36, %v3015_v35  ;;  %v5184_v46 = vpack.c.bf16 %v3024_v39, %v3017_v37  ;;  %v5058_v47 = vpack.c.bf16 %v3037_v43, %v3030_v42 }
 0xae6   :  { %v5186_v50 = vpack.c.bf16 %v3039_v27, %v3032_v25 }
 0xae8   :  { %5041 = vmatpush1.bf16.msra.mxu0 %v5040_v51  ;;  %5169 = vmatpush1.bf16.msra.mxu1 %v5168_v52  ;;  %v3036_v51 = vld [vmem:[%s9685_s24 + $0x6c8] sm:$0xff] }
 0xae9   :  { %5043 = vmatprep.subr.bf16.mxu0 %v5042_v55  ;;  %5171 = vmatprep.subr.bf16.mxu1 %v5170_v61  ;;  %v5060_v52 = vpack.c.bf16 %v3036_v51, %v3029_v49  ;;  %v3046_v55 = vld [vmem:[%s9685_s24 + $0x718] sm:$0xff]  ;;  %v8599_v61 = vld [vmem:[%s9684_s23] sm:$0xf] }
 0xaea   :  { %v5190_v58 = vpack.c.bf16 %v3053_v57, %v3046_v55  ;;  %v2576_v32 = vrot.slane %v8599_v61, %v7179_v33  ;;  %v2584_v62 = vrot.slane %v8599_v61, %v7199_v48 }
 0xaec   :  { %5045 = vmatpush1.bf16.msra.mxu0 %v5044_v60  ;;  %5173 = vmatpush1.bf16.msra.mxu1 %v5172_v63  ;;  %v2572_v60 = vrot.slane %v8599_v61, %v7171_v31 }
 0xaed   :  { %5047 = vmatprep.subr.bf16.mxu0 %v5046_v59  ;;  %5175 = vmatprep.subr.bf16.mxu1 %v5174_v8 }
 0xaf0   :  { %5049 = vmatpush1.bf16.msra.mxu0 %v5048_v9  ;;  %5177 = vmatpush1.bf16.msra.mxu1 %v5176_v12 }
 0xaf1   :  { %5051 = vmatprep.subr.bf16.mxu0 %v5050_v15  ;;  %5179 = vmatprep.subr.bf16.mxu1 %v5178_v18 }
 0xaf4   :  { %5053 = vmatpush1.bf16.msra.mxu0 %v5052_v19  ;;  %5181 = vmatpush1.bf16.msra.mxu1 %v5180_v23 }
 0xaf5   :  { %5055 = vmatprep.subr.bf16.mxu0 %v5054_v29  ;;  %5183 = vmatprep.subr.bf16.mxu1 %v5182_v34 }
 0xaf8   :  { %5057 = vmatpush1.bf16.msra.mxu0 %v5056_v38  ;;  %5185 = vmatpush1.bf16.msra.mxu1 %v5184_v46 }
 0xaf9   :  { %5059 = vmatprep.subr.bf16.mxu0 %v5058_v47  ;;  %5187 = vmatprep.subr.bf16.mxu1 %v5186_v50 }
 0xafc   :  { %5061 = vmatpush1.bf16.msra.mxu0 %v5060_v52  ;;  %5189 = vmatpush1.bf16.msra.mxu1 %v5188_v44 }
 0xafd   :  { %5063 = vmatprep.subr.bf16.mxu0 %v5062_v56  ;;  %5191 = vmatprep.subr.bf16.mxu1 %v5190_v58 }
 0xb92   :  { %v2655_v63 = vpop.f32.mrb[4].mxu0  ;;  %v8607_v0 = vpop.f32.mrb[20].mxu1 }
 0xb93   :  { %v8609_v2 = vadd.f32 %v2655_v63, %v2572_v60  ;;  %v2657_v3 = vpop.f32.mrb[5].mxu0  ;;  %v2728_v59 = vpop.f32.mrb[21].mxu1 }
 0xb94   :  { %v8611_v4 = vadd.f32 %v2657_v3, %v2576_v32  ;;  %v8613_v5 = vadd.f32 %v2728_v59, %v2584_v62 }
 0xb95   :  { %v2731_v6 = vrot.slane %v8609_v2, 4  ;;  %v2759_v8 = vmul.f32 %v8609_v2, %v8609_v2 }
 0xb96   :  { %v2737_v9 = vrot.slane %v8611_v4, 4  ;;  %v2760_v10 = vmul.f32 %v8611_v4, %v8611_v4  ;;  %v2749_v11 = vrot.slane %v8613_v5, 4  ;;  %v2762_v12 = vmul.f32 %v8613_v5, %v8613_v5 }
 0xb97   :  { %v2732_v13 = vadd.f32 %v2731_v6, %v8609_v2  ;;  %v2763_v1 = vrot.slane %v2759_v8, 4 }
 0xb98   :  { %v2738_v14 = vadd.f32 %v2737_v9, %v8611_v4  ;;  %v2769_v15 = vrot.slane %v2760_v10, 4  ;;  %v2750_v16 = vadd.f32 %v2749_v11, %v8613_v5  ;;  %v2781_v7 = vrot.slane %v2762_v12, 4 }
 0xb99   :  { %v2733_v17 = vrot.slane %v2732_v13, 2  ;;  %v2764_v18 = vadd.f32 %v2763_v1, %v2759_v8  ;;  %v3050_v1 = vld [vmem:[%s9685_s24 + $0x738] sm:$0xff] }
 0xb9a   :  { %v2739_v19 = vrot.slane %v2738_v14, 2  ;;  %v2770_v20 = vadd.f32 %v2769_v15, %v2760_v10  ;;  %v2751_v21 = vrot.slane %v2750_v16, 2  ;;  %v2782_v22 = vadd.f32 %v2781_v7, %v2762_v12  ;;  %v3043_v10 = vld [vmem:[%s9685_s24 + $0x700] sm:$0xff]  ;;  %v3065_v7 = vld [vmem:[%s9685_s24 + $0x7b0] sm:$0xff] }
 0xb9b   :  { %v2734_v23 = vadd.f32 %v2733_v17, %v2732_v13  ;;  %v2765_v24 = vrot.slane %v2764_v18, 2  ;;  %v3060_v17 = vld [vmem:[%s9685_s24 + $0x788] sm:$0xff] }
 0xb9c   :  { %v2740_v26 = vadd.f32 %v2739_v19, %v2738_v14  ;;  %v2771_v28 = vrot.slane %v2770_v20, 2  ;;  %v2752_v29 = vadd.f32 %v2751_v21, %v2750_v16  ;;  %v2783_v34 = vrot.slane %v2782_v22, 2  ;;  %v3045_v14 = vld [vmem:[%s9685_s24 + $0x710] sm:$0xff]  ;;  %v3058_v16 = vld [vmem:[%s9685_s24 + $0x778] sm:$0xff] }
 0xb9d   :  { %v2735_v35 = vrot.slane %v2734_v23, 1  ;;  %v2766_v36 = vadd.f32 %v2765_v24, %v2764_v18  ;;  %v3067_v18 = vld [vmem:[%s9685_s24 + $0x7c0] sm:$0xff]  ;;  %v2580_v19 = vrot.slane %v8599_v61, %v7214_v45  ;;  %v5064_v21 = vpack.c.bf16 %v3050_v1, %v3043_v10  ;;  %v3064_v24 = vld [vmem:[%s9685_s24 + $0x7a8] sm:$0xff]  ;;  %v3066_v61 = vld [vmem:[%s9685_s24 + $0x7b8] sm:$0xff] }
 0xb9e   :  { %v2741_v37 = vrot.slane %v2740_v26, 1  ;;  %v2772_v38 = vadd.f32 %v2771_v28, %v2770_v20  ;;  %v2753_v39 = vrot.slane %v2752_v29, 1  ;;  %v2784_v42 = vadd.f32 %v2783_v34, %v2782_v22  ;;  %v3059_v28 = vld [vmem:[%s9685_s24 + $0x780] sm:$0xff] }
 0xb9f   :  { %v2736_v43 = vadd.f32 %v2735_v35, %v2734_v23  ;;  %v2767_v46 = vrot.slane %v2766_v36, 1  ;;  %v3057_v23 = vld [vmem:[%s9685_s24 + $0x770] sm:$0xff]  ;;  %v5066_v34 = vpack.c.bf16 %v3065_v7, %v3058_v16  ;;  %v5194_v35 = vpack.c.bf16 %v3067_v18, %v3060_v17  ;;  %v3123_v7 = vld [vmem:[%s9685_s24 + $0x980] sm:$0xff] }
 0xba0   :  { %v2742_v47 = vadd.f32 %v2741_v37, %v2740_v26  ;;  %v2773_v25 = vrot.slane %v2772_v38, 1  ;;  %v2754_v27 = vadd.f32 %v2753_v39, %v2752_v29  ;;  %v2785_v49 = vrot.slane %v2784_v42, 1  ;;  %v3072_v29 = vld [vmem:[%s9685_s24 + $0x7e8] sm:$0xff]  ;;  %v3074_v37 = vld [vmem:[%s9685_s24 + $0x7f8] sm:$0xff]  ;;  %v3121_v16 = vld [vmem:[%s9685_s24 + $0x970] sm:$0xff] }
 0xba1   :  { %v2755_v50 = vmul.f32 0.125, %v2736_v43  ;;  %v2768_v51 = vadd.f32 %v2767_v46, %v2766_v36  ;;  %v3079_v36 = vld [vmem:[%s9685_s24 + $0x820] sm:$0xff]  ;;  %v5068_v43 = vpack.c.bf16 %v3064_v24, %v3057_v23  ;;  %v5196_v46 = vpack.c.bf16 %v3066_v61, %v3059_v28  ;;  %v3120_v23 = vld [vmem:[%s9685_s24 + $0x968] sm:$0xff] }
 0xba2   :  { %v2756_v40 = vmul.f32 0.125, %v2742_v47  ;;  %v2774_v41 = vadd.f32 %v2773_v25, %v2772_v38  ;;  %v2758_v52 = vmul.f32 0.125, %v2754_v27  ;;  %v2786_v44 = vadd.f32 %v2785_v49, %v2784_v42  ;;  %v3081_v38 = vld [vmem:[%s9685_s24 + $0x830] sm:$0xff]  ;;  %v3071_v47 = vld [vmem:[%s9685_s24 + $0x7e0] sm:$0xff]  ;;  %v3078_v25 = vld [vmem:[%s9685_s24 + $0x818] sm:$0xff] }
 0xba3   :  { %v2787_v53 = vmul.f32 0.125, %v2768_v51  ;;  %v2791_v54 = vmul.f32 %v2755_v50, %v2755_v50  ;;  %v2799_v8 = vsub.f32 %v8609_v2, %v2755_v50  ;;  %v3052_v2 = vld [vmem:[%s9685_s24 + $0x748] sm:$0xff]  ;;  %v8691_v42 = vadd.f32 %v8607_v0, %v2580_v19  ;;  %v3073_v0 = vld [vmem:[%s9685_s24 + $0x7f0] sm:$0xff]  ;;  %v3086_v51 = vld [vmem:[%s9685_s24 + $0x858] sm:$0xff] }
 0xba4   :  { %v2788_v55 = vmul.f32 0.125, %v2774_v41  ;;  %v2792_v56 = vmul.f32 %v2756_v40, %v2756_v40  ;;  %v2790_v58 = vmul.f32 0.125, %v2786_v44  ;;  %v2794_v60 = vmul.f32 %v2758_v52, %v2758_v52  ;;  %v3080_v50 = vld [vmem:[%s9685_s24 + $0x828] sm:$0xff]  ;;  %v3115_v61 = vld [vmem:[%s9685_s24 + $0x940] sm:$0xff] }
 0xba5   :  { %v2795_v57 = vsub.f32 %v2787_v53, %v2791_v54  ;;  %v2800_v9 = vsub.f32 %v8611_v4, %v2756_v40  ;;  %v2802_v12 = vsub.f32 %v8613_v5, %v2758_v52  ;;  %v5192_v22 = vpack.c.bf16 %v3052_v2, %v3045_v14  ;;  %v3093_v40 = vld [vmem:[%s9685_s24 + $0x890] sm:$0xff]  ;;  %v3088_v41 = vld [vmem:[%s9685_s24 + $0x868] sm:$0xff]  ;;  %v3095_v52 = vld [vmem:[%s9685_s24 + $0x8a0] sm:$0xff] }
 0xba6   :  { %v2796_v32 = vsub.f32 %v2788_v55, %v2792_v56  ;;  %v2798_v63 = vsub.f32 %v2790_v58, %v2794_v60  ;;  %v5070_v27 = vpack.c.bf16 %v3079_v36, %v3072_v29  ;;  %v5198_v49 = vpack.c.bf16 %v3081_v38, %v3074_v37  ;;  %v3085_v56 = vld [vmem:[%s9685_s24 + $0x850] sm:$0xff]  ;;  %v3122_v29 = vld [vmem:[%s9685_s24 + $0x978] sm:$0xff] }
 0xba7   :  { %v2803_v62 = vadd.f32 1e-05, %v2795_v57  ;;  %v2743_v44 = vrot.slane %v8691_v42, 4  ;;  %v2761_v53 = vmul.f32 %v8691_v42, %v8691_v42  ;;  %v5072_v54 = vpack.c.bf16 %v3078_v25, %v3071_v47  ;;  %v3092_v57 = vld [vmem:[%s9685_s24 + $0x888] sm:$0xff]  ;;  %v3101_v2 = vld [vmem:[%s9685_s24 + $0x8d0] sm:$0xff]  ;;  %v3130_v36 = vld [vmem:[%s9685_s24 + $0x9b8] sm:$0xff] }
 0xba8   :  { %v2804_v3 = vadd.f32 1e-05, %v2796_v32  ;;  %v2806_v59 = vadd.f32 1e-05, %v2798_v63  ;;  %v5200_v55 = vpack.c.bf16 %v3080_v50, %v3073_v0  ;;  %v5074_v58 = vpack.c.bf16 %v3093_v40, %v3086_v51  ;;  %v3087_v32 = vld [vmem:[%s9685_s24 + $0x860] sm:$0xff]  ;;  %v3100_v63 = vld [vmem:[%s9685_s24 + $0x8c8] sm:$0xff] }
 0xba9   :  { %5511 = vrsqrt.f32 %v2803_v62  ;;  %v5202_v60 = vpack.c.bf16 %v3095_v52, %v3088_v41  ;;  %v3094_v62 = vld [vmem:[%s9685_s24 + $0x898] sm:$0xff]  ;;  %v5076_v10 = vpack.c.bf16 %v3092_v57, %v3085_v56  ;;  %v3137_v37 = vld [vmem:[%s9685_s24 + $0x9f0] sm:$0xff]  ;;  %v5212_v47 = vpack.c.bf16 %v3122_v29, %v3115_v61  ;;  %v3127_v25 = vld [vmem:[%s9685_s24 + $0x9a0] sm:$0xff] }
 0xbaa   :  { %5513 = vrsqrt.f32 %v2804_v3  ;;  %v3107_v3 = vld [vmem:[%s9685_s24 + $0x900] sm:$0xff]  ;;  %v5214_v0 = vpack.c.bf16 %v3137_v37, %v3130_v36  ;;  %v3129_v50 = vld [vmem:[%s9685_s24 + $0x9b0] sm:$0xff]  ;;  %v3136_v51 = vld [vmem:[%s9685_s24 + $0x9e8] sm:$0xff] }
 0xbab   :  { %5515 = vrsqrt.f32 %v2806_v59  ;;  %v3102_v59 = vld [vmem:[%s9685_s24 + $0x8d8] sm:$0xff]  ;;  %v5078_v1 = vpack.c.bf16 %v3107_v3, %v3100_v63  ;;  %v3149_v41 = vld [vmem:[%s9685_s24 + $0xa50] sm:$0xff]  ;;  %v3144_v52 = vld [vmem:[%s9685_s24 + $0xa28] sm:$0xff]  ;;  %v5216_v56 = vpack.c.bf16 %v3136_v51, %v3129_v50 }
 0xbac   :  { %v3142_v40 = vld [vmem:[%s9685_s24 + $0xa18] sm:$0xff]  ;;  %v3141_v57 = vld [vmem:[%s9685_s24 + $0xa10] sm:$0xff]  ;;  %v3156_v3 = vld [vmem:[%s9685_s24 + $0xa88] sm:$0xff] }
 0xbad   :  { %v3150_v63 = vld [vmem:[%s9685_s24 + $0xa58] sm:$0xff]  ;;  %v3171_v29 = vld [vmem:[%s9685_s24 + $0xb00] sm:$0xff]  ;;  %v3185_v51 = vld [vmem:[%s9685_s24 + $0xb70] sm:$0xff] }
 0xbae   :  { %v3191_v36 = vld [vmem:[%s9685_s24 + $0xba0] sm:$0xff]  ;;  %v3186_v37 = vld [vmem:[%s9685_s24 + $0xb78] sm:$0xff] }
 0xbb3   :  { %v5512_v6 = vpop.eup %5511 }
 0xbb4   :  { %v5514_v11 = vpop.eup %5513  ;;  %v2811_v13 = vmul.f32 %v5512_v6, %v2799_v8  ;;  %v3109_v6 = vld [vmem:[%s9685_s24 + $0x910] sm:$0xff]  ;;  %v2744_v8 = vadd.f32 %v2743_v44, %v8691_v42  ;;  %v3151_v44 = vld [vmem:[%s9685_s24 + $0xa60] sm:$0xff] }
 0xbb5   :  { %v5516_v4 = vpop.eup %5515  ;;  %v2812_v15 = vmul.f32 %v5514_v11, %v2800_v9  ;;  %v2775_v9 = vrot.slane %v2761_v53, 4  ;;  %v5204_v11 = vpack.c.bf16 %v3094_v62, %v3087_v32  ;;  %v5206_v14 = vpack.c.bf16 %v3109_v6, %v3102_v59  ;;  %v3143_v62 = vld [vmem:[%s9685_s24 + $0xa20] sm:$0xff]  ;;  %v3158_v6 = vld [vmem:[%s9685_s24 + $0xa98] sm:$0xff] }
 0xbb6   :  { %v2814_v5 = vmul.f32 %v5516_v4, %v2802_v12  ;;  %v8664_v26 = vmax.f32 %v2811_v13, 0.0  ;;  %v3099_v12 = vld [vmem:[%s9685_s24 + $0x8c0] sm:$0xff]  ;;  %v3106_v13 = vld [vmem:[%s9685_s24 + $0x8f8] sm:$0xff]  ;;  %v3108_v4 = vld [vmem:[%s9685_s24 + $0x908] sm:$0xff]  ;;  %v2745_v17 = vrot.slane %v2744_v8, 2  ;;  %v5218_v32 = vpack.c.bf16 %v3151_v44, %v3144_v52 }
 0xbb7   :  { %v8656_v20 = vmax.f32 %v2812_v15, 0.0  ;;  %v3114_v15 = vld [vmem:[%s9685_s24 + $0x938] sm:$0xff]  ;;  %v2776_v18 = vadd.f32 %v2775_v9, %v2761_v53  ;;  %v5080_v19 = vpack.c.bf16 %v3106_v13, %v3099_v12  ;;  %v3163_v59 = vld [vmem:[%s9685_s24 + $0xac0] sm:$0xff]  ;;  %v5220_v12 = vpack.c.bf16 %v3150_v63, %v3143_v62  ;;  %v3205_v52 = vld [vmem:[%s9685_s24 + $0xc10] sm:$0xff] }
 0xbb8   :  { %v8688_v39 = vmax.f32 %v2814_v5, 0.0  ;;  %v3116_v5 = vld [vmem:[%s9685_s24 + $0x948] sm:$0xff]  ;;  %v5082_v24 = vpack.c.bf16 %v3121_v16, %v3114_v15  ;;  %v2746_v38 = vadd.f32 %v2745_v17, %v2744_v8  ;;  %v3165_v8 = vld [vmem:[%s9685_s24 + $0xad0] sm:$0xff]  ;;  %v3155_v13 = vld [vmem:[%s9685_s24 + $0xa80] sm:$0xff] }
 0xbb9   :  { %3368 = vmatprep.mubr.f32.mxu0 %v8656_v20  ;;  %3510 = vmatprep.mubr.f32.mxu1 %v8656_v20  ;;  %v5210_v28 = vpack.c.bf16 %v3123_v7, %v3116_v5  ;;  %v3164_v15 = vld [vmem:[%s9685_s24 + $0xac8] sm:$0xff]  ;;  %v3170_v16 = vld [vmem:[%s9685_s24 + $0xaf8] sm:$0xff]  ;;  %v3177_v5 = vld [vmem:[%s9685_s24 + $0xb30] sm:$0xff] }
 0xbba   :  { %3369 = vmatmul.mubr.f32.vlgmr.msra.gmra.mrb[6].mxu0 %v8664_v26  ;;  %3511 = vmatmul.mubr.f32.vlgmr.msra.gmra.mrb[22].mxu1 %v8664_v26  ;;  %v2747_v53 = vrot.slane %v2746_v38, 1  ;;  %v3172_v7 = vld [vmem:[%s9685_s24 + $0xb08] sm:$0xff]  ;;  %v3179_v17 = vld [vmem:[%s9685_s24 + $0xb40] sm:$0xff]  ;;  %v3206_v63 = vld [vmem:[%s9685_s24 + $0xc18] sm:$0xff] }
 0xbbb   :  { %5065 = vmatpush1.bf16.msra.mxu0 %v5064_v21  ;;  %5193 = vmatpush1.bf16.msra.mxu1 %v5192_v22  ;;  %v5208_v21 = vpack.c.bf16 %v3108_v4, %v3101_v2  ;;  %v3113_v22 = vld [vmem:[%s9685_s24 + $0x930] sm:$0xff]  ;;  %v5222_v2 = vpack.c.bf16 %v3165_v8, %v3158_v6  ;;  %v5226_v61 = vpack.c.bf16 %v3179_v17, %v3172_v7  ;;  %v3200_v44 = vld [vmem:[%s9685_s24 + $0xbe8] sm:$0xff]  ;;  %v3199_v62 = vld [vmem:[%s9685_s24 + $0xbe0] sm:$0xff] }
 0xbbc   :  { %3439 = vmatprep.mubr.f32.mxu0 %v8688_v39  ;;  %3581 = vmatprep.mubr.f32.mxu1 %v8688_v39  ;;  %v2748_v9 = vadd.f32 %v2747_v53, %v2746_v38  ;;  %v3157_v4 = vld [vmem:[%s9685_s24 + $0xa90] sm:$0xff]  ;;  %v3207_v53 = vld [vmem:[%s9685_s24 + $0xc20] sm:$0xff]  ;;  %v3214_v6 = vld [vmem:[%s9685_s24 + $0xc58] sm:$0xff] }
 0xbbd   :  { %5067 = vmatprep.subr.bf16.mxu0 %v5066_v34  ;;  %5195 = vmatprep.subr.bf16.mxu1 %v5194_v35  ;;  %v3128_v34 = vld [vmem:[%s9685_s24 + $0x9a8] sm:$0xff]  ;;  %v3135_v35 = vld [vmem:[%s9685_s24 + $0x9e0] sm:$0xff]  ;;  %v3193_v38 = vld [vmem:[%s9685_s24 + $0xbb0] sm:$0xff] }
 0xbbe   :  { %v5230_v50 = vpack.c.bf16 %v3193_v38, %v3186_v37  ;;  %v3221_v8 = vld [vmem:[%s9685_s24 + $0xc90] sm:$0xff]  ;;  %v3235_v7 = vld [vmem:[%s9685_s24 + $0xd00] sm:$0xff] }
 0xbbf   :  { %5069 = vmatpush1.bf16.msra.mxu0 %v5068_v43  ;;  %5197 = vmatpush1.bf16.msra.mxu1 %v5196_v46  ;;  %v2777_v43 = vrot.slane %v2776_v18, 2  ;;  %v5084_v46 = vpack.c.bf16 %v3120_v23, %v3113_v22  ;;  %v5224_v22 = vpack.c.bf16 %v3164_v15, %v3157_v4  ;;  %v3169_v23 = vld [vmem:[%s9685_s24 + $0xaf0] sm:$0xff]  ;;  %v3220_v4 = vld [vmem:[%s9685_s24 + $0xc88] sm:$0xff]  ;;  %v3226_v15 = vld [vmem:[%s9685_s24 + $0xcb8] sm:$0xff] }
 0xbc0   :  { %5071 = vmatprep.subr.bf16.mxu0 %v5070_v27  ;;  %5199 = vmatprep.subr.bf16.mxu1 %v5198_v49  ;;  %v3134_v27 = vld [vmem:[%s9685_s24 + $0x9d8] sm:$0xff]  ;;  %v5086_v49 = vpack.c.bf16 %v3135_v35, %v3128_v34  ;;  %v3184_v35 = vld [vmem:[%s9685_s24 + $0xb68] sm:$0xff] }
 0xbc1   :  { %v3178_v34 = vld [vmem:[%s9685_s24 + $0xb38] sm:$0xff] }
 0xbc3   :  { %5073 = vmatpush1.bf16.msra.mxu0 %v5072_v54  ;;  %5201 = vmatpush1.bf16.msra.mxu1 %v5200_v55  ;;  %v2778_v54 = vadd.f32 %v2777_v43, %v2776_v18  ;;  %v5088_v55 = vpack.c.bf16 %v3134_v27, %v3127_v25  ;;  %v8867_v18 = vmul.f32 0.125, %v2748_v9  ;;  %v5228_v25 = vpack.c.bf16 %v3178_v34, %v3171_v29  ;;  %v3183_v27 = vld [vmem:[%s9685_s24 + $0xb60] sm:$0xff]  ;;  %v3240_v29 = vld [vmem:[%s9685_s24 + $0xd28] sm:$0xff] }
 0xbc4   :  { %5075 = vmatprep.subr.bf16.mxu0 %v5074_v58  ;;  %5203 = vmatprep.subr.bf16.mxu1 %v5202_v60  ;;  %v3148_v58 = vld [vmem:[%s9685_s24 + $0xa48] sm:$0xff]  ;;  %v5090_v60 = vpack.c.bf16 %v3149_v41, %v3142_v40  ;;  %v3198_v41 = vld [vmem:[%s9685_s24 + $0xbd8] sm:$0xff]  ;;  %v3247_v34 = vld [vmem:[%s9685_s24 + $0xd60] sm:$0xff] }
 0xbc5   :  { %v3192_v40 = vld [vmem:[%s9685_s24 + $0xba8] sm:$0xff] }
 0xbc7   :  { %5077 = vmatpush1.bf16.msra.mxu0 %v5076_v10  ;;  %5205 = vmatpush1.bf16.msra.mxu1 %v5204_v11  ;;  %v2779_v10 = vrot.slane %v2778_v54, 1  ;;  %v5092_v11 = vpack.c.bf16 %v3148_v58, %v3141_v57  ;;  %v3197_v57 = vld [vmem:[%s9685_s24 + $0xbd0] sm:$0xff]  ;;  %v3204_v58 = vld [vmem:[%s9685_s24 + $0xc08] sm:$0xff] }
 0xbc8   :  { %5079 = vmatprep.subr.bf16.mxu0 %v5078_v1  ;;  %5207 = vmatprep.subr.bf16.mxu1 %v5206_v14  ;;  %v3162_v1 = vld [vmem:[%s9685_s24 + $0xab8] sm:$0xff]  ;;  %v5094_v14 = vpack.c.bf16 %v3163_v59, %v3156_v3  ;;  %v3212_v3 = vld [vmem:[%s9685_s24 + $0xc48] sm:$0xff]  ;;  %v3219_v59 = vld [vmem:[%s9685_s24 + $0xc80] sm:$0xff] }
 0xbcb   :  { %5081 = vmatpush1.bf16.msra.mxu0 %v5080_v19  ;;  %5209 = vmatpush1.bf16.msra.mxu1 %v5208_v21  ;;  %v2780_v19 = vadd.f32 %v2779_v10, %v2778_v54  ;;  %v5096_v21 = vpack.c.bf16 %v3162_v1, %v3155_v13  ;;  %v5108_v10 = vpack.c.bf16 %v3204_v58, %v3197_v57  ;;  %v3218_v13 = vld [vmem:[%s9685_s24 + $0xc78] sm:$0xff]  ;;  %v2824_v58 = vld [vmem:[%s9685_s24 + $0x28] sm:$0xff] }
 0xbcc   :  { %5083 = vmatprep.subr.bf16.mxu0 %v5082_v24  ;;  %5211 = vmatprep.subr.bf16.mxu1 %v5210_v28  ;;  %v3176_v24 = vld [vmem:[%s9685_s24 + $0xb28] sm:$0xff]  ;;  %v5098_v28 = vpack.c.bf16 %v3177_v5, %v3170_v16  ;;  %v5110_v1 = vpack.c.bf16 %v3219_v59, %v3212_v3  ;;  %v3233_v16 = vld [vmem:[%s9685_s24 + $0xcf0] sm:$0xff]  ;;  %v3262_v57 = vld [vmem:[%s9685_s24 + $0xdd8] sm:$0xff]  ;;  %v2801_v3 = vsub.f32 %v8691_v42, %v8867_v18 }
 0xbcd   :  { %v2789_v43 = vmul.f32 0.125, %v2780_v19  ;;  %v3228_v5 = vld [vmem:[%s9685_s24 + $0xcc8] sm:$0xff]  ;;  %v2825_v42 = vld [vmem:[%s9685_s24 + $0x30] sm:$0xff] }
 0xbcf   :  { %5085 = vmatpush1.bf16.msra.mxu0 %v5084_v46  ;;  %5213 = vmatpush1.bf16.msra.mxu1 %v5212_v47  ;;  %v2793_v46 = vmul.f32 %v8867_v18, %v8867_v18  ;;  %v5100_v47 = vpack.c.bf16 %v3176_v24, %v3169_v23  ;;  %v5114_v23 = vpack.c.bf16 %v3233_v16, %v3226_v15  ;;  %v2832_v18 = vld [vmem:[%s9685_s24 + $0x68] sm:$0xff] }
 0xbd0   :  { %5087 = vmatprep.subr.bf16.mxu0 %v5086_v49  ;;  %5215 = vmatprep.subr.bf16.mxu1 %v5214_v0  ;;  %v3190_v49 = vld [vmem:[%s9685_s24 + $0xb98] sm:$0xff]  ;;  %v5102_v0 = vpack.c.bf16 %v3191_v36, %v3184_v35  ;;  %v5242_v24 = vpack.c.bf16 %v3235_v7, %v3228_v5  ;;  %v3249_v36 = vld [vmem:[%s9685_s24 + $0xd70] sm:$0xff]  ;;  %v5384_v16 = vpack.c.bf16 %v2832_v18, %v2825_v42  ;;  %v2844_v7 = vld [vmem:[%s9685_s24 + $0xc8] sm:$0xff] }
 0xbd1   :  { %v2797_v54 = vsub.f32 %v2789_v43, %v2793_v46  ;;  %v3242_v35 = vld [vmem:[%s9685_s24 + $0xd38] sm:$0xff]  ;;  %v3239_v43 = vld [vmem:[%s9685_s24 + $0xd20] sm:$0xff]  ;;  %v2837_v5 = vld [vmem:[%s9685_s24 + $0x90] sm:$0xff] }
 0xbd2   :  { %v3246_v46 = vld [vmem:[%s9685_s24 + $0xd58] sm:$0xff]  ;;  %v2893_v18 = vld [vmem:[%s9685_s24 + $0x250] sm:$0xff] }
 0xbd3   :  { %5089 = vmatpush1.bf16.msra.mxu0 %v5088_v55  ;;  %5217 = vmatpush1.bf16.msra.mxu1 %v5216_v56  ;;  %v5104_v55 = vpack.c.bf16 %v3190_v49, %v3183_v27  ;;  %v5232_v56 = vpack.c.bf16 %v3192_v40, %v3185_v51  ;;  %v2805_v9 = vadd.f32 1e-05, %v2797_v54  ;;  %v3241_v27 = vld [vmem:[%s9685_s24 + $0xd30] sm:$0xff]  ;;  %v3248_v49 = vld [vmem:[%s9685_s24 + $0xd68] sm:$0xff]  ;;  %v3263_v40 = vld [vmem:[%s9685_s24 + $0xde0] sm:$0xff] }
 0xbd4   :  { %5091 = vmatprep.subr.bf16.mxu0 %v5090_v60  ;;  %5219 = vmatprep.subr.bf16.mxu1 %v5218_v32  ;;  %v5106_v60 = vpack.c.bf16 %v3205_v52, %v3198_v41  ;;  %v5234_v32 = vpack.c.bf16 %v3207_v53, %v3200_v44  ;;  %v3256_v51 = vld [vmem:[%s9685_s24 + $0xda8] sm:$0xff]  ;;  %v5120_v41 = vpack.c.bf16 %v3246_v46, %v3239_v43  ;;  %v3253_v44 = vld [vmem:[%s9685_s24 + $0xd90] sm:$0xff]  ;;  %v2866_v46 = vld [vmem:[%s9685_s24 + $0x178] sm:$0xff] }
 0xbd5   :  { %5517 = vrsqrt.f32 %v2805_v9  ;;  %v5248_v52 = vpack.c.bf16 %v3248_v49, %v3241_v27  ;;  %v3260_v53 = vld [vmem:[%s9685_s24 + $0xdc8] sm:$0xff]  ;;  %v2986_v27 = vld [vmem:[%s9685_s24 + $0x538] sm:$0xff] }
 0xbd6   :  { %v5124_v59 = vpack.c.bf16 %v3260_v53, %v3253_v44  ;;  %v2874_v44 = vld [vmem:[%s9685_s24 + $0x1b8] sm:$0xff]  ;;  %v2880_v53 = vld [vmem:[%s9685_s24 + $0x1e8] sm:$0xff] }
 0xbd7   :  { %5093 = vmatpush1.bf16.msra.mxu0 %v5092_v11  ;;  %5221 = vmatpush1.bf16.msra.mxu1 %v5220_v12  ;;  %v5236_v11 = vpack.c.bf16 %v3206_v63, %v3199_v62  ;;  %v3211_v12 = vld [vmem:[%s9685_s24 + $0xc40] sm:$0xff]  ;;  %v2937_v62 = vld [vmem:[%s9685_s24 + $0x3b0] sm:$0xff]  ;;  %v2944_v63 = vld [vmem:[%s9685_s24 + $0x3e8] sm:$0xff] }
 0xbd8   :  { %5095 = vmatprep.subr.bf16.mxu0 %v5094_v14  ;;  %5223 = vmatprep.subr.bf16.mxu1 %v5222_v2  ;;  %v5238_v14 = vpack.c.bf16 %v3221_v8, %v3214_v6  ;;  %v3213_v2 = vld [vmem:[%s9685_s24 + $0xc50] sm:$0xff]  ;;  %v5112_v17 = vpack.c.bf16 %v3218_v13, %v3211_v12  ;;  %v2830_v12 = vld [vmem:[%s9685_s24 + $0x58] sm:$0xff] }
 0xbd9   :  { %v5240_v19 = vpack.c.bf16 %v3220_v4, %v3213_v2  ;;  %v2838_v13 = vld [vmem:[%s9685_s24 + $0x98] sm:$0xff] }
 0xbda   :  { %v2958_v2 = vld [vmem:[%s9685_s24 + $0x458] sm:$0xff] }
 0xbdb   :  { %5097 = vmatpush1.bf16.msra.mxu0 %v5096_v21  ;;  %5225 = vmatpush1.bf16.msra.mxu1 %v5224_v22  ;;  %v3225_v21 = vld [vmem:[%s9685_s24 + $0xcb0] sm:$0xff]  ;;  %v3232_v22 = vld [vmem:[%s9685_s24 + $0xce8] sm:$0xff] }
 0xbdc   :  { %5099 = vmatprep.subr.bf16.mxu0 %v5098_v28  ;;  %5227 = vmatprep.subr.bf16.mxu1 %v5226_v61  ;;  %v3227_v28 = vld [vmem:[%s9685_s24 + $0xcc0] sm:$0xff]  ;;  %v3234_v61 = vld [vmem:[%s9685_s24 + $0xcf8] sm:$0xff]  ;;  %v5116_v37 = vpack.c.bf16 %v3232_v22, %v3225_v21 }
 0xbdd   :  { %v5244_v38 = vpack.c.bf16 %v3234_v61, %v3227_v28  ;;  %v2846_v22 = vld [vmem:[%s9685_s24 + $0xd8] sm:$0xff]  ;;  %v2965_v28 = vld [vmem:[%s9685_s24 + $0x490] sm:$0xff]  ;;  %v2972_v61 = vld [vmem:[%s9685_s24 + $0x4c8] sm:$0xff] }
 0xbde   :  { %v5390_v43 = vpack.c.bf16 %v2972_v61, %v2965_v28  ;;  %v2916_v61 = vld [vmem:[%s9685_s24 + $0x308] sm:$0xff] }
 0xbdf   :  { %5101 = vmatpush1.bf16.msra.mxu0 %v5100_v47  ;;  %5229 = vmatpush1.bf16.msra.mxu1 %v5228_v25  ;;  %v5118_v47 = vpack.c.bf16 %v3247_v34, %v3240_v29  ;;  %v5246_v25 = vpack.c.bf16 %v3249_v36, %v3242_v35  ;;  %v5260_v29 = vpack.c.bf16 %v2844_v7, %v2837_v5  ;;  %v2851_v36 = vld [vmem:[%s9685_s24 + $0x100] sm:$0xff]  ;;  %v3021_v5 = vld [vmem:[%s9685_s24 + $0x650] sm:$0xff]  ;;  %v3028_v7 = vld [vmem:[%s9685_s24 + $0x688] sm:$0xff] }
 0xbe0   :  { %5103 = vmatprep.subr.bf16.mxu0 %v5102_v0  ;;  %5231 = vmatprep.subr.bf16.mxu1 %v5230_v50  ;;  %v3254_v0 = vld [vmem:[%s9685_s24 + $0xd98] sm:$0xff]  ;;  %v3261_v50 = vld [vmem:[%s9685_s24 + $0xdd0] sm:$0xff]  ;;  %v5406_v28 = vpack.c.bf16 %v3028_v7, %v3021_v5  ;;  %v3084_v7 = vld [vmem:[%s9685_s24 + $0x848] sm:$0xff] }
 0xbe1   :  { %v5122_v54 = vpack.c.bf16 %v3261_v50, %v3254_v0 }
 0xbe3   :  { %5105 = vmatpush1.bf16.msra.mxu0 %v5104_v55  ;;  %5233 = vmatpush1.bf16.msra.mxu1 %v5232_v56  ;;  %v5250_v55 = vpack.c.bf16 %v3263_v40, %v3256_v51  ;;  %v3255_v56 = vld [vmem:[%s9685_s24 + $0xda0] sm:$0xff]  ;;  %v2865_v51 = vld [vmem:[%s9685_s24 + $0x170] sm:$0xff]  ;;  %v2872_v40 = vld [vmem:[%s9685_s24 + $0x1a8] sm:$0xff] }
 0xbe4   :  { %5107 = vmatprep.subr.bf16.mxu0 %v5106_v60  ;;  %5235 = vmatprep.subr.bf16.mxu1 %v5234_v32  ;;  %v5518_v60 = vpop.eup %5517  ;;  %v2831_v32 = vld [vmem:[%s9685_s24 + $0x60] sm:$0xff]  ;;  %v5252_v6 = vpack.c.bf16 %v3262_v57, %v3255_v56  ;;  %v3000_v56 = vld [vmem:[%s9685_s24 + $0x5a8] sm:$0xff]  ;;  %v5268_v57 = vpack.c.bf16 %v2872_v40, %v2865_v51 }
 0xbe5   :  { %v2813_v8 = vmul.f32 %v5518_v60, %v2801_v3  ;;  %v5254_v9 = vpack.c.bf16 %v2831_v32, %v2824_v58  ;;  %v2879_v32 = vld [vmem:[%s9685_s24 + $0x1e0] sm:$0xff]  ;;  %v3168_v51 = vld [vmem:[%s9685_s24 + $0xae8] sm:$0xff] }
 0xbe7   :  { %5109 = vmatpush1.bf16.msra.mxu0 %v5108_v10  ;;  %5237 = vmatpush1.bf16.msra.mxu1 %v5236_v11  ;;  %v5382_v10 = vpack.c.bf16 %v2944_v63, %v2937_v62  ;;  %v2823_v11 = vld [vmem:[%s9685_s24 + $0x20] sm:$0xff]  ;;  %v9065_v15 = vmax.f32 %v2813_v8, 0.0  ;;  %v2886_v62 = vld [vmem:[%s9685_s24 + $0x218] sm:$0xff]  ;;  %v2881_v63 = vld [vmem:[%s9685_s24 + $0x1f0] sm:$0xff] }
 0xbe8   :  { %5111 = vmatprep.subr.bf16.mxu0 %v5110_v1  ;;  %5239 = vmatprep.subr.bf16.mxu1 %v5238_v14  ;;  %v2845_v1 = vld [vmem:[%s9685_s24 + $0xd0] sm:$0xff]  ;;  %v2951_v14 = vld [vmem:[%s9685_s24 + $0x420] sm:$0xff]  ;;  %v5256_v4 = vpack.c.bf16 %v2830_v12, %v2823_v11  ;;  %v5272_v11 = vpack.c.bf16 %v2886_v62, %v2879_v32  ;;  %v3182_v32 = vld [vmem:[%s9685_s24 + $0xb58] sm:$0xff] }
 0xbe9   :  { %v5386_v21 = vpack.c.bf16 %v2958_v2, %v2951_v14  ;;  %v2901_v8 = vld [vmem:[%s9685_s24 + $0x290] sm:$0xff]  ;;  %v2902_v2 = vld [vmem:[%s9685_s24 + $0x298] sm:$0xff] }
 0xbeb   :  { %5113 = vmatpush1.bf16.msra.mxu0 %v5112_v17  ;;  %5241 = vmatpush1.bf16.msra.mxu1 %v5240_v19  ;;  %v2839_v17 = vld [vmem:[%s9685_s24 + $0xa0] sm:$0xff]  ;;  %v5258_v19 = vpack.c.bf16 %v2845_v1, %v2838_v13  ;;  %v2900_v13 = vld [vmem:[%s9685_s24 + $0x288] sm:$0xff] }
 0xbec   :  { %5115 = vmatprep.subr.bf16.mxu0 %v5114_v23  ;;  %5243 = vmatprep.subr.bf16.mxu1 %v5242_v24  ;;  %v2852_v23 = vld [vmem:[%s9685_s24 + $0x108] sm:$0xff]  ;;  %v2859_v24 = vld [vmem:[%s9685_s24 + $0x140] sm:$0xff]  ;;  %v5388_v34 = vpack.c.bf16 %v2846_v22, %v2839_v17  ;;  %v5276_v17 = vpack.c.bf16 %v2900_v13, %v2893_v18 }
 0xbed   :  { %v5262_v35 = vpack.c.bf16 %v2859_v24, %v2852_v23  ;;  %v2895_v1 = vld [vmem:[%s9685_s24 + $0x260] sm:$0xff]  ;;  %v2914_v23 = vld [vmem:[%s9685_s24 + $0x2f8] sm:$0xff]  ;;  %v2909_v24 = vld [vmem:[%s9685_s24 + $0x2d0] sm:$0xff] }
 0xbee   :  { %v2907_v22 = vld [vmem:[%s9685_s24 + $0x2c0] sm:$0xff]  ;;  %v3196_v18 = vld [vmem:[%s9685_s24 + $0xbc8] sm:$0xff] }
 0xbef   :  { %5117 = vmatpush1.bf16.msra.mxu0 %v5116_v37  ;;  %5245 = vmatpush1.bf16.msra.mxu1 %v5244_v38  ;;  %v2858_v37 = vld [vmem:[%s9685_s24 + $0x138] sm:$0xff]  ;;  %v2853_v38 = vld [vmem:[%s9685_s24 + $0x110] sm:$0xff] }
 0xbf0   :  { %5119 = vmatprep.subr.bf16.mxu0 %v5118_v47  ;;  %5247 = vmatprep.subr.bf16.mxu1 %v5246_v25  ;;  %v2873_v47 = vld [vmem:[%s9685_s24 + $0x1b0] sm:$0xff]  ;;  %v2979_v25 = vld [vmem:[%s9685_s24 + $0x500] sm:$0xff]  ;;  %v5264_v49 = vpack.c.bf16 %v2858_v37, %v2851_v36  ;;  %v3042_v36 = vld [vmem:[%s9685_s24 + $0x6f8] sm:$0xff]  ;;  %v5280_v37 = vpack.c.bf16 %v2914_v23, %v2907_v22 }
 0xbf1   :  { %v5266_v50 = vpack.c.bf16 %v2873_v47, %v2866_v46  ;;  %v2928_v46 = vld [vmem:[%s9685_s24 + $0x368] sm:$0xff]  ;;  %v2923_v47 = vld [vmem:[%s9685_s24 + $0x340] sm:$0xff]  ;;  %v3210_v22 = vld [vmem:[%s9685_s24 + $0xc38] sm:$0xff] }
 0xbf3   :  { %5121 = vmatpush1.bf16.msra.mxu0 %v5120_v41  ;;  %5249 = vmatpush1.bf16.msra.mxu1 %v5248_v52  ;;  %v2867_v41 = vld [vmem:[%s9685_s24 + $0x180] sm:$0xff]  ;;  %v5394_v52 = vpack.c.bf16 %v2986_v27, %v2979_v25  ;;  %v2930_v27 = vld [vmem:[%s9685_s24 + $0x378] sm:$0xff] }
 0xbf4   :  { %5123 = vmatprep.subr.bf16.mxu0 %v5122_v54  ;;  %5251 = vmatprep.subr.bf16.mxu1 %v5250_v55  ;;  %v2887_v54 = vld [vmem:[%s9685_s24 + $0x220] sm:$0xff]  ;;  %v2993_v55 = vld [vmem:[%s9685_s24 + $0x570] sm:$0xff]  ;;  %v5396_v58 = vpack.c.bf16 %v2874_v44, %v2867_v41  ;;  %v5412_v41 = vpack.c.bf16 %v2930_v27, %v2923_v47 }
 0xbf5   :  { %v5270_v60 = vpack.c.bf16 %v2887_v54, %v2880_v53  ;;  %v5398_v3 = vpack.c.bf16 %v3000_v56, %v2993_v55  ;;  %v2935_v44 = vld [vmem:[%s9685_s24 + $0x3a0] sm:$0xff]  ;;  %v2942_v53 = vld [vmem:[%s9685_s24 + $0x3d8] sm:$0xff]  ;;  %v3049_v55 = vld [vmem:[%s9685_s24 + $0x730] sm:$0xff] }
 0xbf6   :  { %v3056_v56 = vld [vmem:[%s9685_s24 + $0x768] sm:$0xff]  ;;  %v5288_v62 = vpack.c.bf16 %v2942_v53, %v2935_v44  ;;  %v2991_v27 = vld [vmem:[%s9685_s24 + $0x560] sm:$0xff]  ;;  %v3238_v44 = vld [vmem:[%s9685_s24 + $0xd18] sm:$0xff] }
 0xbf7   :  { %5125 = vmatpush1.bf16.msra.mxu0 %v5124_v59  ;;  %5253 = vmatpush1.bf16.msra.mxu1 %v5252_v6  ;;  %v2888_v59 = vld [vmem:[%s9685_s24 + $0x228] sm:$0xff]  ;;  %v2894_v6 = vld [vmem:[%s9685_s24 + $0x258] sm:$0xff] }
 0xbf8   :  { %5255 = vmatprep.subr.bf16.mxu0 %v5254_v9  ;;  %5383 = vmatprep.subr.bf16.mxu1 %v5382_v10  ;;  %v3007_v9 = vld [vmem:[%s9685_s24 + $0x5e0] sm:$0xff]  ;;  %v3014_v10 = vld [vmem:[%s9685_s24 + $0x618] sm:$0xff]  ;;  %v5400_v12 = vpack.c.bf16 %v2888_v59, %v2881_v63  ;;  %v5274_v42 = vpack.c.bf16 %v2901_v8, %v2894_v6  ;;  %v5416_v63 = vpack.c.bf16 %v3056_v56, %v3049_v55  ;;  %v2956_v59 = vld [vmem:[%s9685_s24 + $0x448] sm:$0xff] }
 0xbf9   :  { %v5402_v14 = vpack.c.bf16 %v3014_v10, %v3007_v9  ;;  %v3063_v6 = vld [vmem:[%s9685_s24 + $0x7a0] sm:$0xff]  ;;  %v3070_v10 = vld [vmem:[%s9685_s24 + $0x7d8] sm:$0xff]  ;;  %v3005_v56 = vld [vmem:[%s9685_s24 + $0x5d0] sm:$0xff] }
 0xbfa   :  { %3440 = vmatmul.mubr.f32.vlgmr.msra.gmra.mrb[6].mxu0 %v9065_v15  ;;  %3582 = vmatmul.mubr.f32.vlgmr.msra.gmra.mrb[22].mxu1 %v9065_v15 }
 0xbfb   :  { %5257 = vmatpush1.bf16.msra.mxu0 %v5256_v4  ;;  %3652 = vmatprep.mubr.f32.mxu0 %v8656_v20  ;;  %v2908_v4 = vld [vmem:[%s9685_s24 + $0x2c8] sm:$0xff] }
 0xbfc   :  { %5385 = vmatpush3.bf16.msra.mxu1 %v5384_v16  ;;  %3794 = vmatprep.mubr.f32.mxu1 %v8656_v20  ;;  %v2860_v20 = vld [vmem:[%s9685_s24 + $0x148] sm:$0xff]  ;;  %v2915_v16 = vld [vmem:[%s9685_s24 + $0x300] sm:$0xff] }
 0xbfd   :  { %5259 = vmatprep.subr.bf16.mxu0 %v5258_v19  ;;  %5387 = vmatprep.subr.bf16.mxu1 %v5386_v21  ;;  %v5392_v0 = vpack.c.bf16 %v2860_v20, %v2853_v38  ;;  %v5404_v19 = vpack.c.bf16 %v2902_v2, %v2895_v1  ;;  %v5278_v21 = vpack.c.bf16 %v2915_v16, %v2908_v4  ;;  %v2921_v20 = vld [vmem:[%s9685_s24 + $0x330] sm:$0xff]  ;;  %v2963_v2 = vld [vmem:[%s9685_s24 + $0x480] sm:$0xff]  ;;  %v2970_v4 = vld [vmem:[%s9685_s24 + $0x4b8] sm:$0xff] }
 0xbfe   :  { %v5408_v38 = vpack.c.bf16 %v2916_v61, %v2909_v24  ;;  %v5284_v40 = vpack.c.bf16 %v2928_v46, %v2921_v20  ;;  %v5420_v1 = vpack.c.bf16 %v3070_v10, %v3063_v6  ;;  %v3077_v16 = vld [vmem:[%s9685_s24 + $0x810] sm:$0xff]  ;;  %v5296_v23 = vpack.c.bf16 %v2970_v4, %v2963_v2  ;;  %v3224_v20 = vld [vmem:[%s9685_s24 + $0xca8] sm:$0xff]  ;;  %v3019_v10 = vld [vmem:[%s9685_s24 + $0x640] sm:$0xff] }
 0xbff   :  { %5261 = vmatpush1.bf16.msra.mxu0 %v5260_v29  ;;  %v2922_v29 = vld [vmem:[%s9685_s24 + $0x338] sm:$0xff]  ;;  %v5424_v24 = vpack.c.bf16 %v3084_v7, %v3077_v16  ;;  %v2977_v61 = vld [vmem:[%s9685_s24 + $0x4f0] sm:$0xff] }
 0xc00   :  { %5389 = vmatpush3.bf16.msra.mxu1 %v5388_v34  ;;  %5263 = vmatprep.subr.bf16.mxu0 %v5262_v35  ;;  %v2929_v34 = vld [vmem:[%s9685_s24 + $0x370] sm:$0xff]  ;;  %v3035_v35 = vld [vmem:[%s9685_s24 + $0x6c0] sm:$0xff]  ;;  %v3266_v2 = vld [vmem:[%s9685_s24 + $0xdf8] sm:$0xff] }
 0xc01   :  { %5391 = vmatprep.subr.bf16.mxu1 %v5390_v43  ;;  %v5282_v43 = vpack.c.bf16 %v2929_v34, %v2922_v29  ;;  %v5410_v25 = vpack.c.bf16 %v3042_v36, %v3035_v35  ;;  %v2984_v29 = vld [vmem:[%s9685_s24 + $0x528] sm:$0xff]  ;;  %v3091_v34 = vld [vmem:[%s9685_s24 + $0x880] sm:$0xff]  ;;  %v3098_v36 = vld [vmem:[%s9685_s24 + $0x8b8] sm:$0xff] }
 0xc02   :  { %v5300_v46 = vpack.c.bf16 %v2984_v29, %v2977_v61  ;;  %v5428_v47 = vpack.c.bf16 %v3098_v36, %v3091_v34  ;;  %v3033_v7 = vld [vmem:[%s9685_s24 + $0x6b0] sm:$0xff]  ;;  %v3047_v34 = vld [vmem:[%s9685_s24 + $0x720] sm:$0xff]  ;;  %v3062_v36 = vld [vmem:[%s9685_s24 + $0x798] sm:$0xff] }
 0xc03   :  { %5265 = vmatpush1.bf16.msra.mxu0 %v5264_v49  ;;  %v2936_v49 = vld [vmem:[%s9685_s24 + $0x3a8] sm:$0xff] }
 0xc04   :  { %5393 = vmatpush3.bf16.msra.mxu1 %v5392_v0  ;;  %5267 = vmatprep.subr.bf16.mxu0 %v5266_v50  ;;  %v2943_v0 = vld [vmem:[%s9685_s24 + $0x3e0] sm:$0xff]  ;;  %v3161_v50 = vld [vmem:[%s9685_s24 + $0xab0] sm:$0xff] }
 0xc05   :  { %5395 = vmatprep.subr.bf16.mxu1 %v5394_v52  ;;  %v5286_v52 = vpack.c.bf16 %v2943_v0, %v2936_v49  ;;  %v5414_v54 = vpack.c.bf16 %v3168_v51, %v3161_v50  ;;  %v2998_v49 = vld [vmem:[%s9685_s24 + $0x598] sm:$0xff]  ;;  %v3105_v0 = vld [vmem:[%s9685_s24 + $0x8f0] sm:$0xff]  ;;  %v3112_v51 = vld [vmem:[%s9685_s24 + $0x928] sm:$0xff] }
 0xc06   :  { %v5304_v53 = vpack.c.bf16 %v2998_v49, %v2991_v27 }
 0xc07   :  { %5269 = vmatpush1.bf16.msra.mxu0 %v5268_v57  ;;  %v2950_v57 = vld [vmem:[%s9685_s24 + $0x418] sm:$0xff] }
 0xc08   :  { %5397 = vmatpush3.bf16.msra.mxu1 %v5396_v58  ;;  %5271 = vmatprep.subr.bf16.mxu0 %v5270_v60  ;;  %v2957_v58 = vld [vmem:[%s9685_s24 + $0x450] sm:$0xff]  ;;  %v3175_v60 = vld [vmem:[%s9685_s24 + $0xb20] sm:$0xff] }
 0xc09   :  { %5399 = vmatprep.subr.bf16.mxu1 %v5398_v3  ;;  %v2949_v3 = vld [vmem:[%s9685_s24 + $0x410] sm:$0xff]  ;;  %v5290_v8 = vpack.c.bf16 %v2957_v58, %v2950_v57  ;;  %v5418_v9 = vpack.c.bf16 %v3182_v32, %v3175_v60  ;;  %v3012_v57 = vld [vmem:[%s9685_s24 + $0x608] sm:$0xff]  ;;  %v3119_v58 = vld [vmem:[%s9685_s24 + $0x960] sm:$0xff] }
 0xc0a   :  { %v5292_v13 = vpack.c.bf16 %v2956_v59, %v2949_v3  ;;  %v3126_v32 = vld [vmem:[%s9685_s24 + $0x998] sm:$0xff]  ;;  %v3245_v3 = vld [vmem:[%s9685_s24 + $0xd50] sm:$0xff]  ;;  %v3252_v59 = vld [vmem:[%s9685_s24 + $0xd88] sm:$0xff]  ;;  %v5308_v6 = vpack.c.bf16 %v3012_v57, %v3005_v56 }
 0xc0b   :  { %5273 = vmatpush1.bf16.msra.mxu0 %v5272_v11  ;;  %v2964_v11 = vld [vmem:[%s9685_s24 + $0x488] sm:$0xff]  ;;  %v3103_v56 = vld [vmem:[%s9685_s24 + $0x8e0] sm:$0xff]  ;;  %v3110_v57 = vld [vmem:[%s9685_s24 + $0x918] sm:$0xff] }
 0xc0c   :  { %5401 = vmatpush3.bf16.msra.mxu1 %v5400_v12  ;;  %5275 = vmatprep.subr.bf16.mxu0 %v5274_v42  ;;  %v2971_v12 = vld [vmem:[%s9685_s24 + $0x4c0] sm:$0xff]  ;;  %v3189_v42 = vld [vmem:[%s9685_s24 + $0xb90] sm:$0xff] }
 0xc0d   :  { %5403 = vmatprep.subr.bf16.mxu1 %v5402_v14  ;;  %v5294_v14 = vpack.c.bf16 %v2971_v12, %v2964_v11  ;;  %v5422_v5 = vpack.c.bf16 %v3196_v18, %v3189_v42  ;;  %v3026_v11 = vld [vmem:[%s9685_s24 + $0x678] sm:$0xff]  ;;  %v3133_v12 = vld [vmem:[%s9685_s24 + $0x9d0] sm:$0xff]  ;;  %v5438_v42 = vpack.c.bf16 %v3252_v59, %v3245_v3  ;;  %v3140_v18 = vld [vmem:[%s9685_s24 + $0xa08] sm:$0xff] }
 0xc0e   :  { %v5312_v4 = vpack.c.bf16 %v3026_v11, %v3019_v10  ;;  %v5440_v16 = vpack.c.bf16 %v3140_v18, %v3133_v12  ;;  %v3124_v3 = vld [vmem:[%s9685_s24 + $0x988] sm:$0xff]  ;;  %v3131_v10 = vld [vmem:[%s9685_s24 + $0x9c0] sm:$0xff]  ;;  %v3138_v11 = vld [vmem:[%s9685_s24 + $0x9f8] sm:$0xff] }
 0xc0f   :  { %5277 = vmatpush1.bf16.msra.mxu0 %v5276_v17  ;;  %v2978_v17 = vld [vmem:[%s9685_s24 + $0x4f8] sm:$0xff]  ;;  %v3132_v59 = vld [vmem:[%s9685_s24 + $0x9c8] sm:$0xff]  ;;  %v5344_v18 = vpack.c.bf16 %v3138_v11, %v3131_v10 }
 0xc10   :  { %5405 = vmatpush3.bf16.msra.mxu1 %v5404_v19  ;;  %5279 = vmatprep.subr.bf16.mxu0 %v5278_v21  ;;  %v2985_v19 = vld [vmem:[%s9685_s24 + $0x530] sm:$0xff]  ;;  %v3203_v21 = vld [vmem:[%s9685_s24 + $0xc00] sm:$0xff]  ;;  %v3146_v12 = vld [vmem:[%s9685_s24 + $0xa38] sm:$0xff] }
 0xc11   :  { %5407 = vmatprep.subr.bf16.mxu1 %v5406_v28  ;;  %v5298_v28 = vpack.c.bf16 %v2985_v19, %v2978_v17  ;;  %v5426_v35 = vpack.c.bf16 %v3210_v22, %v3203_v21  ;;  %v3040_v17 = vld [vmem:[%s9685_s24 + $0x6e8] sm:$0xff]  ;;  %v3147_v19 = vld [vmem:[%s9685_s24 + $0xa40] sm:$0xff]  ;;  %v3154_v22 = vld [vmem:[%s9685_s24 + $0xa78] sm:$0xff] }
 0xc12   :  { %v5444_v61 = vpack.c.bf16 %v3154_v22, %v3147_v19  ;;  %v3174_v19 = vld [vmem:[%s9685_s24 + $0xb18] sm:$0xff] }
 0xc13   :  { %5281 = vmatpush1.bf16.msra.mxu0 %v5280_v37  ;;  %v2992_v37 = vld [vmem:[%s9685_s24 + $0x568] sm:$0xff] }
 0xc14   :  { %5409 = vmatpush3.bf16.msra.mxu1 %v5408_v38  ;;  %5283 = vmatprep.subr.bf16.mxu0 %v5282_v43  ;;  %v2999_v38 = vld [vmem:[%s9685_s24 + $0x5a0] sm:$0xff]  ;;  %v3217_v43 = vld [vmem:[%s9685_s24 + $0xc70] sm:$0xff] }
 0xc15   :  { %5411 = vmatprep.subr.bf16.mxu1 %v5410_v25  ;;  %v5302_v25 = vpack.c.bf16 %v2999_v38, %v2992_v37  ;;  %v5430_v50 = vpack.c.bf16 %v3224_v20, %v3217_v43  ;;  %v3069_v37 = vld [vmem:[%s9685_s24 + $0x7d0] sm:$0xff] }
 0xc16   :  { %v5322_v43 = vpack.c.bf16 %v3069_v37, %v3062_v36  ;;  %v3061_v20 = vld [vmem:[%s9685_s24 + $0x790] sm:$0xff]  ;;  %v3187_v36 = vld [vmem:[%s9685_s24 + $0xb80] sm:$0xff]  ;;  %v3194_v37 = vld [vmem:[%s9685_s24 + $0xbb8] sm:$0xff] }
 0xc17   :  { %5285 = vmatpush1.bf16.msra.mxu0 %v5284_v40  ;;  %v3006_v40 = vld [vmem:[%s9685_s24 + $0x5d8] sm:$0xff] }
 0xc18   :  { %5413 = vmatpush3.bf16.msra.mxu1 %v5412_v41  ;;  %5287 = vmatprep.subr.bf16.mxu0 %v5286_v52  ;;  %v3013_v41 = vld [vmem:[%s9685_s24 + $0x610] sm:$0xff]  ;;  %v3231_v52 = vld [vmem:[%s9685_s24 + $0xce0] sm:$0xff] }
 0xc19   :  { %5415 = vmatprep.subr.bf16.mxu1 %v5414_v54  ;;  %v5432_v54 = vpack.c.bf16 %v3112_v51, %v3105_v0  ;;  %v5306_v55 = vpack.c.bf16 %v3013_v41, %v3006_v40  ;;  %v5434_v60 = vpack.c.bf16 %v3238_v44, %v3231_v52  ;;  %v3075_v0 = vld [vmem:[%s9685_s24 + $0x800] sm:$0xff]  ;;  %v3097_v51 = vld [vmem:[%s9685_s24 + $0x8b0] sm:$0xff]  ;;  %v3096_v52 = vld [vmem:[%s9685_s24 + $0x8a8] sm:$0xff] }
 0xc1a   :  { %v3089_v41 = vld [vmem:[%s9685_s24 + $0x870] sm:$0xff]  ;;  %v3104_v44 = vld [vmem:[%s9685_s24 + $0x8e8] sm:$0xff] }
 0xc1b   :  { %3795 = vmatmul.mubr.f32.vlgmr.msra.gmra.mrb[24].mxu1 %v8664_v26  ;;  %5289 = vmatpush1.bf16.msra.mxu0 %v5288_v62  ;;  %v3020_v62 = vld [vmem:[%s9685_s24 + $0x648] sm:$0xff] }
 0xc1c   :  { %5417 = vmatpush3.bf16.msra.mxu1 %v5416_v63  ;;  %3864 = vmatprep.mubr.f32.mxu1 %v8688_v39  ;;  %v3027_v63 = vld [vmem:[%s9685_s24 + $0x680] sm:$0xff] }
 0xc1d   :  { %5291 = vmatprep.subr.bf16.mxu0 %v5290_v8  ;;  %5419 = vmatprep.subr.bf16.mxu1 %v5418_v9  ;;  %v5436_v8 = vpack.c.bf16 %v3126_v32, %v3119_v58  ;;  %v5310_v9 = vpack.c.bf16 %v3027_v63, %v3020_v62  ;;  %v3118_v58 = vld [vmem:[%s9685_s24 + $0x958] sm:$0xff]  ;;  %v5336_v32 = vpack.c.bf16 %v3110_v57, %v3103_v56  ;;  %v3117_v63 = vld [vmem:[%s9685_s24 + $0x950] sm:$0xff] }
 0xc1f   :  { %5293 = vmatpush1.bf16.msra.mxu0 %v5292_v13  ;;  %v3034_v13 = vld [vmem:[%s9685_s24 + $0x6b8] sm:$0xff] }
 0xc20   :  { %5421 = vmatpush3.bf16.msra.mxu1 %v5420_v1  ;;  %5295 = vmatprep.subr.bf16.mxu0 %v5294_v14  ;;  %v3041_v1 = vld [vmem:[%s9685_s24 + $0x6f0] sm:$0xff]  ;;  %v3259_v14 = vld [vmem:[%s9685_s24 + $0xdc0] sm:$0xff] }
 0xc21   :  { %5423 = vmatprep.subr.bf16.mxu1 %v5422_v5  ;;  %v5314_v5 = vpack.c.bf16 %v3041_v1, %v3034_v13  ;;  %v5442_v21 = vpack.c.bf16 %v3266_v2, %v3259_v14  ;;  %v3145_v1 = vld [vmem:[%s9685_s24 + $0xa30] sm:$0xff]  ;;  %v3152_v14 = vld [vmem:[%s9685_s24 + $0xa68] sm:$0xff] }
 0xc22   :  { %v3160_v2 = vld [vmem:[%s9685_s24 + $0xaa8] sm:$0xff] }
 0xc23   :  { %5297 = vmatpush1.bf16.msra.mxu0 %v5296_v23  ;;  %v3048_v23 = vld [vmem:[%s9685_s24 + $0x728] sm:$0xff] }
 0xc24   :  { %5425 = vmatpush3.bf16.msra.mxu1 %v5424_v24  ;;  %5299 = vmatprep.subr.bf16.mxu0 %v5298_v28  ;;  %v3055_v24 = vld [vmem:[%s9685_s24 + $0x760] sm:$0xff]  ;;  %v5316_v28 = vpack.c.bf16 %v3040_v17, %v3033_v7  ;;  %v3166_v17 = vld [vmem:[%s9685_s24 + $0xad8] sm:$0xff] }
 0xc25   :  { %5427 = vmatprep.subr.bf16.mxu1 %v5426_v35  ;;  %v5318_v29 = vpack.c.bf16 %v3055_v24, %v3048_v23  ;;  %v3054_v35 = vld [vmem:[%s9685_s24 + $0x758] sm:$0xff]  ;;  %v3159_v7 = vld [vmem:[%s9685_s24 + $0xaa0] sm:$0xff]  ;;  %v3173_v24 = vld [vmem:[%s9685_s24 + $0xb10] sm:$0xff] }
 0xc26   :  { %v5320_v38 = vpack.c.bf16 %v3054_v35, %v3047_v34  ;;  %v5352_v22 = vpack.c.bf16 %v3166_v17, %v3159_v7 }
 0xc27   :  { %5301 = vmatpush1.bf16.msra.mxu0 %v5300_v46  ;;  %v3068_v46 = vld [vmem:[%s9685_s24 + $0x7c8] sm:$0xff] }
 0xc28   :  { %5429 = vmatpush3.bf16.msra.mxu1 %v5428_v47  ;;  %5303 = vmatprep.subr.bf16.mxu0 %v5302_v25  ;;  %v3076_v47 = vld [vmem:[%s9685_s24 + $0x808] sm:$0xff]  ;;  %v3083_v25 = vld [vmem:[%s9685_s24 + $0x840] sm:$0xff]  ;;  %v5324_v27 = vpack.c.bf16 %v3068_v46, %v3061_v20  ;;  %v5360_v20 = vpack.c.bf16 %v3194_v37, %v3187_v36 }
 0xc29   :  { %5431 = vmatprep.subr.bf16.mxu1 %v5430_v50  ;;  %v5326_v49 = vpack.c.bf16 %v3083_v25, %v3076_v47  ;;  %v3082_v50 = vld [vmem:[%s9685_s24 + $0x838] sm:$0xff]  ;;  %v3201_v47 = vld [vmem:[%s9685_s24 + $0xbf0] sm:$0xff]  ;;  %v3208_v25 = vld [vmem:[%s9685_s24 + $0xc28] sm:$0xff] }
 0xc2b   :  { %5305 = vmatpush1.bf16.msra.mxu0 %v5304_v53  ;;  %v3111_v53 = vld [vmem:[%s9685_s24 + $0x920] sm:$0xff] }
 0xc2c   :  { %5433 = vmatpush3.bf16.msra.mxu1 %v5432_v54  ;;  %5307 = vmatprep.subr.bf16.mxu0 %v5306_v55  ;;  %v5332_v54 = vpack.c.bf16 %v3096_v52, %v3089_v41  ;;  %v5334_v55 = vpack.c.bf16 %v3111_v53, %v3104_v44  ;;  %v3229_v44 = vld [vmem:[%s9685_s24 + $0xcd0] sm:$0xff]  ;;  %v3236_v53 = vld [vmem:[%s9685_s24 + $0xd08] sm:$0xff] }
 0xc2d   :  { %5435 = vmatprep.subr.bf16.mxu1 %v5434_v60  ;;  %v3125_v60 = vld [vmem:[%s9685_s24 + $0x990] sm:$0xff]  ;;  %v5372_v56 = vpack.c.bf16 %v3236_v53, %v3229_v44 }
 0xc2e   :  { %v5338_v62 = vpack.c.bf16 %v3125_v60, %v3118_v58  ;;  %v3243_v58 = vld [vmem:[%s9685_s24 + $0xd40] sm:$0xff]  ;;  %v3250_v60 = vld [vmem:[%s9685_s24 + $0xd78] sm:$0xff] }
 0xc2f   :  { %5309 = vmatpush1.bf16.msra.mxu0 %v5308_v6  ;;  %v3139_v6 = vld [vmem:[%s9685_s24 + $0xa00] sm:$0xff] }
 0xc30   :  { %5437 = vmatpush3.bf16.msra.mxu1 %v5436_v8  ;;  %5311 = vmatprep.subr.bf16.mxu0 %v5310_v9  ;;  %v5340_v8 = vpack.c.bf16 %v3124_v3, %v3117_v63  ;;  %v5342_v9 = vpack.c.bf16 %v3139_v6, %v3132_v59  ;;  %v5376_v63 = vpack.c.bf16 %v3250_v60, %v3243_v58  ;;  %v3257_v59 = vld [vmem:[%s9685_s24 + $0xdb0] sm:$0xff]  ;;  %v3264_v6 = vld [vmem:[%s9685_s24 + $0xde8] sm:$0xff] }
 0xc31   :  { %5439 = vmatprep.subr.bf16.mxu1 %v5438_v42  ;;  %v3153_v42 = vld [vmem:[%s9685_s24 + $0xa70] sm:$0xff] }
 0xc32   :  { %v5346_v13 = vpack.c.bf16 %v3153_v42, %v3146_v12 }
 0xc33   :  { %5313 = vmatpush1.bf16.msra.mxu0 %v5312_v4  ;;  %v3167_v4 = vld [vmem:[%s9685_s24 + $0xae0] sm:$0xff] }
 0xc34   :  { %5441 = vmatpush3.bf16.msra.mxu1 %v5440_v16  ;;  %5315 = vmatprep.subr.bf16.mxu0 %v5314_v5  ;;  %v5348_v16 = vpack.c.bf16 %v3152_v14, %v3145_v1  ;;  %v5350_v5 = vpack.c.bf16 %v3167_v4, %v3160_v2 }
 0xc35   :  { %5443 = vmatprep.subr.bf16.mxu1 %v5442_v21  ;;  %v3181_v21 = vld [vmem:[%s9685_s24 + $0xb50] sm:$0xff] }
 0xc36   :  { %v5354_v23 = vpack.c.bf16 %v3181_v21, %v3174_v19 }
 0xc37   :  { %5317 = vmatpush1.bf16.msra.mxu0 %v5316_v28  ;;  %v3180_v28 = vld [vmem:[%s9685_s24 + $0xb48] sm:$0xff] }
 0xc38   :  { %5445 = vmatpush3.bf16.msra.mxu1 %v5444_v61  ;;  %5319 = vmatprep.subr.bf16.mxu0 %v5318_v29  ;;  %v3188_v61 = vld [vmem:[%s9685_s24 + $0xb88] sm:$0xff]  ;;  %v3195_v29 = vld [vmem:[%s9685_s24 + $0xbc0] sm:$0xff]  ;;  %v5356_v34 = vpack.c.bf16 %v3180_v28, %v3173_v24 }
 0xc39   :  { %v5358_v35 = vpack.c.bf16 %v3195_v29, %v3188_v61 }
 0xc3a   :  { %3653 = vmatmul.mubr.f32.vlgmr.msra.gmra.mrb[8].mxu0 %v8664_v26  ;;  %v3090_v26 = vld [vmem:[%s9685_s24 + $0x878] sm:$0xff] }
 0xc3b   :  { %3865 = vmatmul.mubr.f32.vlgmr.msra.gmra.mrb[26].mxu1 %v9065_v15  ;;  %5321 = vmatpush1.bf16.msra.mxu0 %v5320_v38  ;;  %v5330_v40 = vpack.c.bf16 %v3097_v51, %v3090_v26  ;;  %v3202_v38 = vld [vmem:[%s9685_s24 + $0xbf8] sm:$0xff]  ;;  %v3215_v26 = vld [vmem:[%s9685_s24 + $0xc60] sm:$0xff] }
 0xc3c   :  { %3723 = vmatprep.mubr.f32.mxu0 %v8688_v39  ;;  %5323 = vmatprep.subr.bf16.mxu0 %v5322_v43  ;;  %v5328_v39 = vpack.c.bf16 %v3082_v50, %v3075_v0  ;;  %v3209_v43 = vld [vmem:[%s9685_s24 + $0xc30] sm:$0xff]  ;;  %v5364_v0 = vpack.c.bf16 %v3208_v25, %v3201_v47  ;;  %v3222_v51 = vld [vmem:[%s9685_s24 + $0xc98] sm:$0xff] }
 0xc3d   :  { %v5362_v46 = vpack.c.bf16 %v3209_v43, %v3202_v38  ;;  %v5368_v41 = vpack.c.bf16 %v3222_v51, %v3215_v26 }
 0xc3f   :  { %5325 = vmatpush1.bf16.msra.mxu0 %v5324_v27  ;;  %v3216_v27 = vld [vmem:[%s9685_s24 + $0xc68] sm:$0xff] }
 0xc40   :  { %5327 = vmatprep.subr.bf16.mxu0 %v5326_v49  ;;  %v3223_v49 = vld [vmem:[%s9685_s24 + $0xca0] sm:$0xff] }
 0xc41   :  { %v5366_v50 = vpack.c.bf16 %v3223_v49, %v3216_v27 }
 0xc43   :  { %5329 = vmatpush1.bf16.msra.mxu0 %v5328_v39  ;;  %v3230_v39 = vld [vmem:[%s9685_s24 + $0xcd8] sm:$0xff] }
 0xc44   :  { %5331 = vmatprep.subr.bf16.mxu0 %v5330_v40  ;;  %v3237_v40 = vld [vmem:[%s9685_s24 + $0xd10] sm:$0xff] }
 0xc45   :  { %v5370_v52 = vpack.c.bf16 %v3237_v40, %v3230_v39 }
 0xc47   :  { %5333 = vmatpush1.bf16.msra.mxu0 %v5332_v54  ;;  %v3244_v54 = vld [vmem:[%s9685_s24 + $0xd48] sm:$0xff] }
 0xc48   :  { %5335 = vmatprep.subr.bf16.mxu0 %v5334_v55  ;;  %v3251_v55 = vld [vmem:[%s9685_s24 + $0xd80] sm:$0xff] }
 0xc49   :  { %v5374_v57 = vpack.c.bf16 %v3251_v55, %v3244_v54 }
 0xc4b   :  { %5337 = vmatpush1.bf16.msra.mxu0 %v5336_v32  ;;  %v3258_v32 = vld [vmem:[%s9685_s24 + $0xdb8] sm:$0xff] }
 0xc4c   :  { %5339 = vmatprep.subr.bf16.mxu0 %v5338_v62  ;;  %v3265_v62 = vld [vmem:[%s9685_s24 + $0xdf0] sm:$0xff]  ;;  %s5598_s24 = smov [#allocation2]  }
 0xc4d   :  { %v5378_v3 = vpack.c.bf16 %v3265_v62, %v3258_v32 }
 0xc4f   :  { %5341 = vmatpush1.bf16.msra.mxu0 %v5340_v8  ;;  %v5380_v8 = vpack.c.bf16 %v3264_v6, %v3257_v59 }
 0xc50   :  { %5343 = vmatprep.subr.bf16.mxu0 %v5342_v9  ;;  %v9620_v9 = vld [vmem:[%s9686_s25] sm:$0x7f]  ;;  %s3925_s25 = sshll.u32 %s5598_s24, 4  ;;  %s3926_s25 = int_to_ptr.vmem [resolvable:$true] %s3925_s25 }
 0xc51   :  { %v3272_v10 = vrot.slane %v9620_v9, %v7171_v31  ;;  %v3280_v11 = vrot.slane %v9620_v9, %v7214_v45  ;;  %v3276_v12 = vrot.slane %v9620_v9, %v7179_v33  ;;  %v3284_v42 = vrot.slane %v9620_v9, %v7199_v48  ;;  %s5547_s0 = scalar_lea.vmem %s3926_s25, 128  ;;  %p5552_p1 = scmp.lt.s32.totalorder %s3926_s25, %s3926_s25 }
 0xc52   :  { %p5548_p0 = scmp.ne.s32.totalorder %s3926_s25, %s5547_s0  ;;  %p5553_p2 = scmp.lt.s32.totalorder %s5547_s0, %s5547_s0 }
 0xc53   :  { %5345 = vmatpush1.bf16.msra.mxu0 %v5344_v18 }
 0xc54   :  { %5347 = vmatprep.subr.bf16.mxu0 %v5346_v13  ;;  %p5554_p3 = por %p5553_p2, %p5552_p1 }
 0xc56   :  { %p5555_p4 = pnand %p5554_p3, %p5548_p0 }
 0xc57   :  { %5349 = vmatpush1.bf16.msra.mxu0 %v5348_v16 }
 0xc58   :  { %5351 = vmatprep.subr.bf16.mxu0 %v5350_v5 }
 0xc5b   :  { %5353 = vmatpush1.bf16.msra.mxu0 %v5352_v22 }
 0xc5c   :  { %5355 = vmatprep.subr.bf16.mxu0 %v5354_v23 }
 0xc5f   :  { %5357 = vmatpush1.bf16.msra.mxu0 %v5356_v34 }
 0xc60   :  { %5359 = vmatprep.subr.bf16.mxu0 %v5358_v35 }
 0xc63   :  { %5361 = vmatpush1.bf16.msra.mxu0 %v5360_v20 }
 0xc64   :  { %5363 = vmatprep.subr.bf16.mxu0 %v5362_v46 }
 0xc67   :  { %5365 = vmatpush1.bf16.msra.mxu0 %v5364_v0 }
 0xc68   :  { %5367 = vmatprep.subr.bf16.mxu0 %v5366_v50 }
 0xc6b   :  { %5369 = vmatpush1.bf16.msra.mxu0 %v5368_v41 }
 0xc6c   :  { %5371 = vmatprep.subr.bf16.mxu0 %v5370_v52 }
 0xc6f   :  { %5373 = vmatpush1.bf16.msra.mxu0 %v5372_v56 }
 0xc70   :  { %5375 = vmatprep.subr.bf16.mxu0 %v5374_v57 }
 0xc73   :  { %5377 = vmatpush1.bf16.msra.mxu0 %v5376_v63 }
 0xc74   :  { %5379 = vmatprep.subr.bf16.mxu0 %v5378_v3 }
 0xc77   :  { %5381 = vmatpush1.bf16.msra.mxu0 %v5380_v8 }
 0xc7a   :  { %3724 = vmatmul.mubr.f32.vlgmr.msra.gmra.mrb[8].mxu0 %v9065_v15 }
 0xccd   :  { %v3441_v18 = vpop.f32.mrb[6].mxu0  ;;  %v3583_v13 = vpop.f32.mrb[22].mxu1 }
 0xcce   :  { %v5454_v15 = vadd.f32 %v3441_v18, %v3272_v10  ;;  %v5456_v1 = vadd.f32 %v3583_v13, %v3280_v11  ;;  %v3443_v14 = vpop.f32.mrb[7].mxu0  ;;  %v3585_v2 = vpop.f32.mrb[23].mxu1 }
 0xccf   :  { %v5455_v4 = vadd.f32 %v3443_v14, %v3276_v12  ;;  %v5457_v16 = vadd.f32 %v3585_v2, %v3284_v42 }
 0xcd0   :  { %v3961_v5 = vmul.f32 -1.442695, %v5454_v15  ;;  %v3963_v7 = vmul.f32 -1.442695, %v5456_v1 }
 0xcd1   :  { %v3962_v31 = vmul.f32 -1.442695, %v5455_v4  ;;  %v3964_v17 = vmul.f32 -1.442695, %v5457_v16 }
 0xcd2   :  { %5519 = vpow2.f32 %v3961_v5 }
 0xcd3   :  { %5521 = vpow2.f32 %v3963_v7 }
 0xcd4   :  { %5523 = vpow2.f32 %v3962_v31 }
 0xcd5   :  { %5525 = vpow2.f32 %v3964_v17 }
 0xcdc   :  { %v5520_v33 = vpop.eup %5519 }
 0xcdd   :  { %v5522_v45 = vpop.eup %5521  ;;  %v3891_v19 = vadd.f32 1.0, %v5520_v33 }
 0xcde   :  { %v5524_v48 = vpop.eup %5523  ;;  %v3893_v21 = vadd.f32 1.0, %v5522_v45 }
 0xcdf   :  { %v5526_v22 = vpop.eup %5525  ;;  %5527 = vrcp.f32 %v3891_v19  ;;  %v3892_v23 = vadd.f32 1.0, %v5524_v48 }
 0xce0   :  { %5529 = vrcp.f32 %v3893_v21  ;;  %v3894_v24 = vadd.f32 1.0, %v5526_v22 }
 0xce1   :  { %5531 = vrcp.f32 %v3892_v23 }
 0xce2   :  { %5533 = vrcp.f32 %v3894_v24 }
 0xce9   :  { %v5528_v28 = vpop.eup %5527 }
 0xcea   :  { %v5530_v61 = vpop.eup %5529  ;;  %3912 = vst [vmem:[#allocation4] sm:$0xff] %v5528_v28 }
 0xceb   :  { %v5532_v29 = vpop.eup %5531  ;;  %3914 = vst [vmem:[#allocation4 + $0x10] sm:$0xff] %v5530_v61 }
 0xcec   :  { %v5534_v34 = vpop.eup %5533  ;;  %3913 = vst [vmem:[#allocation4 + $0x8] sm:$0xff] %v5532_v29 }
 0xced   :  { %3915 = vst [vmem:[#allocation4 + $0x18] sm:$0xff] %v5534_v34 }
 0xcee   :  { %v4083_v35 = vpop.f32.mrb[24].mxu1 }
 0xcef   :  { %5558 = shalt.err (!%p5555_p4)
}
 0xcf0   :  { %s5559_s28 = scalar_lea.hbm %s9687_s26, 128 }
 0xcf1   :  { %p5560_p5 = scmp.ne.s32.totalorder %s9687_s26, %s5559_s28  ;;  %p5563_p6 = scmp.lt.u32.totalorder %s5559_s28, %s9687_s26 }
 0xcf3   :  { %p5565_p7 = pnand %p5563_p6, %p5560_p5 }
 0xcf5   :  { %5568 = shalt.err (!%p5565_p7)
}
 0xcf6   :  { %3928 = dma.vmem_to_hbm [thread:$0]  %s3926_s25, 128, %s9687_s26, [#allocation3]   ;;  %v4084_v36 = vpop.f32.mrb[25].mxu1  ;;  %v3295_v38 = vsub.s32 6, %v7168_v30  ;;  %v3287_v51 = vsub.s32 4, %v7168_v30  ;;  %v3291_v39 = vsub.s32 5, %v7168_v30 }
 0xcf7   :  { %v4085_v37 = vadd.f32 %v4084_v36, %v4083_v35  ;;  %s5599_s26 = smov [#allocation4]  }
 0xcf8   :  { %v3296_v43 = vrot.slane %v9620_v9, %v3295_v38  ;;  %v3288_v40 = vrot.slane %v9620_v9, %v3287_v51  ;;  %v3292_v41 = vrot.slane %v9620_v9, %v3291_v39  ;;  %s3935_s7 = sshll.u32 %s5599_s26, 4  ;;  %s3936_s7 = int_to_ptr.vmem [resolvable:$true] %s3935_s7 }
 0xcf9   :  { %s5569_s4 = scalar_lea.vmem %s3936_s7, 896  ;;  %p5574_p9 = scmp.lt.s32.totalorder %s3936_s7, %s3936_s7 }
 0xcfa   :  { %v3797_v47 = vadd.f32 %v4085_v37, %v3296_v43  ;;  %p5570_p8 = scmp.ne.s32.totalorder %s3936_s7, %s5569_s4  ;;  %p5575_p10 = scmp.lt.s32.totalorder %s5569_s4, %s5569_s4 }
 0xcfc   :  { %p5576_p11 = por %p5575_p10, %p5574_p9 }
 0xcfe   :  { %p5577_p12 = pnand %p5576_p11, %p5570_p8 }
 0xd0e   :  { %v4118_v20 = vpop.f32.mrb[26].mxu1 }
 0xd0f   :  { %v4119_v46 = vpop.f32.mrb[27].mxu1 }
 0xd10   :  { %v4120_v25 = vadd.f32 %v4119_v46, %v4118_v20 }
 0xd12   :  { %v3867_v27 = vadd.f32 %v4120_v25, %v3797_v47 }
 0xd14   :  { %v3967_v49 = vmul.f32 -1.442695, %v3867_v27 }
 0xd16   :  { %5535 = vpow2.f32 %v3967_v49 }
 0xd20   :  { %v5536_v0 = vpop.eup %5535 }
 0xd21   :  { %v3897_v50 = vadd.f32 1.0, %v5536_v0 }
 0xd23   :  { %5537 = vrcp.f32 %v3897_v50 }
 0xd2d   :  { %v5538_v26 = vpop.eup %5537 }
 0xd2e   :  { %3918 = vst.msk [vmem:[#allocation4 + $0x30] sm:$0xff] %vm522_vm0, %v5538_v26 }
 0xd4d   :  { %v3725_v52 = vpop.f32.mrb[8].mxu0 }
 0xd4e   :  { %v5458_v44 = vadd.f32 %v3725_v52, %v3288_v40  ;;  %v3727_v53 = vpop.f32.mrb[9].mxu0 }
 0xd4f   :  { %v5459_v54 = vadd.f32 %v3727_v53, %v3292_v41 }
 0xd50   :  { %v3965_v55 = vmul.f32 -1.442695, %v5458_v44 }
 0xd51   :  { %v3966_v56 = vmul.f32 -1.442695, %v5459_v54 }
 0xd52   :  { %5539 = vpow2.f32 %v3965_v55 }
 0xd53   :  { %5541 = vpow2.f32 %v3966_v56 }
 0xd5c   :  { %v5540_v57 = vpop.eup %5539 }
 0xd5d   :  { %v5542_v58 = vpop.eup %5541  ;;  %v3895_v60 = vadd.f32 1.0, %v5540_v57 }
 0xd5e   :  { %v3896_v32 = vadd.f32 1.0, %v5542_v58 }
 0xd5f   :  { %5543 = vrcp.f32 %v3895_v60 }
 0xd60   :  { %5545 = vrcp.f32 %v3896_v32 }
 0xd69   :  { %v5544_v30 = vpop.eup %5543 }
 0xd6a   :  { %v5546_v62 = vpop.eup %5545  ;;  %3916 = vst [vmem:[#allocation4 + $0x20] sm:$0xff] %v5544_v30 }
 0xd6b   :  { %3917 = vst [vmem:[#allocation4 + $0x28] sm:$0xff] %v5546_v62 }
 0xd6c   :  { %5580 = shalt.err (!%p5577_p12)
}
 0xd6d   :  { %s5581_s23 = scalar_lea.hbm %s9688_s27, 896 }
 0xd6e   :  { %p5582_p13 = scmp.ne.s32.totalorder %s9688_s27, %s5581_s23  ;;  %p5585_p0 = scmp.lt.u32.totalorder %s5581_s23, %s9688_s27 }
 0xd70   :  { %p5587_p1 = pnand %p5585_p0, %p5582_p13 }
 0xd72   :  { %5590 = shalt.err (!%p5587_p1)
}
 0xd73   :  { %3938 = dma.vmem_to_hbm [thread:$0]  %s3936_s7, 896, %s9688_s27, [#allocation5]  }
 0xd74   :  { %5591 = dma.done.wait [#allocation3], 128  }
 0xd75   :  { %5592 = vsyncadd [#allocation3], 4294967168 }
 0xd76   :  { %5593 = dma.done.wait [#allocation5], 896  }
 0xd77   :  { %5594 = vsyncadd [#allocation5], 4294966400 }
 0xd78   :  { %3945 = vsyncpa [#allocation3], 1 }
 0xd79   :  { %3946 = vsyncpa [#allocation5], 1 }

</bundles_post_ra>
